<compile_context>
chip_gen: v6e
topology: v6e:2x2x1
jax: 0.10.0
libtpu: 0.0.40
codegen_flags: <defaults>
</compile_context>

<pallas_src>
import functools
import math

import numpy as np
import jax
import jax.numpy as jnp
from jax.experimental import pallas as pl
from jax.experimental.pallas import tpu as pltpu


# ----------------------------- config ---------------------------------------
HIDDEN = 32
N_HEADS = 4
N_KV_HEADS = 4            # == N_HEADS (no GQA repeat needed)
HEAD_DIM = HIDDEN // N_HEADS
INTERMEDIATE = 64
N_LAYERS = 2
N_CODEBOOKS = 2
VOCAB = 16                # embedding table rows = VOCAB + 1
SLIDING_WINDOW = 4
RMS_EPS = 1e-6
ROPE_BASE = 10000.0
NEG_INF = -1e30


def _round_up(n, m=128):
    return ((n + m - 1) // m) * m


QKV_COLS = _round_up(3 * HIDDEN)     # fused q|k|v columns, zero-padded to 128
KV_COLS = _round_up(2 * HIDDEN)      # fused cross k|v columns, zero-padded
FF_COLS = _round_up(INTERMEDIATE)    # fc1 cols / fc2 rows, zero-padded


# ----------------------------- fused Pallas kernel ---------------------------
def _fused_decoder_kernel(n_layers, n_heads, head_dim, s_dec, s_enc, window, eps,
                          h_ref, enc_ref, cos_ref, sin_ref, rot_ref, ln_ref,
                          wqkv_self_ref, wo_self_ref, wq_cross_ref,
                          wkv_cross_ref, wo_cross_ref, fc1_ref, fc2_ref,
                          final_ln_ref, out_ref):
    """Whole decoder forward for ONE batch element; activations are (S, D)."""
    f32, bf16 = jnp.float32, jnp.bfloat16
    D = n_heads * head_dim

    def rmsnorm(x, w):                                   # x: (M, D), w: (1, D)
        var = jnp.mean(x * x, axis=-1, keepdims=True)
        return x * jax.lax.rsqrt(var + eps) * w

    h = h_ref[...]                       # (S, D) f32 residual stream
    enc_bf = enc_ref[...].astype(bf16)   # (S_enc, D) cast once, reused per layer
    cos = cos_ref[...]                   # (S, D) rope tables tiled across heads
    sin = sin_ref[...]
    rot = rot_ref[...]                   # (D, D) signed rotate-half permutation

    def rope(x):                         # 1/sqrt(Dh) already folded into wq
        return x * cos + jnp.dot(x, rot, preferred_element_type=f32) * sin

    # boolean sliding-window causal mask, built in-kernel, broadcast hoisted
    row = jax.lax.broadcasted_iota(jnp.int32, (s_dec, s_dec), 0)
    col = jax.lax.broadcasted_iota(jnp.int32, (s_dec, s_dec), 1)
    allowed = jnp.broadcast_to(((col <= row) & ((row - col) < window))[None],
                               (n_heads, s_dec, s_dec))

    def to_heads(x2d, s):                # (s, H*Dh) f32 -> (H, s, Dh) bf16
        return jnp.transpose(x2d.reshape(s, n_heads, head_dim), (1, 0, 2)).astype(bf16)

    def mha(q2d, k2d, v2d, wo, mask, s_q, s_k):
        """One batched-over-heads attention: q2d (s_q, D), k2d/v2d (s_k, D)."""
        qh = to_heads(q2d, s_q)
        kh = to_heads(k2d, s_k)
        vh = to_heads(v2d, s_k)
        s = jnp.einsum('hqd,hkd->hqk', qh, kh, preferred_element_type=f32)
        if mask is not None:                             # trace-time branch
            s = jnp.where(mask, s, NEG_INF)
        m = jnp.max(s, axis=-1, keepdims=True)
        p = jnp.exp(s - m)
        p = p * pl.reciprocal(jnp.sum(p, axis=-1, keepdims=True), approx=True)
        o = jnp.einsum('hqk,hkd->hqd', p.astype(bf16), vh,
                       preferred_element_type=f32)
        o2d = jnp.transpose(o, (1, 0, 2)).reshape(s_q, D)
        return jnp.dot(o2d.astype(bf16), wo, preferred_element_type=f32)

    # N_LAYERS is tiny -> static unroll is fine.
    # TODO(synk): at real layer counts move this to an 'arbitrary' grid axis
    #             with per-layer weight streaming (double-buffered BlockSpecs).
    for layer in range(n_layers):
        # ---- sliding-window causal self-attention block ----
        resid = h
        xn = rmsnorm(h, ln_ref[3 * layer + 0:3 * layer + 1, :])
        qkv = jnp.dot(xn.astype(bf16), wqkv_self_ref[layer],
                      preferred_element_type=f32)        # (S, QKV_COLS)
        q = rope(qkv[:, 0:D])
        k = rope(qkv[:, D:2 * D])
        v = qkv[:, 2 * D:3 * D]
        h = resid + mha(q, k, v, wo_self_ref[layer], allowed, s_dec, s_dec)

        # ---- cross-attention block (encoder_attention_mask=None -> no mask) --
        resid = h
        xn = rmsnorm(h, ln_ref[3 * layer + 1:3 * layer + 2, :])
        qc = jnp.dot(xn.astype(bf16), wq_cross_ref[layer],
                     preferred_element_type=f32)
        kv = jnp.dot(enc_bf, wkv_cross_ref[layer],
                     preferred_element_type=f32)         # (S_enc, KV_COLS)
        h = resid + mha(qc, kv[:, 0:D], kv[:, D:2 * D],
                        wo_cross_ref[layer], None, s_dec, s_enc)

        # ---- feed-forward block ----
        resid = h
        xn = rmsnorm(h, ln_ref[3 * layer + 2:3 * layer + 3, :])
        ff = jnp.dot(xn.astype(bf16), fc1_ref[layer],
                     preferred_element_type=f32)         # (S, FF_COLS) lane-dense
        ff = jax.nn.silu(ff)                             # silu(0)=0 on the pad
        ff = jnp.dot(ff.astype(bf16), fc2_ref[layer],
                     preferred_element_type=f32)
        h = resid + ff

    out_ref[...] = rmsnorm(h, final_ln_ref[...])


# ----------------------------- plain-JAX glue --------------------------------
def rotate_half(x):
    d = x.shape[-1] // 2
    return jnp.concatenate([-x[..., d:], x[..., :d]], axis=-1)


def rotary_embedding(position_ids, dim, base=ROPE_BASE):
    inv_freq = 1.0 / (base ** (jnp.arange(0, dim, 2, dtype=jnp.float32) / dim))
    freqs = position_ids.astype(jnp.float32)[:, None] * inv_freq[None, :]
    emb = jnp.concatenate([freqs, freqs], axis=-1)
    return jnp.cos(emb), jnp.sin(emb)            # (S, dim) each


def _rotate_half_matrix():
    """(D, D) signed permutation M with (q @ M) == per-head rotate_half(q)."""
    half = HEAD_DIM // 2
    rot = np.zeros((HIDDEN, HIDDEN), np.float32)
    for hd in range(N_HEADS):
        for d in range(HEAD_DIM):
            c_out = hd * HEAD_DIM + d
            if d < half:
                rot[hd * HEAD_DIM + d + half, c_out] = -1.0
            else:
                rot[hd * HEAD_DIM + d - half, c_out] = 1.0
    return jnp.asarray(rot)


def prepare_params(params):
    """One-time weight prep: stack, fuse qkv/kv, fold 1/sqrt(Dh), zero-pad to
    128-lane columns, cast matmul weights to bf16."""
    scale = 1.0 / math.sqrt(HEAD_DIM)

    def padc(w, width):   # zero-pad columns to `width`
        return jnp.pad(w, ((0, 0), (0, width - w.shape[1])))

    def padr(w, height):  # zero-pad rows to `height`
        return jnp.pad(w, ((0, height - w.shape[0]), (0, 0)))

    ln, wqkv_s, wo_s, wq_c, wkv_c, wo_c, fc1, fc2 = ([] for _ in range(8))
    for lp in params["layers"]:
        ln += [lp["input_ln"], lp["enc_ln"], lp["final_ln"]]
        sa, ca = lp["self_attn"], lp["cross_attn"]
        wqkv_s.append(padc(jnp.concatenate([sa["wq"] * scale, sa["wk"], sa["wv"]], 1),
                           QKV_COLS))
        wo_s.append(sa["wo"])
        wq_c.append(ca["wq"] * scale)
        wkv_c.append(padc(jnp.concatenate([ca["wk"], ca["wv"]], 1), KV_COLS))
        wo_c.append(ca["wo"])
        fc1.append(padc(lp["fc1"], FF_COLS))
        fc2.append(padr(lp["fc2"], FF_COLS))
    bf16 = jnp.bfloat16
    return {
        "embed_tokens": jnp.stack(params["embed_tokens"]),       # (C, V+1, D) f32
        "ln": jnp.stack(ln),                                      # (3L, D) f32
        "wqkv_self": jnp.stack(wqkv_s).astype(bf16),              # (L, D, 128)
        "wo_self": jnp.stack(wo_s).astype(bf16),                  # (L, D, D)
        "wq_cross": jnp.stack(wq_c).astype(bf16),                 # (L, D, D)
        "wkv_cross": jnp.stack(wkv_c).astype(bf16),               # (L, D, 128)
        "wo_cross": jnp.stack(wo_c).astype(bf16),                 # (L, D, D)
        "fc1": jnp.stack(fc1).astype(bf16),                       # (L, D, 128)
        "fc2": jnp.stack(fc2).astype(bf16),                       # (L, 128, D)
        "final_ln": params["final_ln"].reshape(1, HIDDEN),        # (1, D) f32
        "rot": _rotate_half_matrix(),                             # (D, D) f32
    }


@jax.jit
def transformer_decoder(prepped, input_ids, encoder_hidden_states):
    # input_ids: (B * num_codebooks, S) int32
    S = input_ids.shape[-1]
    inp = input_ids.reshape(-1, N_CODEBOOKS, S)          # (B, num_codebooks, S)
    B = inp.shape[0]
    S_enc = encoder_hidden_states.shape[1]

    # summed multi-codebook embeddings (gather is glue; plain JAX)
    h = jnp.zeros((B, S, HIDDEN), jnp.float32)
    for cb in range(N_CODEBOOKS):
        h = h + prepped["embed_tokens"][cb][inp[:, cb]]

    # rotary tables tiled to the (S, H*Dh) activation layout (position-only)
    cos, sin = rotary_embedding(jnp.arange(S), HEAD_DIM)         # (S, Dh)
    cos_full = jnp.tile(cos, (1, N_HEADS))                       # (S, D)
    sin_full = jnp.tile(sin, (1, N_HEADS))

    kernel = functools.partial(
        _fused_decoder_kernel, N_LAYERS, N_HEADS, HEAD_DIM, S, S_enc,
        SLIDING_WINDOW, RMS_EPS)

    wspec3 = lambda shape: pl.BlockSpec(shape, lambda b: (0, 0, 0))
    wspec2 = lambda shape: pl.BlockSpec(shape, lambda b: (0, 0))

    out = pl.pallas_call(
        kernel,
        out_shape=jax.ShapeDtypeStruct((B, S, HIDDEN), jnp.float32),
        grid=(B,),
        in_specs=[
            pl.BlockSpec((None, S, HIDDEN), lambda b: (b, 0, 0)),       # h
            pl.BlockSpec((None, S_enc, HIDDEN), lambda b: (b, 0, 0)),   # enc
            wspec2((S, HIDDEN)),                                        # cos
            wspec2((S, HIDDEN)),                                        # sin
            wspec2((HIDDEN, HIDDEN)),                                   # rot
            wspec2((3 * N_LAYERS, HIDDEN)),                             # ln
            wspec3((N_LAYERS, HIDDEN, QKV_COLS)),                       # wqkv_self
            wspec3((N_LAYERS, HIDDEN, HIDDEN)),                         # wo_self
            wspec3((N_LAYERS, HIDDEN, HIDDEN)),                         # wq_cross
            wspec3((N_LAYERS, HIDDEN, KV_COLS)),                        # wkv_cross
            wspec3((N_LAYERS, HIDDEN, HIDDEN)),                         # wo_cross
            wspec3((N_LAYERS, HIDDEN, FF_COLS)),                        # fc1
            wspec3((N_LAYERS, FF_COLS, HIDDEN)),                        # fc2
            wspec2((1, HIDDEN)),                                        # final_ln
        ],
        out_specs=pl.BlockSpec((None, S, HIDDEN), lambda b: (b, 0, 0)),
        compiler_params=pltpu.CompilerParams(
            dimension_semantics=("parallel",)),   # batch elems are independent
    )(h, encoder_hidden_states, cos_full, sin_full, prepped["rot"],
      prepped["ln"], prepped["wqkv_self"], prepped["wo_self"],
      prepped["wq_cross"], prepped["wkv_cross"], prepped["wo_cross"],
      prepped["fc1"], prepped["fc2"], prepped["final_ln"])
    return out


# ----------------------------- pure-JAX reference (for checking) -------------
def reference_decoder(params, input_ids, encoder_hidden_states):
    S = input_ids.shape[-1]
    inp = input_ids.reshape(-1, N_CODEBOOKS, S)
    B = inp.shape[0]
    h = jnp.zeros((B, S, HIDDEN), jnp.float32)
    for cb in range(N_CODEBOOKS):
        h = h + params["embed_tokens"][cb][inp[:, cb]]
    cos, sin = rotary_embedding(jnp.arange(S), HEAD_DIM)

    def rmsnorm(x, w):
        return x * jax.lax.rsqrt(jnp.mean(x * x, -1, keepdims=True) + RMS_EPS) * w

    def heads(x):
        return x.reshape(x.shape[0], x.shape[1], N_HEADS, HEAD_DIM).transpose(0, 2, 1, 3)

    def merge(x):
        return x.transpose(0, 2, 1, 3).reshape(x.shape[0], x.shape[2], HIDDEN)

    def attn(xq, xkv, ap, mask, use_rope):
        q, k, v = heads(xq @ ap["wq"]), heads(xkv @ ap["wk"]), heads(xkv @ ap["wv"])
        if use_rope:
            q = q * cos[None, None] + rotate_half(q) * sin[None, None]
            k = k * cos[None, None] + rotate_half(k) * sin[None, None]
        s = jnp.einsum('bhqd,bhkd->bhqk', q, k) / math.sqrt(HEAD_DIM)
        if mask is not None:
            s = s + mask
        o = jnp.einsum('bhqk,bhkd->bhqd', jax.nn.softmax(s, -1), v)
        return merge(o) @ ap["wo"]

    i = jnp.arange(S)[:, None]
    j = jnp.arange(S)[None, :]
    sw_mask = jnp.where((j <= i) & ((i - j) < SLIDING_WINDOW), 0.0, NEG_INF)

    for lp in params["layers"]:
        xn = rmsnorm(h, lp["input_ln"])
        h = h + attn(xn, xn, lp["self_attn"], sw_mask, True)
        xn = rmsnorm(h, lp["enc_ln"])
        h = h + attn(xn, encoder_hidden_states, lp["cross_attn"], None, False)
        xn = rmsnorm(h, lp["final_ln"])
        h = h + jax.nn.silu(xn @ lp["fc1"]) @ lp["fc2"]
    return rmsnorm(h, params["final_ln"])


# ----------------------------- parameter init --------------------------------
def init_params(key):
    std = 0.02
    keys = iter(jax.random.split(key, 64))

    def lin(shape):
        return jax.random.normal(next(keys), shape, jnp.float32) * std

    def attn_params(kv_heads):
        return {
            "wq": lin((HIDDEN, N_HEADS * HEAD_DIM)),
            "wk": lin((HIDDEN, kv_heads * HEAD_DIM)),
            "wv": lin((HIDDEN, kv_heads * HEAD_DIM)),
            "wo": lin((N_HEADS * HEAD_DIM, HIDDEN)),
        }

    layers = []
    for _ in range(N_LAYERS):
        layers.append({
            "input_ln": jnp.ones((HIDDEN,), jnp.float32),
            "enc_ln": jnp.ones((HIDDEN,), jnp.float32),
            "final_ln": jnp.ones((HIDDEN,), jnp.float32),
            "self_attn": attn_params(N_KV_HEADS),
            "cross_attn": attn_params(N_KV_HEADS),
            "fc1": lin((HIDDEN, INTERMEDIATE)),
            "fc2": lin((INTERMEDIATE, HIDDEN)),
        })
    return {
        "embed_tokens": [lin((VOCAB + 1, HIDDEN)) for _ in range(N_CODEBOOKS)],
        "layers": layers,
        "final_ln": jnp.ones((HIDDEN,), jnp.float32),
    }


# ----------------------------- main ------------------------------------------
if __name__ == "__main__":
    key = jax.random.PRNGKey(0)
    k_param, k_ids, k_enc = jax.random.split(key, 3)

    B, S = 2, 8
    params = init_params(k_param)
    input_ids = jax.random.randint(k_ids, (B * N_CODEBOOKS, S), 0, VOCAB,
                                   dtype=jnp.int32)
    encoder_hidden_states = jax.random.normal(k_enc, (B, S, HIDDEN), jnp.float32)

    prepped = prepare_params(params)
    out = transformer_decoder(prepped, input_ids, encoder_hidden_states)
    out = jax.block_until_ready(out)

    assert out.shape == (B, S, HIDDEN)
    assert bool(jnp.all(jnp.isfinite(out)))

    ref = jax.block_until_ready(
        reference_decoder(params, input_ids, encoder_hidden_states))
    # bf16 MXU operands (f32 accumulation) vs a pure-f32 reference -> relaxed
    # tolerance; the final RMSNorm makes outputs O(1) so these bounds are tight
    # enough to catch any structural bug.
    max_err = float(jnp.max(jnp.abs(out - ref)))
    mean_err = float(jnp.mean(jnp.abs(out - ref)))
    assert max_err < 1e-1 and mean_err < 1e-2, (
        f"mismatch vs pure-JAX reference: max={max_err} mean={mean_err}")

    print("KERNEL_OK")
</pallas_src>

<mosaic_0001>
module attributes {stable_mosaic.version = 11 : i64} {
  func.func @_fused_decoder_kernel(%arg0: i32, %arg1: memref<1x8x32xf32, #tpu.memory_space<vmem>>, %arg2: memref<1x8x32xf32, #tpu.memory_space<vmem>>, %arg3: memref<8x32xf32, #tpu.memory_space<vmem>>, %arg4: memref<8x32xf32, #tpu.memory_space<vmem>>, %arg5: memref<32x32xf32, #tpu.memory_space<vmem>>, %arg6: memref<6x32xf32, #tpu.memory_space<vmem>>, %arg7: memref<2x32x128xbf16, #tpu.memory_space<vmem>>, %arg8: memref<2x32x32xbf16, #tpu.memory_space<vmem>>, %arg9: memref<2x32x32xbf16, #tpu.memory_space<vmem>>, %arg10: memref<2x32x128xbf16, #tpu.memory_space<vmem>>, %arg11: memref<2x32x32xbf16, #tpu.memory_space<vmem>>, %arg12: memref<2x32x128xbf16, #tpu.memory_space<vmem>>, %arg13: memref<2x128x32xbf16, #tpu.memory_space<vmem>>, %arg14: memref<1x32xf32, #tpu.memory_space<vmem>>, %arg15: memref<1x8x32xf32, #tpu.memory_space<vmem>>) attributes {dimension_semantics = [#tpu.dimension_semantics<parallel>], iteration_bounds = array<i64: 2>, scalar_prefetch = 0 : i64, scratch_operands = 0 : i64, tpu.core_type = #tpu.core_type<tc>, window_params = [{transform_indices = @transform_0, window_bounds = array<i64: 1, 8, 32>}, {transform_indices = @transform_1, window_bounds = array<i64: 1, 8, 32>}, {pipeline_mode = #tpu.pipeline_mode<synchronous>, transform_indices = @transform_2, window_bounds = array<i64: 8, 32>}, {pipeline_mode = #tpu.pipeline_mode<synchronous>, transform_indices = @transform_3, window_bounds = array<i64: 8, 32>}, {pipeline_mode = #tpu.pipeline_mode<synchronous>, transform_indices = @transform_4, window_bounds = array<i64: 32, 32>}, {pipeline_mode = #tpu.pipeline_mode<synchronous>, transform_indices = @transform_5, window_bounds = array<i64: 6, 32>}, {pipeline_mode = #tpu.pipeline_mode<synchronous>, transform_indices = @transform_6, window_bounds = array<i64: 2, 32, 128>}, {pipeline_mode = #tpu.pipeline_mode<synchronous>, transform_indices = @transform_7, window_bounds = array<i64: 2, 32, 32>}, {pipeline_mode = #tpu.pipeline_mode<synchronous>, transform_indices = @transform_8, window_bounds = array<i64: 2, 32, 32>}, {pipeline_mode = #tpu.pipeline_mode<synchronous>, transform_indices = @transform_9, window_bounds = array<i64: 2, 32, 128>}, {pipeline_mode = #tpu.pipeline_mode<synchronous>, transform_indices = @transform_10, window_bounds = array<i64: 2, 32, 32>}, {pipeline_mode = #tpu.pipeline_mode<synchronous>, transform_indices = @transform_11, window_bounds = array<i64: 2, 32, 128>}, {pipeline_mode = #tpu.pipeline_mode<synchronous>, transform_indices = @transform_12, window_bounds = array<i64: 2, 128, 32>}, {pipeline_mode = #tpu.pipeline_mode<synchronous>, transform_indices = @transform_13, window_bounds = array<i64: 1, 32>}, {transform_indices = @transform_14, window_bounds = array<i64: 1, 8, 32>}]} {
    %c0 = arith.constant 0 : index
    %c0_0 = arith.constant 0 : index
    %c0_1 = arith.constant 0 : index
    %0 = vector.load %arg1[%c0, %c0_0, %c0_1] : memref<1x8x32xf32, #tpu.memory_space<vmem>>, vector<1x8x32xf32>
    %1 = vector.shape_cast %0 : vector<1x8x32xf32> to vector<8x32xf32>
    %c0_2 = arith.constant 0 : index
    %c0_3 = arith.constant 0 : index
    %c0_4 = arith.constant 0 : index
    %2 = vector.load %arg2[%c0_2, %c0_3, %c0_4] : memref<1x8x32xf32, #tpu.memory_space<vmem>>, vector<1x8x32xf32>
    %3 = vector.shape_cast %2 : vector<1x8x32xf32> to vector<8x32xf32>
    %4 = arith.truncf %3 : vector<8x32xf32> to vector<8x32xbf16>
    %c0_5 = arith.constant 0 : index
    %c0_6 = arith.constant 0 : index
    %5 = vector.load %arg3[%c0_5, %c0_6] : memref<8x32xf32, #tpu.memory_space<vmem>>, vector<8x32xf32>
    %c0_7 = arith.constant 0 : index
    %c0_8 = arith.constant 0 : index
    %6 = vector.load %arg4[%c0_7, %c0_8] : memref<8x32xf32, #tpu.memory_space<vmem>>, vector<8x32xf32>
    %c0_9 = arith.constant 0 : index
    %c0_10 = arith.constant 0 : index
    %7 = vector.load %arg5[%c0_9, %c0_10] : memref<32x32xf32, #tpu.memory_space<vmem>>, vector<32x32xf32>
    %8 = tpu.iota {dimensions = array<i32: 0>} : vector<8x8xi32>
    %9 = tpu.iota {dimensions = array<i32: 1>} : vector<8x8xi32>
    %10 = arith.cmpi sle, %9, %8 : vector<8x8xi32>
    %11 = arith.subi %8, %9 : vector<8x8xi32>
    %c4_i32 = arith.constant 4 : i32
    %12 = vector.broadcast %c4_i32 : i32 to vector<8x8xi32>
    %13 = arith.cmpi slt, %11, %12 : vector<8x8xi32>
    %14 = arith.andi %10, %13 : vector<8x8xi1>
    %15 = vector.shape_cast %14 : vector<8x8xi1> to vector<1x8x8xi1>
    %16 = vector.shape_cast %15 : vector<1x8x8xi1> to vector<1x8x8xi1>
    %17 = vector.broadcast %16 : vector<1x8x8xi1> to vector<4x8x8xi1>
    %c0_11 = arith.constant 0 : index
    %c0_12 = arith.constant 0 : index
    %18 = vector.load %arg6[%c0_11, %c0_12] : memref<6x32xf32, #tpu.memory_space<vmem>>, vector<1x32xf32>
    %19 = arith.mulf %1, %1 : vector<8x32xf32>
    %cst = arith.constant dense<0.000000e+00> : vector<8xf32>
    %20 = vector.multi_reduction <add>, %19, %cst [1] : vector<8x32xf32> to vector<8xf32>
    %21 = vector.shape_cast %20 : vector<8xf32> to vector<8x1xf32>
    %cst_13 = arith.constant 3.200000e+01 : f32
    %22 = vector.broadcast %cst_13 : f32 to vector<8x1xf32>
    %23 = arith.divf %21, %22 : vector<8x1xf32>
    %cst_14 = arith.constant 9.99999997E-7 : f32
    %24 = vector.broadcast %cst_14 : f32 to vector<8x1xf32>
    %25 = arith.addf %23, %24 : vector<8x1xf32>
    %26 = math.rsqrt %25 : vector<8x1xf32>
    %27 = vector.broadcast %26 : vector<8x1xf32> to vector<8x32xf32>
    %28 = arith.mulf %1, %27 : vector<8x32xf32>
    %29 = vector.broadcast %18 : vector<1x32xf32> to vector<8x32xf32>
    %30 = arith.mulf %28, %29 : vector<8x32xf32>
    %31 = arith.truncf %30 : vector<8x32xf32> to vector<8x32xbf16>
    %c0_15 = arith.constant 0 : index
    %c0_16 = arith.constant 0 : index
    %c0_17 = arith.constant 0 : index
    %32 = vector.load %arg7[%c0_15, %c0_16, %c0_17] : memref<2x32x128xbf16, #tpu.memory_space<vmem>>, vector<1x32x128xbf16>
    %33 = vector.shape_cast %32 : vector<1x32x128xbf16> to vector<32x128xbf16>
    %cst_18 = arith.constant dense<0.000000e+00> : vector<8x128xf32>
    %34 = tpu.matmul %31, %33, %cst_18 {dimension_numbers = #tpu.dot_dimension_numbers<[1], [0], [0], [1], [0, 0, 1, 1], [], []>} : vector<8x32xbf16>, vector<32x128xbf16>, vector<8x128xf32> -> vector<8x128xf32>
    %35 = vector.extract_strided_slice %34 {offsets = [0, 0], sizes = [8, 32], strides = [1, 1]} : vector<8x128xf32> to vector<8x32xf32>
    %36 = arith.mulf %35, %5 : vector<8x32xf32>
    %cst_19 = arith.constant dense<0.000000e+00> : vector<8x32xf32>
    %37 = tpu.matmul %35, %7, %cst_19 {dimension_numbers = #tpu.dot_dimension_numbers<[1], [0], [0], [1], [0, 0, 1, 1], [], []>} : vector<8x32xf32>, vector<32x32xf32>, vector<8x32xf32> -> vector<8x32xf32>
    %38 = arith.mulf %37, %6 : vector<8x32xf32>
    %39 = arith.addf %36, %38 : vector<8x32xf32>
    %40 = vector.extract_strided_slice %34 {offsets = [0, 32], sizes = [8, 32], strides = [1, 1]} : vector<8x128xf32> to vector<8x32xf32>
    %41 = arith.mulf %40, %5 : vector<8x32xf32>
    %cst_20 = arith.constant dense<0.000000e+00> : vector<8x32xf32>
    %42 = tpu.matmul %40, %7, %cst_20 {dimension_numbers = #tpu.dot_dimension_numbers<[1], [0], [0], [1], [0, 0, 1, 1], [], []>} : vector<8x32xf32>, vector<32x32xf32>, vector<8x32xf32> -> vector<8x32xf32>
    %43 = arith.mulf %42, %6 : vector<8x32xf32>
    %44 = arith.addf %41, %43 : vector<8x32xf32>
    %45 = vector.extract_strided_slice %34 {offsets = [0, 64], sizes = [8, 32], strides = [1, 1]} : vector<8x128xf32> to vector<8x32xf32>
    %c0_21 = arith.constant 0 : index
    %c0_22 = arith.constant 0 : index
    %c0_23 = arith.constant 0 : index
    %46 = vector.load %arg8[%c0_21, %c0_22, %c0_23] : memref<2x32x32xbf16, #tpu.memory_space<vmem>>, vector<1x32x32xbf16>
    %47 = vector.shape_cast %46 : vector<1x32x32xbf16> to vector<32x32xbf16>
    %48 = vector.shape_cast %39 : vector<8x32xf32> to vector<8x4x8xf32>
    %49 = tpu.transpose %48, [1, 0, 2] : vector<8x4x8xf32> -> vector<4x8x8xf32>
    %50 = arith.truncf %49 : vector<4x8x8xf32> to vector<4x8x8xbf16>
    %51 = vector.shape_cast %44 : vector<8x32xf32> to vector<8x4x8xf32>
    %52 = tpu.transpose %51, [1, 0, 2] : vector<8x4x8xf32> -> vector<4x8x8xf32>
    %53 = arith.truncf %52 : vector<4x8x8xf32> to vector<4x8x8xbf16>
    %54 = vector.shape_cast %45 : vector<8x32xf32> to vector<8x4x8xf32>
    %55 = tpu.transpose %54, [1, 0, 2] : vector<8x4x8xf32> -> vector<4x8x8xf32>
    %56 = arith.truncf %55 : vector<4x8x8xf32> to vector<4x8x8xbf16>
    "tpu.trace_start"() <{level = 10 : i32, message = "hqd,hkd->hqk"}> : () -> ()
    %cst_24 = arith.constant dense<0.000000e+00> : vector<4x8x8xf32>
    %57 = tpu.matmul %50, %53, %cst_24 {dimension_numbers = #tpu.dot_dimension_numbers<[2], [2], [1], [1], [0, 0, 0, 1, 1, 1], [0], [0]>} : vector<4x8x8xbf16>, vector<4x8x8xbf16>, vector<4x8x8xf32> -> vector<4x8x8xf32>
    %cst_25 = arith.constant -1.000000e+30 : f32
    "tpu.trace_stop"() : () -> ()
    %58 = vector.broadcast %cst_25 : f32 to vector<4x8x8xf32>
    %59 = arith.select %17, %57, %58 : vector<4x8x8xi1>, vector<4x8x8xf32>
    %cst_26 = arith.constant dense<0xFF800000> : vector<4x8xf32>
    %60 = vector.multi_reduction <maximumf>, %59, %cst_26 [2] : vector<4x8x8xf32> to vector<4x8xf32>
    %61 = vector.shape_cast %60 : vector<4x8xf32> to vector<4x8x1xf32>
    %62 = vector.broadcast %61 : vector<4x8x1xf32> to vector<4x8x8xf32>
    %63 = arith.subf %59, %62 : vector<4x8x8xf32>
    %64 = math.exp %63 : vector<4x8x8xf32>
    %cst_27 = arith.constant dense<0.000000e+00> : vector<4x8xf32>
    %65 = vector.multi_reduction <add>, %64, %cst_27 [2] : vector<4x8x8xf32> to vector<4x8xf32>
    %66 = vector.shape_cast %65 : vector<4x8xf32> to vector<4x8x1xf32>
    %67 = tpu.reciprocal %66 {approx = true} : vector<4x8x1xf32> -> vector<4x8x1xf32>
    %68 = vector.broadcast %67 : vector<4x8x1xf32> to vector<4x8x8xf32>
    %69 = arith.mulf %64, %68 : vector<4x8x8xf32>
    %70 = arith.truncf %69 : vector<4x8x8xf32> to vector<4x8x8xbf16>
    "tpu.trace_start"() <{level = 10 : i32, message = "hqk,hkd->hqd"}> : () -> ()
    %cst_28 = arith.constant dense<0.000000e+00> : vector<4x8x8xf32>
    %71 = tpu.matmul %70, %56, %cst_28 {dimension_numbers = #tpu.dot_dimension_numbers<[2], [1], [1], [2], [0, 0, 0, 1, 1, 2], [0], [0]>} : vector<4x8x8xbf16>, vector<4x8x8xbf16>, vector<4x8x8xf32> -> vector<4x8x8xf32>
    "tpu.trace_stop"() : () -> ()
    %72 = tpu.transpose %71, [1, 0, 2] : vector<4x8x8xf32> -> vector<8x4x8xf32>
    %73 = vector.shape_cast %72 : vector<8x4x8xf32> to vector<8x32xf32>
    %74 = arith.truncf %73 : vector<8x32xf32> to vector<8x32xbf16>
    %cst_29 = arith.constant dense<0.000000e+00> : vector<8x32xf32>
    %75 = tpu.matmul %74, %47, %cst_29 {dimension_numbers = #tpu.dot_dimension_numbers<[1], [0], [0], [1], [0, 0, 1, 1], [], []>} : vector<8x32xbf16>, vector<32x32xbf16>, vector<8x32xf32> -> vector<8x32xf32>
    %76 = arith.addf %1, %75 : vector<8x32xf32>
    %c1 = arith.constant 1 : index
    %c0_30 = arith.constant 0 : index
    %77 = vector.load %arg6[%c1, %c0_30] : memref<6x32xf32, #tpu.memory_space<vmem>>, vector<1x32xf32>
    %78 = arith.mulf %76, %76 : vector<8x32xf32>
    %cst_31 = arith.constant dense<0.000000e+00> : vector<8xf32>
    %79 = vector.multi_reduction <add>, %78, %cst_31 [1] : vector<8x32xf32> to vector<8xf32>
    %80 = vector.shape_cast %79 : vector<8xf32> to vector<8x1xf32>
    %cst_32 = arith.constant 3.200000e+01 : f32
    %81 = vector.broadcast %cst_32 : f32 to vector<8x1xf32>
    %82 = arith.divf %80, %81 : vector<8x1xf32>
    %cst_33 = arith.constant 9.99999997E-7 : f32
    %83 = vector.broadcast %cst_33 : f32 to vector<8x1xf32>
    %84 = arith.addf %82, %83 : vector<8x1xf32>
    %85 = math.rsqrt %84 : vector<8x1xf32>
    %86 = vector.broadcast %85 : vector<8x1xf32> to vector<8x32xf32>
    %87 = arith.mulf %76, %86 : vector<8x32xf32>
    %88 = vector.broadcast %77 : vector<1x32xf32> to vector<8x32xf32>
    %89 = arith.mulf %87, %88 : vector<8x32xf32>
    %90 = arith.truncf %89 : vector<8x32xf32> to vector<8x32xbf16>
    %c0_34 = arith.constant 0 : index
    %c0_35 = arith.constant 0 : index
    %c0_36 = arith.constant 0 : index
    %91 = vector.load %arg9[%c0_34, %c0_35, %c0_36] : memref<2x32x32xbf16, #tpu.memory_space<vmem>>, vector<1x32x32xbf16>
    %92 = vector.shape_cast %91 : vector<1x32x32xbf16> to vector<32x32xbf16>
    %cst_37 = arith.constant dense<0.000000e+00> : vector<8x32xf32>
    %93 = tpu.matmul %90, %92, %cst_37 {dimension_numbers = #tpu.dot_dimension_numbers<[1], [0], [0], [1], [0, 0, 1, 1], [], []>} : vector<8x32xbf16>, vector<32x32xbf16>, vector<8x32xf32> -> vector<8x32xf32>
    %c0_38 = arith.constant 0 : index
    %c0_39 = arith.constant 0 : index
    %c0_40 = arith.constant 0 : index
    %94 = vector.load %arg10[%c0_38, %c0_39, %c0_40] : memref<2x32x128xbf16, #tpu.memory_space<vmem>>, vector<1x32x128xbf16>
    %95 = vector.shape_cast %94 : vector<1x32x128xbf16> to vector<32x128xbf16>
    %cst_41 = arith.constant dense<0.000000e+00> : vector<8x128xf32>
    %96 = tpu.matmul %4, %95, %cst_41 {dimension_numbers = #tpu.dot_dimension_numbers<[1], [0], [0], [1], [0, 0, 1, 1], [], []>} : vector<8x32xbf16>, vector<32x128xbf16>, vector<8x128xf32> -> vector<8x128xf32>
    %97 = vector.extract_strided_slice %96 {offsets = [0, 0], sizes = [8, 32], strides = [1, 1]} : vector<8x128xf32> to vector<8x32xf32>
    %98 = vector.extract_strided_slice %96 {offsets = [0, 32], sizes = [8, 32], strides = [1, 1]} : vector<8x128xf32> to vector<8x32xf32>
    %c0_42 = arith.constant 0 : index
    %c0_43 = arith.constant 0 : index
    %c0_44 = arith.constant 0 : index
    %99 = vector.load %arg11[%c0_42, %c0_43, %c0_44] : memref<2x32x32xbf16, #tpu.memory_space<vmem>>, vector<1x32x32xbf16>
    %100 = vector.shape_cast %99 : vector<1x32x32xbf16> to vector<32x32xbf16>
    %101 = vector.shape_cast %93 : vector<8x32xf32> to vector<8x4x8xf32>
    %102 = tpu.transpose %101, [1, 0, 2] : vector<8x4x8xf32> -> vector<4x8x8xf32>
    %103 = arith.truncf %102 : vector<4x8x8xf32> to vector<4x8x8xbf16>
    %104 = vector.shape_cast %97 : vector<8x32xf32> to vector<8x4x8xf32>
    %105 = tpu.transpose %104, [1, 0, 2] : vector<8x4x8xf32> -> vector<4x8x8xf32>
    %106 = arith.truncf %105 : vector<4x8x8xf32> to vector<4x8x8xbf16>
    %107 = vector.shape_cast %98 : vector<8x32xf32> to vector<8x4x8xf32>
    %108 = tpu.transpose %107, [1, 0, 2] : vector<8x4x8xf32> -> vector<4x8x8xf32>
    %109 = arith.truncf %108 : vector<4x8x8xf32> to vector<4x8x8xbf16>
    "tpu.trace_start"() <{level = 10 : i32, message = "hqd,hkd->hqk"}> : () -> ()
    %cst_45 = arith.constant dense<0.000000e+00> : vector<4x8x8xf32>
    %110 = tpu.matmul %103, %106, %cst_45 {dimension_numbers = #tpu.dot_dimension_numbers<[2], [2], [1], [1], [0, 0, 0, 1, 1, 1], [0], [0]>} : vector<4x8x8xbf16>, vector<4x8x8xbf16>, vector<4x8x8xf32> -> vector<4x8x8xf32>
    "tpu.trace_stop"() : () -> ()
    %cst_46 = arith.constant dense<0xFF800000> : vector<4x8xf32>
    %111 = vector.multi_reduction <maximumf>, %110, %cst_46 [2] : vector<4x8x8xf32> to vector<4x8xf32>
    %112 = vector.shape_cast %111 : vector<4x8xf32> to vector<4x8x1xf32>
    %113 = vector.broadcast %112 : vector<4x8x1xf32> to vector<4x8x8xf32>
    %114 = arith.subf %110, %113 : vector<4x8x8xf32>
    %115 = math.exp %114 : vector<4x8x8xf32>
    %cst_47 = arith.constant dense<0.000000e+00> : vector<4x8xf32>
    %116 = vector.multi_reduction <add>, %115, %cst_47 [2] : vector<4x8x8xf32> to vector<4x8xf32>
    %117 = vector.shape_cast %116 : vector<4x8xf32> to vector<4x8x1xf32>
    %118 = tpu.reciprocal %117 {approx = true} : vector<4x8x1xf32> -> vector<4x8x1xf32>
    %119 = vector.broadcast %118 : vector<4x8x1xf32> to vector<4x8x8xf32>
    %120 = arith.mulf %115, %119 : vector<4x8x8xf32>
    %121 = arith.truncf %120 : vector<4x8x8xf32> to vector<4x8x8xbf16>
    "tpu.trace_start"() <{level = 10 : i32, message = "hqk,hkd->hqd"}> : () -> ()
    %cst_48 = arith.constant dense<0.000000e+00> : vector<4x8x8xf32>
    %122 = tpu.matmul %121, %109, %cst_48 {dimension_numbers = #tpu.dot_dimension_numbers<[2], [1], [1], [2], [0, 0, 0, 1, 1, 2], [0], [0]>} : vector<4x8x8xbf16>, vector<4x8x8xbf16>, vector<4x8x8xf32> -> vector<4x8x8xf32>
    "tpu.trace_stop"() : () -> ()
    %123 = tpu.transpose %122, [1, 0, 2] : vector<4x8x8xf32> -> vector<8x4x8xf32>
    %124 = vector.shape_cast %123 : vector<8x4x8xf32> to vector<8x32xf32>
    %125 = arith.truncf %124 : vector<8x32xf32> to vector<8x32xbf16>
    %cst_49 = arith.constant dense<0.000000e+00> : vector<8x32xf32>
    %126 = tpu.matmul %125, %100, %cst_49 {dimension_numbers = #tpu.dot_dimension_numbers<[1], [0], [0], [1], [0, 0, 1, 1], [], []>} : vector<8x32xbf16>, vector<32x32xbf16>, vector<8x32xf32> -> vector<8x32xf32>
    %127 = arith.addf %76, %126 : vector<8x32xf32>
    %c2 = arith.constant 2 : index
    %c0_50 = arith.constant 0 : index
    %128 = vector.load %arg6[%c2, %c0_50] : memref<6x32xf32, #tpu.memory_space<vmem>>, vector<1x32xf32>
    %129 = arith.mulf %127, %127 : vector<8x32xf32>
    %cst_51 = arith.constant dense<0.000000e+00> : vector<8xf32>
    %130 = vector.multi_reduction <add>, %129, %cst_51 [1] : vector<8x32xf32> to vector<8xf32>
    %131 = vector.shape_cast %130 : vector<8xf32> to vector<8x1xf32>
    %cst_52 = arith.constant 3.200000e+01 : f32
    %132 = vector.broadcast %cst_52 : f32 to vector<8x1xf32>
    %133 = arith.divf %131, %132 : vector<8x1xf32>
    %cst_53 = arith.constant 9.99999997E-7 : f32
    %134 = vector.broadcast %cst_53 : f32 to vector<8x1xf32>
    %135 = arith.addf %133, %134 : vector<8x1xf32>
    %136 = math.rsqrt %135 : vector<8x1xf32>
    %137 = vector.broadcast %136 : vector<8x1xf32> to vector<8x32xf32>
    %138 = arith.mulf %127, %137 : vector<8x32xf32>
    %139 = vector.broadcast %128 : vector<1x32xf32> to vector<8x32xf32>
    %140 = arith.mulf %138, %139 : vector<8x32xf32>
    %141 = arith.truncf %140 : vector<8x32xf32> to vector<8x32xbf16>
    %c0_54 = arith.constant 0 : index
    %c0_55 = arith.constant 0 : index
    %c0_56 = arith.constant 0 : index
    %142 = vector.load %arg12[%c0_54, %c0_55, %c0_56] : memref<2x32x128xbf16, #tpu.memory_space<vmem>>, vector<1x32x128xbf16>
    %143 = vector.shape_cast %142 : vector<1x32x128xbf16> to vector<32x128xbf16>
    %cst_57 = arith.constant dense<0.000000e+00> : vector<8x128xf32>
    %144 = tpu.matmul %141, %143, %cst_57 {dimension_numbers = #tpu.dot_dimension_numbers<[1], [0], [0], [1], [0, 0, 1, 1], [], []>} : vector<8x32xbf16>, vector<32x128xbf16>, vector<8x128xf32> -> vector<8x128xf32>
    %145 = arith.negf %144 : vector<8x128xf32>
    %146 = math.exp %145 : vector<8x128xf32>
    %cst_58 = arith.constant 1.000000e+00 : f32
    %147 = vector.broadcast %cst_58 : f32 to vector<8x128xf32>
    %148 = arith.addf %147, %146 : vector<8x128xf32>
    %149 = arith.divf %147, %148 : vector<8x128xf32>
    %150 = arith.mulf %144, %149 : vector<8x128xf32>
    %151 = arith.truncf %150 : vector<8x128xf32> to vector<8x128xbf16>
    %c0_59 = arith.constant 0 : index
    %c0_60 = arith.constant 0 : index
    %c0_61 = arith.constant 0 : index
    %152 = vector.load %arg13[%c0_59, %c0_60, %c0_61] : memref<2x128x32xbf16, #tpu.memory_space<vmem>>, vector<1x128x32xbf16>
    %153 = vector.shape_cast %152 : vector<1x128x32xbf16> to vector<128x32xbf16>
    %cst_62 = arith.constant dense<0.000000e+00> : vector<8x32xf32>
    %154 = tpu.matmul %151, %153, %cst_62 {dimension_numbers = #tpu.dot_dimension_numbers<[1], [0], [0], [1], [0, 0, 1, 1], [], []>} : vector<8x128xbf16>, vector<128x32xbf16>, vector<8x32xf32> -> vector<8x32xf32>
    %155 = arith.addf %127, %154 : vector<8x32xf32>
    %c3 = arith.constant 3 : index
    %c0_63 = arith.constant 0 : index
    %156 = vector.load %arg6[%c3, %c0_63] : memref<6x32xf32, #tpu.memory_space<vmem>>, vector<1x32xf32>
    %157 = arith.mulf %155, %155 : vector<8x32xf32>
    %cst_64 = arith.constant dense<0.000000e+00> : vector<8xf32>
    %158 = vector.multi_reduction <add>, %157, %cst_64 [1] : vector<8x32xf32> to vector<8xf32>
    %159 = vector.shape_cast %158 : vector<8xf32> to vector<8x1xf32>
    %cst_65 = arith.constant 3.200000e+01 : f32
    %160 = vector.broadcast %cst_65 : f32 to vector<8x1xf32>
    %161 = arith.divf %159, %160 : vector<8x1xf32>
    %cst_66 = arith.constant 9.99999997E-7 : f32
    %162 = vector.broadcast %cst_66 : f32 to vector<8x1xf32>
    %163 = arith.addf %161, %162 : vector<8x1xf32>
    %164 = math.rsqrt %163 : vector<8x1xf32>
    %165 = vector.broadcast %164 : vector<8x1xf32> to vector<8x32xf32>
    %166 = arith.mulf %155, %165 : vector<8x32xf32>
    %167 = vector.broadcast %156 : vector<1x32xf32> to vector<8x32xf32>
    %168 = arith.mulf %166, %167 : vector<8x32xf32>
    %169 = arith.truncf %168 : vector<8x32xf32> to vector<8x32xbf16>
    %c1_67 = arith.constant 1 : index
    %c0_68 = arith.constant 0 : index
    %c0_69 = arith.constant 0 : index
    %170 = vector.load %arg7[%c1_67, %c0_68, %c0_69] : memref<2x32x128xbf16, #tpu.memory_space<vmem>>, vector<1x32x128xbf16>
    %171 = vector.shape_cast %170 : vector<1x32x128xbf16> to vector<32x128xbf16>
    %cst_70 = arith.constant dense<0.000000e+00> : vector<8x128xf32>
    %172 = tpu.matmul %169, %171, %cst_70 {dimension_numbers = #tpu.dot_dimension_numbers<[1], [0], [0], [1], [0, 0, 1, 1], [], []>} : vector<8x32xbf16>, vector<32x128xbf16>, vector<8x128xf32> -> vector<8x128xf32>
    %173 = vector.extract_strided_slice %172 {offsets = [0, 0], sizes = [8, 32], strides = [1, 1]} : vector<8x128xf32> to vector<8x32xf32>
    %174 = arith.mulf %173, %5 : vector<8x32xf32>
    %cst_71 = arith.constant dense<0.000000e+00> : vector<8x32xf32>
    %175 = tpu.matmul %173, %7, %cst_71 {dimension_numbers = #tpu.dot_dimension_numbers<[1], [0], [0], [1], [0, 0, 1, 1], [], []>} : vector<8x32xf32>, vector<32x32xf32>, vector<8x32xf32> -> vector<8x32xf32>
    %176 = arith.mulf %175, %6 : vector<8x32xf32>
    %177 = arith.addf %174, %176 : vector<8x32xf32>
    %178 = vector.extract_strided_slice %172 {offsets = [0, 32], sizes = [8, 32], strides = [1, 1]} : vector<8x128xf32> to vector<8x32xf32>
    %179 = arith.mulf %178, %5 : vector<8x32xf32>
    %cst_72 = arith.constant dense<0.000000e+00> : vector<8x32xf32>
    %180 = tpu.matmul %178, %7, %cst_72 {dimension_numbers = #tpu.dot_dimension_numbers<[1], [0], [0], [1], [0, 0, 1, 1], [], []>} : vector<8x32xf32>, vector<32x32xf32>, vector<8x32xf32> -> vector<8x32xf32>
    %181 = arith.mulf %180, %6 : vector<8x32xf32>
    %182 = arith.addf %179, %181 : vector<8x32xf32>
    %183 = vector.extract_strided_slice %172 {offsets = [0, 64], sizes = [8, 32], strides = [1, 1]} : vector<8x128xf32> to vector<8x32xf32>
    %c1_73 = arith.constant 1 : index
    %c0_74 = arith.constant 0 : index
    %c0_75 = arith.constant 0 : index
    %184 = vector.load %arg8[%c1_73, %c0_74, %c0_75] : memref<2x32x32xbf16, #tpu.memory_space<vmem>>, vector<1x32x32xbf16>
    %185 = vector.shape_cast %184 : vector<1x32x32xbf16> to vector<32x32xbf16>
    %186 = vector.shape_cast %177 : vector<8x32xf32> to vector<8x4x8xf32>
    %187 = tpu.transpose %186, [1, 0, 2] : vector<8x4x8xf32> -> vector<4x8x8xf32>
    %188 = arith.truncf %187 : vector<4x8x8xf32> to vector<4x8x8xbf16>
    %189 = vector.shape_cast %182 : vector<8x32xf32> to vector<8x4x8xf32>
    %190 = tpu.transpose %189, [1, 0, 2] : vector<8x4x8xf32> -> vector<4x8x8xf32>
    %191 = arith.truncf %190 : vector<4x8x8xf32> to vector<4x8x8xbf16>
    %192 = vector.shape_cast %183 : vector<8x32xf32> to vector<8x4x8xf32>
    %193 = tpu.transpose %192, [1, 0, 2] : vector<8x4x8xf32> -> vector<4x8x8xf32>
    %194 = arith.truncf %193 : vector<4x8x8xf32> to vector<4x8x8xbf16>
    "tpu.trace_start"() <{level = 10 : i32, message = "hqd,hkd->hqk"}> : () -> ()
    %cst_76 = arith.constant dense<0.000000e+00> : vector<4x8x8xf32>
    %195 = tpu.matmul %188, %191, %cst_76 {dimension_numbers = #tpu.dot_dimension_numbers<[2], [2], [1], [1], [0, 0, 0, 1, 1, 1], [0], [0]>} : vector<4x8x8xbf16>, vector<4x8x8xbf16>, vector<4x8x8xf32> -> vector<4x8x8xf32>
    %cst_77 = arith.constant -1.000000e+30 : f32
    "tpu.trace_stop"() : () -> ()
    %196 = vector.broadcast %cst_77 : f32 to vector<4x8x8xf32>
    %197 = arith.select %17, %195, %196 : vector<4x8x8xi1>, vector<4x8x8xf32>
    %cst_78 = arith.constant dense<0xFF800000> : vector<4x8xf32>
    %198 = vector.multi_reduction <maximumf>, %197, %cst_78 [2] : vector<4x8x8xf32> to vector<4x8xf32>
    %199 = vector.shape_cast %198 : vector<4x8xf32> to vector<4x8x1xf32>
    %200 = vector.broadcast %199 : vector<4x8x1xf32> to vector<4x8x8xf32>
    %201 = arith.subf %197, %200 : vector<4x8x8xf32>
    %202 = math.exp %201 : vector<4x8x8xf32>
    %cst_79 = arith.constant dense<0.000000e+00> : vector<4x8xf32>
    %203 = vector.multi_reduction <add>, %202, %cst_79 [2] : vector<4x8x8xf32> to vector<4x8xf32>
    %204 = vector.shape_cast %203 : vector<4x8xf32> to vector<4x8x1xf32>
    %205 = tpu.reciprocal %204 {approx = true} : vector<4x8x1xf32> -> vector<4x8x1xf32>
    %206 = vector.broadcast %205 : vector<4x8x1xf32> to vector<4x8x8xf32>
    %207 = arith.mulf %202, %206 : vector<4x8x8xf32>
    %208 = arith.truncf %207 : vector<4x8x8xf32> to vector<4x8x8xbf16>
    "tpu.trace_start"() <{level = 10 : i32, message = "hqk,hkd->hqd"}> : () -> ()
    %cst_80 = arith.constant dense<0.000000e+00> : vector<4x8x8xf32>
    %209 = tpu.matmul %208, %194, %cst_80 {dimension_numbers = #tpu.dot_dimension_numbers<[2], [1], [1], [2], [0, 0, 0, 1, 1, 2], [0], [0]>} : vector<4x8x8xbf16>, vector<4x8x8xbf16>, vector<4x8x8xf32> -> vector<4x8x8xf32>
    "tpu.trace_stop"() : () -> ()
    %210 = tpu.transpose %209, [1, 0, 2] : vector<4x8x8xf32> -> vector<8x4x8xf32>
    %211 = vector.shape_cast %210 : vector<8x4x8xf32> to vector<8x32xf32>
    %212 = arith.truncf %211 : vector<8x32xf32> to vector<8x32xbf16>
    %cst_81 = arith.constant dense<0.000000e+00> : vector<8x32xf32>
    %213 = tpu.matmul %212, %185, %cst_81 {dimension_numbers = #tpu.dot_dimension_numbers<[1], [0], [0], [1], [0, 0, 1, 1], [], []>} : vector<8x32xbf16>, vector<32x32xbf16>, vector<8x32xf32> -> vector<8x32xf32>
    %214 = arith.addf %155, %213 : vector<8x32xf32>
    %c4 = arith.constant 4 : index
    %c0_82 = arith.constant 0 : index
    %215 = vector.load %arg6[%c4, %c0_82] : memref<6x32xf32, #tpu.memory_space<vmem>>, vector<1x32xf32>
    %216 = arith.mulf %214, %214 : vector<8x32xf32>
    %cst_83 = arith.constant dense<0.000000e+00> : vector<8xf32>
    %217 = vector.multi_reduction <add>, %216, %cst_83 [1] : vector<8x32xf32> to vector<8xf32>
    %218 = vector.shape_cast %217 : vector<8xf32> to vector<8x1xf32>
    %cst_84 = arith.constant 3.200000e+01 : f32
    %219 = vector.broadcast %cst_84 : f32 to vector<8x1xf32>
    %220 = arith.divf %218, %219 : vector<8x1xf32>
    %cst_85 = arith.constant 9.99999997E-7 : f32
    %221 = vector.broadcast %cst_85 : f32 to vector<8x1xf32>
    %222 = arith.addf %220, %221 : vector<8x1xf32>
    %223 = math.rsqrt %222 : vector<8x1xf32>
    %224 = vector.broadcast %223 : vector<8x1xf32> to vector<8x32xf32>
    %225 = arith.mulf %214, %224 : vector<8x32xf32>
    %226 = vector.broadcast %215 : vector<1x32xf32> to vector<8x32xf32>
    %227 = arith.mulf %225, %226 : vector<8x32xf32>
    %228 = arith.truncf %227 : vector<8x32xf32> to vector<8x32xbf16>
    %c1_86 = arith.constant 1 : index
    %c0_87 = arith.constant 0 : index
    %c0_88 = arith.constant 0 : index
    %229 = vector.load %arg9[%c1_86, %c0_87, %c0_88] : memref<2x32x32xbf16, #tpu.memory_space<vmem>>, vector<1x32x32xbf16>
    %230 = vector.shape_cast %229 : vector<1x32x32xbf16> to vector<32x32xbf16>
    %cst_89 = arith.constant dense<0.000000e+00> : vector<8x32xf32>
    %231 = tpu.matmul %228, %230, %cst_89 {dimension_numbers = #tpu.dot_dimension_numbers<[1], [0], [0], [1], [0, 0, 1, 1], [], []>} : vector<8x32xbf16>, vector<32x32xbf16>, vector<8x32xf32> -> vector<8x32xf32>
    %c1_90 = arith.constant 1 : index
    %c0_91 = arith.constant 0 : index
    %c0_92 = arith.constant 0 : index
    %232 = vector.load %arg10[%c1_90, %c0_91, %c0_92] : memref<2x32x128xbf16, #tpu.memory_space<vmem>>, vector<1x32x128xbf16>
    %233 = vector.shape_cast %232 : vector<1x32x128xbf16> to vector<32x128xbf16>
    %cst_93 = arith.constant dense<0.000000e+00> : vector<8x128xf32>
    %234 = tpu.matmul %4, %233, %cst_93 {dimension_numbers = #tpu.dot_dimension_numbers<[1], [0], [0], [1], [0, 0, 1, 1], [], []>} : vector<8x32xbf16>, vector<32x128xbf16>, vector<8x128xf32> -> vector<8x128xf32>
    %235 = vector.extract_strided_slice %234 {offsets = [0, 0], sizes = [8, 32], strides = [1, 1]} : vector<8x128xf32> to vector<8x32xf32>
    %236 = vector.extract_strided_slice %234 {offsets = [0, 32], sizes = [8, 32], strides = [1, 1]} : vector<8x128xf32> to vector<8x32xf32>
    %c1_94 = arith.constant 1 : index
    %c0_95 = arith.constant 0 : index
    %c0_96 = arith.constant 0 : index
    %237 = vector.load %arg11[%c1_94, %c0_95, %c0_96] : memref<2x32x32xbf16, #tpu.memory_space<vmem>>, vector<1x32x32xbf16>
    %238 = vector.shape_cast %237 : vector<1x32x32xbf16> to vector<32x32xbf16>
    %239 = vector.shape_cast %231 : vector<8x32xf32> to vector<8x4x8xf32>
    %240 = tpu.transpose %239, [1, 0, 2] : vector<8x4x8xf32> -> vector<4x8x8xf32>
    %241 = arith.truncf %240 : vector<4x8x8xf32> to vector<4x8x8xbf16>
    %242 = vector.shape_cast %235 : vector<8x32xf32> to vector<8x4x8xf32>
    %243 = tpu.transpose %242, [1, 0, 2] : vector<8x4x8xf32> -> vector<4x8x8xf32>
    %244 = arith.truncf %243 : vector<4x8x8xf32> to vector<4x8x8xbf16>
    %245 = vector.shape_cast %236 : vector<8x32xf32> to vector<8x4x8xf32>
    %246 = tpu.transpose %245, [1, 0, 2] : vector<8x4x8xf32> -> vector<4x8x8xf32>
    %247 = arith.truncf %246 : vector<4x8x8xf32> to vector<4x8x8xbf16>
    "tpu.trace_start"() <{level = 10 : i32, message = "hqd,hkd->hqk"}> : () -> ()
    %cst_97 = arith.constant dense<0.000000e+00> : vector<4x8x8xf32>
    %248 = tpu.matmul %241, %244, %cst_97 {dimension_numbers = #tpu.dot_dimension_numbers<[2], [2], [1], [1], [0, 0, 0, 1, 1, 1], [0], [0]>} : vector<4x8x8xbf16>, vector<4x8x8xbf16>, vector<4x8x8xf32> -> vector<4x8x8xf32>
    "tpu.trace_stop"() : () -> ()
    %cst_98 = arith.constant dense<0xFF800000> : vector<4x8xf32>
    %249 = vector.multi_reduction <maximumf>, %248, %cst_98 [2] : vector<4x8x8xf32> to vector<4x8xf32>
    %250 = vector.shape_cast %249 : vector<4x8xf32> to vector<4x8x1xf32>
    %251 = vector.broadcast %250 : vector<4x8x1xf32> to vector<4x8x8xf32>
    %252 = arith.subf %248, %251 : vector<4x8x8xf32>
    %253 = math.exp %252 : vector<4x8x8xf32>
    %cst_99 = arith.constant dense<0.000000e+00> : vector<4x8xf32>
    %254 = vector.multi_reduction <add>, %253, %cst_99 [2] : vector<4x8x8xf32> to vector<4x8xf32>
    %255 = vector.shape_cast %254 : vector<4x8xf32> to vector<4x8x1xf32>
    %256 = tpu.reciprocal %255 {approx = true} : vector<4x8x1xf32> -> vector<4x8x1xf32>
    %257 = vector.broadcast %256 : vector<4x8x1xf32> to vector<4x8x8xf32>
    %258 = arith.mulf %253, %257 : vector<4x8x8xf32>
    %259 = arith.truncf %258 : vector<4x8x8xf32> to vector<4x8x8xbf16>
    "tpu.trace_start"() <{level = 10 : i32, message = "hqk,hkd->hqd"}> : () -> ()
    %cst_100 = arith.constant dense<0.000000e+00> : vector<4x8x8xf32>
    %260 = tpu.matmul %259, %247, %cst_100 {dimension_numbers = #tpu.dot_dimension_numbers<[2], [1], [1], [2], [0, 0, 0, 1, 1, 2], [0], [0]>} : vector<4x8x8xbf16>, vector<4x8x8xbf16>, vector<4x8x8xf32> -> vector<4x8x8xf32>
    "tpu.trace_stop"() : () -> ()
    %261 = tpu.transpose %260, [1, 0, 2] : vector<4x8x8xf32> -> vector<8x4x8xf32>
    %262 = vector.shape_cast %261 : vector<8x4x8xf32> to vector<8x32xf32>
    %263 = arith.truncf %262 : vector<8x32xf32> to vector<8x32xbf16>
    %cst_101 = arith.constant dense<0.000000e+00> : vector<8x32xf32>
    %264 = tpu.matmul %263, %238, %cst_101 {dimension_numbers = #tpu.dot_dimension_numbers<[1], [0], [0], [1], [0, 0, 1, 1], [], []>} : vector<8x32xbf16>, vector<32x32xbf16>, vector<8x32xf32> -> vector<8x32xf32>
    %265 = arith.addf %214, %264 : vector<8x32xf32>
    %c5 = arith.constant 5 : index
    %c0_102 = arith.constant 0 : index
    %266 = vector.load %arg6[%c5, %c0_102] : memref<6x32xf32, #tpu.memory_space<vmem>>, vector<1x32xf32>
    %267 = arith.mulf %265, %265 : vector<8x32xf32>
    %cst_103 = arith.constant dense<0.000000e+00> : vector<8xf32>
    %268 = vector.multi_reduction <add>, %267, %cst_103 [1] : vector<8x32xf32> to vector<8xf32>
    %269 = vector.shape_cast %268 : vector<8xf32> to vector<8x1xf32>
    %cst_104 = arith.constant 3.200000e+01 : f32
    %270 = vector.broadcast %cst_104 : f32 to vector<8x1xf32>
    %271 = arith.divf %269, %270 : vector<8x1xf32>
    %cst_105 = arith.constant 9.99999997E-7 : f32
    %272 = vector.broadcast %cst_105 : f32 to vector<8x1xf32>
    %273 = arith.addf %271, %272 : vector<8x1xf32>
    %274 = math.rsqrt %273 : vector<8x1xf32>
    %275 = vector.broadcast %274 : vector<8x1xf32> to vector<8x32xf32>
    %276 = arith.mulf %265, %275 : vector<8x32xf32>
    %277 = vector.broadcast %266 : vector<1x32xf32> to vector<8x32xf32>
    %278 = arith.mulf %276, %277 : vector<8x32xf32>
    %279 = arith.truncf %278 : vector<8x32xf32> to vector<8x32xbf16>
    %c1_106 = arith.constant 1 : index
    %c0_107 = arith.constant 0 : index
    %c0_108 = arith.constant 0 : index
    %280 = vector.load %arg12[%c1_106, %c0_107, %c0_108] : memref<2x32x128xbf16, #tpu.memory_space<vmem>>, vector<1x32x128xbf16>
    %281 = vector.shape_cast %280 : vector<1x32x128xbf16> to vector<32x128xbf16>
    %cst_109 = arith.constant dense<0.000000e+00> : vector<8x128xf32>
    %282 = tpu.matmul %279, %281, %cst_109 {dimension_numbers = #tpu.dot_dimension_numbers<[1], [0], [0], [1], [0, 0, 1, 1], [], []>} : vector<8x32xbf16>, vector<32x128xbf16>, vector<8x128xf32> -> vector<8x128xf32>
    %283 = arith.negf %282 : vector<8x128xf32>
    %284 = math.exp %283 : vector<8x128xf32>
    %cst_110 = arith.constant 1.000000e+00 : f32
    %285 = vector.broadcast %cst_110 : f32 to vector<8x128xf32>
    %286 = arith.addf %285, %284 : vector<8x128xf32>
    %287 = arith.divf %285, %286 : vector<8x128xf32>
    %288 = arith.mulf %282, %287 : vector<8x128xf32>
    %289 = arith.truncf %288 : vector<8x128xf32> to vector<8x128xbf16>
    %c1_111 = arith.constant 1 : index
    %c0_112 = arith.constant 0 : index
    %c0_113 = arith.constant 0 : index
    %290 = vector.load %arg13[%c1_111, %c0_112, %c0_113] : memref<2x128x32xbf16, #tpu.memory_space<vmem>>, vector<1x128x32xbf16>
    %291 = vector.shape_cast %290 : vector<1x128x32xbf16> to vector<128x32xbf16>
    %cst_114 = arith.constant dense<0.000000e+00> : vector<8x32xf32>
    %292 = tpu.matmul %289, %291, %cst_114 {dimension_numbers = #tpu.dot_dimension_numbers<[1], [0], [0], [1], [0, 0, 1, 1], [], []>} : vector<8x128xbf16>, vector<128x32xbf16>, vector<8x32xf32> -> vector<8x32xf32>
    %293 = arith.addf %265, %292 : vector<8x32xf32>
    %c0_115 = arith.constant 0 : index
    %c0_116 = arith.constant 0 : index
    %294 = vector.load %arg14[%c0_115, %c0_116] : memref<1x32xf32, #tpu.memory_space<vmem>>, vector<1x32xf32>
    %295 = arith.mulf %293, %293 : vector<8x32xf32>
    %cst_117 = arith.constant dense<0.000000e+00> : vector<8xf32>
    %296 = vector.multi_reduction <add>, %295, %cst_117 [1] : vector<8x32xf32> to vector<8xf32>
    %297 = vector.shape_cast %296 : vector<8xf32> to vector<8x1xf32>
    %cst_118 = arith.constant 3.200000e+01 : f32
    %298 = vector.broadcast %cst_118 : f32 to vector<8x1xf32>
    %299 = arith.divf %297, %298 : vector<8x1xf32>
    %cst_119 = arith.constant 9.99999997E-7 : f32
    %300 = vector.broadcast %cst_119 : f32 to vector<8x1xf32>
    %301 = arith.addf %299, %300 : vector<8x1xf32>
    %302 = math.rsqrt %301 : vector<8x1xf32>
    %303 = vector.broadcast %302 : vector<8x1xf32> to vector<8x32xf32>
    %304 = arith.mulf %293, %303 : vector<8x32xf32>
    %305 = vector.broadcast %294 : vector<1x32xf32> to vector<8x32xf32>
    %306 = arith.mulf %304, %305 : vector<8x32xf32>
    %c0_120 = arith.constant 0 : index
    %c0_121 = arith.constant 0 : index
    %c0_122 = arith.constant 0 : index
    %307 = vector.load %arg15[%c0_120, %c0_121, %c0_122] : memref<1x8x32xf32, #tpu.memory_space<vmem>>, vector<1x8x32xf32>
    %308 = vector.shape_cast %307 : vector<1x8x32xf32> to vector<8x32xf32>
    %309 = vector.shape_cast %306 : vector<8x32xf32> to vector<1x8x32xf32>
    tpu.vector_store %arg15[%c0_120, %c0_121, %c0_122], %309 {strides = array<i32>} : memref<1x8x32xf32, #tpu.memory_space<vmem>>, vector<1x8x32xf32>,
    return
  }
  func.func @transform_0(%arg0: i32) -> (i32, i32, i32) {
    %c0_i32 = arith.constant 0 : i32
    %c0_i32_0 = arith.constant 0 : i32
    %c0_i32_1 = arith.constant 0 : i32
    return %arg0, %c0_i32, %c0_i32_0 : i32, i32, i32
  }
  func.func @transform_1(%arg0: i32) -> (i32, i32, i32) {
    %c0_i32 = arith.constant 0 : i32
    %c0_i32_0 = arith.constant 0 : i32
    %c0_i32_1 = arith.constant 0 : i32
    return %arg0, %c0_i32, %c0_i32_0 : i32, i32, i32
  }
  func.func @transform_2(%arg0: i32) -> (i32, i32) {
    %c0_i32 = arith.constant 0 : i32
    %c0_i32_0 = arith.constant 0 : i32
    %c0_i32_1 = arith.constant 0 : i32
    return %c0_i32, %c0_i32_0 : i32, i32
  }
  func.func @transform_3(%arg0: i32) -> (i32, i32) {
    %c0_i32 = arith.constant 0 : i32
    %c0_i32_0 = arith.constant 0 : i32
    %c0_i32_1 = arith.constant 0 : i32
    return %c0_i32, %c0_i32_0 : i32, i32
  }
  func.func @transform_4(%arg0: i32) -> (i32, i32) {
    %c0_i32 = arith.constant 0 : i32
    %c0_i32_0 = arith.constant 0 : i32
    %c0_i32_1 = arith.constant 0 : i32
    return %c0_i32, %c0_i32_0 : i32, i32
  }
  func.func @transform_5(%arg0: i32) -> (i32, i32) {
    %c0_i32 = arith.constant 0 : i32
    %c0_i32_0 = arith.constant 0 : i32
    %c0_i32_1 = arith.constant 0 : i32
    return %c0_i32, %c0_i32_0 : i32, i32
  }
  func.func @transform_6(%arg0: i32) -> (i32, i32, i32) {
    %c0_i32 = arith.constant 0 : i32
    %c0_i32_0 = arith.constant 0 : i32
    %c0_i32_1 = arith.constant 0 : i32
    %c0_i32_2 = arith.constant 0 : i32
    return %c0_i32, %c0_i32_0, %c0_i32_1 : i32, i32, i32
  }
  func.func @transform_7(%arg0: i32) -> (i32, i32, i32) {
    %c0_i32 = arith.constant 0 : i32
    %c0_i32_0 = arith.constant 0 : i32
    %c0_i32_1 = arith.constant 0 : i32
    %c0_i32_2 = arith.constant 0 : i32
    return %c0_i32, %c0_i32_0, %c0_i32_1 : i32, i32, i32
  }
  func.func @transform_8(%arg0: i32) -> (i32, i32, i32) {
    %c0_i32 = arith.constant 0 : i32
    %c0_i32_0 = arith.constant 0 : i32
    %c0_i32_1 = arith.constant 0 : i32
    %c0_i32_2 = arith.constant 0 : i32
    return %c0_i32, %c0_i32_0, %c0_i32_1 : i32, i32, i32
  }
  func.func @transform_9(%arg0: i32) -> (i32, i32, i32) {
    %c0_i32 = arith.constant 0 : i32
    %c0_i32_0 = arith.constant 0 : i32
    %c0_i32_1 = arith.constant 0 : i32
    %c0_i32_2 = arith.constant 0 : i32
    return %c0_i32, %c0_i32_0, %c0_i32_1 : i32, i32, i32
  }
  func.func @transform_10(%arg0: i32) -> (i32, i32, i32) {
    %c0_i32 = arith.constant 0 : i32
    %c0_i32_0 = arith.constant 0 : i32
    %c0_i32_1 = arith.constant 0 : i32
    %c0_i32_2 = arith.constant 0 : i32
    return %c0_i32, %c0_i32_0, %c0_i32_1 : i32, i32, i32
  }
  func.func @transform_11(%arg0: i32) -> (i32, i32, i32) {
    %c0_i32 = arith.constant 0 : i32
    %c0_i32_0 = arith.constant 0 : i32
    %c0_i32_1 = arith.constant 0 : i32
    %c0_i32_2 = arith.constant 0 : i32
    return %c0_i32, %c0_i32_0, %c0_i32_1 : i32, i32, i32
  }
  func.func @transform_12(%arg0: i32) -> (i32, i32, i32) {
    %c0_i32 = arith.constant 0 : i32
    %c0_i32_0 = arith.constant 0 : i32
    %c0_i32_1 = arith.constant 0 : i32
    %c0_i32_2 = arith.constant 0 : i32
    return %c0_i32, %c0_i32_0, %c0_i32_1 : i32, i32, i32
  }
  func.func @transform_13(%arg0: i32) -> (i32, i32) {
    %c0_i32 = arith.constant 0 : i32
    %c0_i32_0 = arith.constant 0 : i32
    %c0_i32_1 = arith.constant 0 : i32
    return %c0_i32, %c0_i32_0 : i32, i32
  }
  func.func @transform_14(%arg0: i32) -> (i32, i32, i32) {
    %c0_i32 = arith.constant 0 : i32
    %c0_i32_0 = arith.constant 0 : i32
    %c0_i32_1 = arith.constant 0 : i32
    return %arg0, %c0_i32, %c0_i32_0 : i32, i32, i32
  }
}

</mosaic_0001>

<bundles_post_ra>
// kernel: tile.19
= control target key start
LH: loop header
LB: loop body
LE: loop exit
PB: predicated region body
PF: predicated region fallthrough
CT: control target
= control target key end

     0   :  { %vm43_vm0 = vcmask 1047556   ;;  %vm45_vm1 = vcmask 64512   ;;  %s94_s22 = smov 8   ;;  %s95_s25 = smov 16   ;;  %vm55_vm2 = vcmask 261312   ;;  %vm65_vm3 = vcmask 195712   ;;  %s147_s0 = inlined_call_operand.vmem [shape: f32[8,4,8], index: 0, kind: input, shape index: {}]   ;;  %s148_s1 = inlined_call_operand.vmem [shape: f32[8,32], index: 1, kind: output, shape index: {}]  }
   0x1   :  { %v83_v0 = vld [vmem:[%s147_s0 + $0x1c] sm:$0xf]  ;;  %v84_v1 = vld [vmem:[%s147_s0 + $0x18] sm:$0xf]  ;;  %v85_v2 = vld [vmem:[%s147_s0 + $0x14] sm:$0xf] }
   0x2   :  { %9 = vst [vmem:[#allocation0 + $0x38] sm:$0xf] %v83_v0  ;;  %14 = vst [vmem:[#allocation0 + $0x30] sm:$0xf] %v84_v1  ;;  %v86_v3 = vld [vmem:[%s147_s0 + $0x10] sm:$0xf] }
   0x3   :  { %19 = vst [vmem:[#allocation0 + $0x28] sm:$0xf] %v85_v2  ;;  %v87_v4 = vld [vmem:[%s147_s0 + $0xc] sm:$0xf]  ;;  %v88_v5 = vld [vmem:[%s147_s0 + $0x8] sm:$0xf] }
   0x4   :  { %24 = vst [vmem:[#allocation0 + $0x20] sm:$0xf] %v86_v3  ;;  %29 = vst [vmem:[#allocation0 + $0x18] sm:$0xf] %v87_v4  ;;  %v89_v6 = vld [vmem:[%s147_s0 + $0x4] sm:$0xf] }
   0x5   :  { %34 = vst [vmem:[#allocation0 + $0x10] sm:$0xf] %v88_v5  ;;  %v39_v7 = vld [vmem:[%s147_s0] sm:$0xf]  ;;  %38 = vst [vmem:[#allocation0 + $0x8] sm:$0xf] %v89_v6 }
   0x6   :  { %40 = vst [vmem:[#allocation0] sm:$0xf] %v39_v7  ;;  %s93_s0 = smov 24   ;;  %vm75_vm4 = vcmask 130112  }
   0xb   :  { %v50_v8 = vld [vmem:[#allocation0 + $0x3] ss:$8 sm:$0xf0]   ;;  %v60_v9 = vld [vmem:[#allocation0 + $0x2] ss:$8 sm:$0xf0]  }
   0xc   :  { %v70_v14 = vld [vmem:[#allocation0 + $0x1] ss:$8 sm:$0xf0]   ;;  %v42_v17 = vld [vmem:[#allocation0] ss:$8 sm:$0xf0]  }
   0xd   :  { %v48_v10 = vld [vmem:[#allocation0 + $0x3] ss:$8 sm:$0xf]   ;;  %v58_v11 = vld [vmem:[#allocation0 + $0x2] ss:$8 sm:$0xf]  }
   0xe   :  { %v52_v12 = vsel %vm43_vm0, %v50_v8, %v48_v10  ;;  %v68_v13 = vld [vmem:[#allocation0 + $0x1] ss:$8 sm:$0xf]   ;;  %v41_v16 = vld [vmem:[#allocation0] ss:$8 sm:$0xf]   ;;  %v62_v18 = vsel %vm43_vm0, %v60_v9, %v58_v11 }
   0xf   :  { %53 = vrot.lane.b32.xlu0 %v52_v12, %s93_s0  ;;  %v72_v15 = vsel %vm43_vm0, %v70_v14, %v68_v13  ;;  %v44_v19 = vsel %vm43_vm0, %v42_v17, %v41_v16 }
  0x10   :  { %73 = vrot.lane.b32.xlu1 %v72_v15, %s94_s22  ;;  %46 = vst.msk [vmem:[%s148_s1] sm:$0xff] %vm45_vm1, %v44_v19  }
  0x13   :  { %63 = vrot.lane.b32.xlu0 %v62_v18, %s95_s25 }
  0x81   :  { %v54_v20 = vpop.permute.xlu0 %53  }
  0x82   :  { %56 = vst.msk [vmem:[%s148_s1] sm:$0xff] %vm55_vm2, %v54_v20   ;;  %v74_v21 = vpop.permute.xlu1 %73  }
  0x85   :  { %v64_v22 = vpop.permute.xlu0 %63  }
  0x86   :  { %66 = vst.msk [vmem:[%s148_s1] sm:$0xff] %vm65_vm3, %v64_v22  }
  0x87   :  { %76 = vst.msk [vmem:[%s148_s1] sm:$0xff] %vm75_vm4, %v74_v21  }

// kernel: transformer_decoder.1
= control target key start
LH: loop header
LB: loop body
LE: loop exit
PB: predicated region body
PF: predicated region fallthrough
CT: control target
= control target key end

     0   :  { %s8201_s0 = inlined_call_operand.vmem [shape: f32[2,8,32], index: 0, kind: input, shape index: {}]   ;;  %s8202_s1 = inlined_call_operand.vmem [shape: f32[2,8,32], index: 1, kind: input, shape index: {}]   ;;  %s8203_s2 = inlined_call_operand.vmem [shape: f32[8,32], index: 2, kind: input, shape index: {}]   ;;  %s8204_s3 = inlined_call_operand.vmem [shape: f32[8,32], index: 3, kind: input, shape index: {}]   ;;  %s8205_s4 = inlined_call_operand.vmem [shape: f32[32,32], index: 4, kind: input, shape index: {}]   ;;  %s8206_s5 = inlined_call_operand.vmem [shape: f32[6,32], index: 5, kind: input, shape index: {}]   ;;  %s8207_s6 = inlined_call_operand.vmem [shape: bf16[2,32,128], index: 6, kind: input, shape index: {}]   ;;  %s8208_s7 = inlined_call_operand.vmem [shape: bf16[2,32,32], index: 7, kind: input, shape index: {}]   ;;  %s8209_s8 = inlined_call_operand.vmem [shape: bf16[2,32,32], index: 8, kind: input, shape index: {}]   ;;  %s8210_s9 = inlined_call_operand.vmem [shape: bf16[2,32,128], index: 9, kind: input, shape index: {}]   ;;  %s8211_s10 = inlined_call_operand.vmem [shape: bf16[2,32,32], index: 10, kind: input, shape index: {}]   ;;  %s8212_s11 = inlined_call_operand.vmem [shape: bf16[2,32,128], index: 11, kind: input, shape index: {}]   ;;  %s8213_s12 = inlined_call_operand.vmem [shape: bf16[2,128,32], index: 12, kind: input, shape index: {}]   ;;  %s8214_s13 = inlined_call_operand.vmem [shape: f32[1,32], index: 13, kind: input, shape index: {}]   ;;  %s8215_s14 = inlined_call_operand.hbm [shape: f32[2,8,32], index: 14, kind: output, shape index: {}]  }
   0x1   :  { %8239 = sst [smem:[#allocation10_spill]] %s8201_s0 }
   0x2   :  { %8240 = sst [smem:[#allocation11_spill]] %s8202_s1 }
   0x3   :  { %19 = vsyncpa [#allocation3], 0 }
   0x4   :  { %21 = vsyncpa [#allocation3 + $0x1], 0  ;;  %s7102_s29 = smov 0   ;;  %s7104_s30 = smov 0  }
   0x5   :  { %s7106_s15 = smov 0   ;;  %s7108_s16 = smov 0  }
   0x6 LB: > { %8241 = sst [smem:[#allocation5_spill]] %s6999_s29  ;;  %s7123_s17 = sadd.s32 4294967295, %s7011_s16   ;;  %s7011_s16 = sphi %s7108_s16, %s8264_s16   ;;  %s7007_s15 = sphi %s7106_s15, %s8266_s15   ;;  %s7003_s30 = sphi %s7104_s30, %s8268_s30   ;;  %s6999_s29 = sphi %s7102_s29, %s8267_s29  }
   0x7   : > { %8242 = sst [smem:[#allocation6_spill]] %s7007_s15  ;;  %s6076_s18 = sadd.s32 4294967294, %s7011_s16  }
   0x8   : > { %s7127_s19 = sadd.s32 1, %s7011_s16   ;;  %s338_s20 = sadd.s32 1, %s7007_s15 }
   0x9   : > { %8243 = sst [smem:[#allocation7_spill]] %s7127_s19  ;;  %s335_s21 = ssub.s32 %s7011_s16, %s7127_s19 }
   0xa   : > { %p348_p0 = scmp.ne.s32.totalorder %s7007_s15, %s7003_s30  ;;  %p336_p1 = scmp.eq.s32.totalorder %s335_s21, 0 }
   0xb   : > { %p349_p2 = scmp.eq.s32.totalorder %s7123_s17, 1  ;;  %p354_p3 = scmp.ne.s32.totalorder %s7003_s30, %s6999_s29 }
   0xc   : > { %p355_p4 = scmp.eq.s32.totalorder %s6076_s18, 1  ;;  %p6079_p7 = scmp.ge.s32.totalorder %s7011_s16, 1 }
   0xd   : > { %s7138_s22 = scalar_select %p336_p1, %s7007_s15, %s338_s20  }
   0xe   : > { %p7140_p5 = por %p349_p2, %p348_p0  ;;  %p7144_p6 = por %p355_p4, %p354_p3 }
   0xf   : > { %8244 = sst [smem:[#allocation8_spill]] %s7138_s22  ;;  %p423_p8 = scmp.lt.s32.totalorder %s7011_s16, 3 }
  0x10   : > { %s8246_s24 = scalar_select %p7144_p6, 1, 0 }
  0x11   : > { %p424_p9 = pnand %p6079_p7, %p423_p8 }
  0x12   : > { %8247 = sst [smem:[#allocation9_spill]] %s8246_s24  ;;  %p472_p10 = scmp.lt.s32.totalorder (!%p424_p9), %s7123_s17, 1 }
  0x13   : > { %427 = sbr.rel (%p424_p9) target bundleno = 8847 (0x228f), region = 76  ;;  %s8248_s0 = sld [smem:[#allocation10_spill]] (!%p424_p9) }
  0x14   : > { %s8220_s27 = smov (!%p424_p9), 32   ;;  %s8233_s20 = smov (!%p424_p9), 120  }
  0x15   : > { %s8229_s21 = smov (!%p424_p9), 112   ;;  %s8221_s15 = smov (!%p424_p9), 104  }
  0x16   : > { %s8218_s22 = smov (!%p424_p9), 64   ;;  %s8252_s1 = sld [smem:[#allocation11_spill]] (!%p424_p9) }
  0x17   : > { %s8260_s19 = smov (!%p424_p9), 32   ;;  %s469_s29 = sand.u32 (!%p424_p9), 1, %s7003_s30  }
  0x18   : > { %s7152_s25 = scalar_select %p472_p10, %s7123_s17, 1  ;;  %vm502_vm0 = vcmask 261120   ;;  %v6818_v3 = vld [vmem:[%s8207_s6 + $0x8] sm:$0xff]   ;;  %v6819_v4 = vld [vmem:[%s8207_s6] sm:$0xff]   ;;  %v7013_v5 = vmov 0.0   ;;  %vm7014_vm1 = vmmov 0   ;;  %v490_v40 = vlaneseq }
  0x19   : > { %6394 = vmatprep.subr.bf16.mxu1 %v7013_v5  ;;  %6398 = vmatprep.mubr.msk.bf16.mxu1 %vm7014_vm1, %v7013_v5  ;;  %v7181_v6 = vld [vmem:[%s8203_s2] sm:$0xff]  ;;  %v489_v15 = vld [vmem:[%s8205_s4 + $0x18] sm:$0xff]  ;;  %v488_v16 = vld [vmem:[%s8205_s4 + $0x10] sm:$0xff]  ;;  %v7020_v45 = vmov 1983009808   ;;  %vm1208_vm5 = vcmask 64512  }
  0x1a   : > { %s8217_s26 = sshll.u32 %s7152_s25, 3  ;;  %6395 = vmatpush3.bf16.msra.mxu1 %v6818_v3  ;;  %6430 = vmatprep.subr.bf16.mxu0 %v7013_v5  ;;  %v6083_v11 = vld [vmem:[%s8206_s5] ss:$0 sm:$0xff]  ;;  %v487_v17 = vld [vmem:[%s8205_s4 + $0x8] sm:$0xff]  ;;  %v491_v41 = vshrl.u32 %v490_v40, 7  ;;  %v493_v42 = vand.u32 127, %v490_v40  ;;  %v754_v46 = vunpack.c.l.s4 %v7020_v45 }
  0x1b   : > { %s7160_s18 = scalar_lea.vmem %s8248_s0, %s8217_s26  ;;  %6396 = vmatprep.subr.bf16.mxu1 %v7013_v5  ;;  %6432 = vmatprep.mubr.msk.bf16.mxu0 %vm7014_vm1, %v7013_v5  ;;  %v486_v18 = vld [vmem:[%s8205_s4] sm:$0xff]  ;;  %s8231_s26 = smov 96   ;;  %v7021_v48 = vmov 1934713408   ;;  %vm1448_vm6 = vcmask 1043456   ;;  %vm1779_vm7 = vcmask 130048  }
  0x1c   : > { %v481_v0 = vld [vmem:[%s7160_s18] sm:$0xff]  ;;  %653 = vrot.lane.b32.xlu1 %v7181_v6, %s8220_s27  ;;  %vm494_vm2 = vcmp.le.s32.totalorder %v493_v42, %v491_v41  ;;  %v495_v43 = vsub.s32 %v491_v41, %v493_v42  ;;  %v786_v49 = vunpack.c.l.s4 %v7021_v48  ;;  %v755_v50 = vunpack.c.0.s8 %v754_v46  ;;  %s8251_s28 = sshll.u32 %s7152_s25, 3  ;;  %s8259_s0 = smov 24  }
  0x1d   : > { %v501_v1 = vmul.f32 %v481_v0, %v481_v0  ;;  %v485_v26 = vld [vmem:[%s8204_s3] sm:$0xff]  ;;  %vm1781_vm8 = vcmask 195584  }
  0x1e   : > { %6397 = vmatpush3.bf16.msra.mxu1 %v6819_v4  ;;  %vm496_vm3 = vcmp.lt.s32.totalorder %v495_v43, 4  ;;  %v787_v53 = vunpack.c.0.s8 %v786_v49  ;;  %v7252_v54 = vsub.s32 %v755_v50, %v491_v41 }
  0x1f   : > { %v503_v2 = vsel %vm502_vm0, %v501_v1, 0.0  ;;  %6402 = vmatprep.subr.mxu1 %v7013_v5  ;;  %vm7248_vm4 = vmand %vm494_vm2, %vm496_vm3 }
  0x20   : > { %504 = vadd.xlane.f32.xlu0 %v503_v2  ;;  %v7254_v61 = vsub.s32 %v787_v53, %v491_v41 }
  0x8e   : > { %v7226_v30 = vpop.permute.xlu1 %653 }
  0xa9   : > { %v505_v7 = vpop.xlane.xlu0 %504 }
  0xaa   : > { %v507_v8 = vmul.f32 0.03125, %v505_v7 }
  0xac   : > { %v508_v9 = vadd.f32 1e-06, %v507_v8 }
  0xae   : > { %6858 = vrsqrt.f32 %v508_v9 }
  0xbb   : > { %v6859_v10 = vpop.eup %6858 }
  0xbc   : > { %v510_v12 = vmul.f32 %v6859_v10, %v481_v0 }
  0xbe   : > { %v515_v13 = vmul.f32 %v6083_v11, %v510_v12 }
  0xc0   : > { %v516_v14 = vpack.c.bf16 %v515_v13, %v515_v13 }
  0xc2   : > { %6399 = vmatmul.mubr.msk.bf16.vlgmr.msra.gmra.mxu1 %vm502_vm0, %v516_v14 }
  0xc3   : > { %6403 = vmatpush3.msra.mxu1 %v489_v15  ;;  %6410 = vmatprep.mubr.msk.f32.mxu1 %vm7014_vm1, %v7013_v5 }
  0xc4   : > { %6404 = vmatprep.subr.mxu1 %v7013_v5 }
  0xc5   : > { %6405 = vmatpush3.msra.mxu1 %v488_v16 }
  0xc6   : > { %6406 = vmatprep.subr.mxu1 %v7013_v5 }
  0xc7   : > { %6407 = vmatpush3.msra.mxu1 %v487_v17 }
  0xc8   : > { %6408 = vmatprep.subr.mxu1 %v7013_v5 }
  0xc9   : > { %6409 = vmatpush3.msra.mxu1 %v486_v18 }
  0xca   : > { %6413 = vmatprep.subr.mxu1 %v7013_v5 }
 0x182   : > { %v7207_v19 = vpop.f32.mrf.mxu1 }
 0x183   : > { %657 = vrot.lane.b32.xlu0 %v7207_v19, %s8231_s26  ;;  %6411 = vmatmul.mubr.msk.f32.vlgmr.msra.gmra.mxu1 %vm502_vm0, %v7207_v19  ;;  %v656_v31 = vmul.f32 %v7226_v30, %v7207_v19  ;;  %v576_v37 = vmul.f32 %v7207_v19, %v7181_v6 }
 0x184   : > { %v6400_v20 = vpop.f32.mrf.mxu1  ;;  %6414 = vmatpush3.msra.mxu1 %v489_v15  ;;  %6421 = vmatprep.mubr.msk.f32.mxu1 %vm7014_vm1, %v7013_v5 }
 0x185   : > { %6415 = vmatprep.subr.mxu1 %v7013_v5 }
 0x186   : > { %v573_v21 = vpop.f32.mrf.mxu1  ;;  %6416 = vmatpush3.msra.mxu1 %v488_v16 }
 0x187   : > { %6417 = vmatprep.subr.mxu1 %v7013_v5 }
 0x188   : > { %v6401_v22 = vpop.f32.mrf.mxu1  ;;  %6418 = vmatpush3.msra.mxu1 %v487_v17 }
 0x189   : > { %6419 = vmatprep.subr.mxu1 %v7013_v5 }
 0x18a   : > { %6420 = vmatpush3.msra.mxu1 %v486_v18 }
 0x18b   : > { %6424 = vmatprep.subr.bf16.mxu1 %v7013_v5 }
 0x1f5   : > { %v658_v23 = vpop.permute.xlu0 %657 }
 0x1f6   : > { %6422 = vmatmul.mubr.msk.f32.vlgmr.msra.gmra.mxu1 %vm502_vm0, %v658_v23 }
 0x1f7   : > { %6426 = vmatprep.mubr.msk.bf16.mxu1 %vm7014_vm1, %v7013_v5 }
 0x243   : > { %v646_v24 = vpop.f32.mrf.mxu1 }
 0x244   : > { %v650_v35 = vmul.f32 %v646_v24, %v485_v26 }
 0x245   : > { %v6412_v25 = vpop.f32.mrf.mxu1 }
 0x246   : > { %v651_v38 = vadd.f32 %v650_v35, %v576_v37 }
 0x2b6   : > { %v727_v27 = vpop.f32.mrf.mxu1 }
 0x2b7   : > { %v731_v28 = vmul.f32 %v727_v27, %v485_v26 }
 0x2b8   : > { %v6423_v29 = vpop.f32.mrf.mxu1 }
 0x2b9   : > { %733 = vrot.lane.b32.xlu1 %v731_v28, %s8220_s27  ;;  %s8227_s27 = smov 16  }
 0x32b   : > { %v734_v32 = vpop.permute.xlu1 %733 }
 0x32c   : > { %v736_v33 = vadd.f32 %v734_v32, %v656_v31 }
 0x32e   : > { %892 = vrot.lane.b32.xlu1 %v736_v33, %s8233_s20 }
 0x332   : > { %894 = vrot.lane.b32.xlu1 %v736_v33, %s8229_s21 }
 0x336   : > { %896 = vrot.lane.b32.xlu1 %v736_v33, %s8221_s15 }
 0x33a   : > { %898 = vrot.lane.b32.xlu1 %v736_v33, %s8231_s26 }
 0x3a0   : > { %v893_v34 = vpop.permute.xlu1 %892 }
 0x3a1   : > { %900 = vrot.lane.b32.xlu1 %v893_v34, %s8231_s26 }
 0x3a4   : > { %v895_v36 = vpop.permute.xlu1 %894 }
 0x3a5   : > { %902 = vrot.lane.b32.xlu0 %v895_v36, %s8231_s26 }
 0x3a8   : > { %v897_v39 = vpop.permute.xlu1 %896 }
 0x3a9   : > { %742 = vrot.lane.b32.xlu0 %v651_v38, %s8233_s20  ;;  %904 = vrot.lane.b32.xlu1 %v897_v39, %s8231_s26  ;;  %s5992_s26 = scalar_lea.sflag [#allocation3], %s469_s29 }
 0x3ac   : > { %v899_v47 = vpop.permute.xlu1 %898 }
 0x3ad   : > { %748 = vrot.lane.b32.xlu0 %v651_v38, %s8221_s15  ;;  %745 = vrot.lane.b32.xlu1 %v651_v38, %s8229_s21 }
 0x3b1   : > { %1050 = vrot.lane.b32.xlu0 %v7207_v19, %s8233_s20  ;;  %1052 = vrot.lane.b32.xlu1 %v7207_v19, %s8229_s21  ;;  %s8254_s21 = smov 96  }
 0x3b5   : > { %1054 = vrot.lane.b32.xlu1 %v7207_v19, %s8221_s15  ;;  %s8225_s15 = smov 8  }
 0x413   : > { %v901_v51 = vpop.permute.xlu1 %900 }
 0x417   : > { %v903_v52 = vpop.permute.xlu0 %902 }
 0x418   : > { %v910_v55 = vcombine.low %v899_v47, %v903_v52  ;;  %v911_v56 = vcombine.high %v899_v47, %v903_v52 }
 0x41a   : > { %v918_v62 = vrot.slane %v910_v55, %v7252_v54  ;;  %v925_v63 = vrot.slane %v911_v56, %v7252_v54 }
 0x41b   : > { %v743_v57 = vpop.permute.xlu0 %742  ;;  %v905_v58 = vpop.permute.xlu1 %904 }
 0x41c   : > { %v926_v59 = vcombine.low %v901_v51, %v905_v58  ;;  %v927_v60 = vcombine.high %v901_v51, %v905_v58 }
 0x41e   : > { %v934_v0 = vrot.slane %v926_v59, %v7252_v54  ;;  %v941_v1 = vrot.slane %v927_v60, %v7252_v54 }
 0x41f   : > { %v749_v2 = vpop.permute.xlu0 %748  ;;  %v746_v3 = vpop.permute.xlu1 %745 }
 0x420   : > { %v942_v4 = vcombine.low %v918_v62, %v934_v0  ;;  %v943_v6 = vcombine.high %v918_v62, %v934_v0  ;;  %v958_v7 = vcombine.low %v925_v63, %v941_v1  ;;  %v959_v8 = vcombine.high %v925_v63, %v941_v1 }
 0x421   : > { %v767_v9 = vcombine.low %v743_v57, %v749_v2  ;;  %v768_v10 = vcombine.high %v743_v57, %v749_v2  ;;  %v751_v11 = vcombine.low %v651_v38, %v746_v3  ;;  %v752_v12 = vcombine.high %v651_v38, %v746_v3 }
 0x422   : > { %v950_v13 = vrot.slane %v942_v4, %v7254_v61  ;;  %v957_v14 = vrot.slane %v943_v6, %v7254_v61  ;;  %v966_v15 = vrot.slane %v958_v7, %v7254_v61  ;;  %v973_v16 = vrot.slane %v959_v8, %v7254_v61 }
 0x423   : > { %v775_v17 = vrot.slane %v767_v9, %v7252_v54  ;;  %v782_v18 = vrot.slane %v768_v10, %v7252_v54  ;;  %v759_v20 = vrot.slane %v751_v11, %v7252_v54  ;;  %v766_v21 = vrot.slane %v752_v12, %v7252_v54 }
 0x424   : > { %v978_v22 = vcombine.low %v950_v13, %v957_v14  ;;  %v6091_v23 = vcombine.high %v950_v13, %v957_v14  ;;  %v994_v24 = vcombine.low %v966_v15, %v973_v16  ;;  %v6092_v25 = vcombine.high %v966_v15, %v973_v16 }
 0x425   : > { %v783_v26 = vcombine.low %v759_v20, %v775_v17  ;;  %v784_v27 = vcombine.high %v759_v20, %v775_v17  ;;  %v799_v28 = vcombine.low %v766_v21, %v782_v18  ;;  %v800_v29 = vcombine.high %v766_v21, %v782_v18 }
 0x426   : > { %v985_v31 = vrot.slane %v978_v22, %v7252_v54  ;;  %v993_v32 = vrot.slane %v6091_v23, %v7252_v54  ;;  %v1001_v33 = vrot.slane %v994_v24, %v7252_v54  ;;  %v1009_v34 = vrot.slane %v6092_v25, %v7252_v54 }
 0x427   : > { %v791_v35 = vrot.slane %v783_v26, %v7254_v61  ;;  %v798_v36 = vrot.slane %v784_v27, %v7254_v61  ;;  %v807_v37 = vrot.slane %v799_v28, %v7254_v61  ;;  %v814_v38 = vrot.slane %v800_v29, %v7254_v61 }
 0x428   : > { %v1010_v39 = vcombine.low %v985_v31, %v993_v32  ;;  %v1026_v40 = vcombine.low %v1001_v33, %v1009_v34  ;;  %v1011_v41 = vcombine.high %v985_v31, %v993_v32  ;;  %v1027_v42 = vcombine.high %v1001_v33, %v1009_v34 }
 0x429   : > { %v819_v43 = vcombine.low %v791_v35, %v798_v36  ;;  %v6089_v45 = vcombine.high %v791_v35, %v798_v36  ;;  %v835_v46 = vcombine.low %v807_v37, %v814_v38  ;;  %v6090_v47 = vcombine.high %v807_v37, %v814_v38 }
 0x42a   : > { %v1018_v48 = vrot.slane %v1010_v39, %v7254_v61  ;;  %v1034_v49 = vrot.slane %v1026_v40, %v7254_v61  ;;  %v1025_v57 = vrot.slane %v1011_v41, %v7254_v61  ;;  %v1041_v58 = vrot.slane %v1027_v42, %v7254_v61 }
 0x42b   : > { %v826_v50 = vrot.slane %v819_v43, %v7252_v54  ;;  %v834_v51 = vrot.slane %v6089_v45, %v7252_v54  ;;  %v842_v52 = vrot.slane %v835_v46, %v7252_v54  ;;  %v850_v53 = vrot.slane %v6090_v47, %v7252_v54 }
 0x42c   : > { %v1042_v55 = vcombine.low %v1018_v48, %v1034_v49  ;;  %v1043_v56 = vcombine.high %v1018_v48, %v1034_v49  ;;  %v1044_v4 = vcombine.low %v1025_v57, %v1041_v58  ;;  %v1045_v6 = vcombine.high %v1025_v57, %v1041_v58 }
 0x42d   : > { %v851_v59 = vcombine.low %v826_v50, %v834_v51  ;;  %v867_v60 = vcombine.low %v842_v52, %v850_v53  ;;  %v852_v7 = vcombine.high %v826_v50, %v834_v51  ;;  %v868_v8 = vcombine.high %v842_v52, %v850_v53  ;;  %v1051_v50 = vpop.permute.xlu0 %1050  ;;  %v1053_v51 = vpop.permute.xlu1 %1052 }
 0x42e   : > { %v1046_v62 = vpack.c.bf16 %v1042_v55, %v1042_v55  ;;  %v1047_v63 = vpack.c.bf16 %v1043_v56, %v1043_v56  ;;  %v1048_v11 = vpack.c.bf16 %v1044_v4, %v1044_v4  ;;  %v1049_v12 = vpack.c.bf16 %v1045_v6, %v1045_v6 }
 0x42f   : > { %v859_v0 = vrot.slane %v851_v59, %v7254_v61  ;;  %v875_v1 = vrot.slane %v867_v60, %v7254_v61  ;;  %v866_v15 = vrot.slane %v852_v7, %v7254_v61  ;;  %v882_v16 = vrot.slane %v868_v8, %v7254_v61 }
 0x430   : > { %v1213_v2 = vsel %vm1208_vm5, %v1046_v62, 0  ;;  %v1259_v3 = vsel %vm1208_vm5, %v1047_v63, 0  ;;  %v1305_v17 = vsel %vm1208_vm5, %v1048_v11, 0  ;;  %v1351_v18 = vsel %vm1208_vm5, %v1049_v12, 0 }
 0x431   : > { %6425 = vmatpush3.bf16.xpose.msra.mxu1 %v1213_v2  ;;  %6431 = vmatpush3.bf16.xpose.msra.mxu0 %v1259_v3  ;;  %v883_v9 = vcombine.low %v859_v0, %v875_v1  ;;  %v884_v10 = vcombine.high %v859_v0, %v875_v1  ;;  %v885_v20 = vcombine.low %v866_v15, %v882_v16  ;;  %v1055_v52 = vpop.permute.xlu1 %1054 }
 0x432   : > { %6436 = vmatprep.subr.bf16.mxu1 %v7013_v5  ;;  %6442 = vmatprep.subr.bf16.mxu0 %v7013_v5  ;;  %v886_v21 = vcombine.high %v866_v15, %v882_v16 }
 0x433   : > { %v887_v13 = vpack.c.bf16 %v883_v9, %v883_v9  ;;  %v888_v14 = vpack.c.bf16 %v884_v10, %v884_v10  ;;  %v889_v22 = vpack.c.bf16 %v885_v20, %v885_v20 }
 0x434   : > { %v890_v23 = vpack.c.bf16 %v886_v21, %v886_v21 }
 0x438   : > { %6427 = vmatmul.mubr.msk.bf16.vlgmr.msra.gmra.mxu1 %vm1208_vm5, %v887_v13  ;;  %6433 = vmatmul.mubr.msk.bf16.vlgmr.msra.gmra.mxu0 %vm1208_vm5, %v888_v14 }
 0x439   : > { %6437 = vmatpush3.bf16.xpose.msra.mxu1 %v1305_v17  ;;  %6443 = vmatpush3.bf16.xpose.msra.mxu0 %v1351_v18 }
 0x43a   : > { %6438 = vmatprep.mubr.msk.bf16.mxu1 %vm7014_vm1, %v7013_v5  ;;  %6444 = vmatprep.mubr.msk.bf16.mxu0 %vm7014_vm1, %v7013_v5 }
 0x43b   : > { %6448 = vmatprep.subr.bf16.mxu1 %v7013_v5  ;;  %6454 = vmatprep.subr.bf16.mxu0 %v7013_v5 }
 0x440   : > { %6439 = vmatmul.mubr.msk.bf16.vlgmr.msra.gmra.mxu1 %vm1208_vm5, %v889_v22  ;;  %6445 = vmatmul.mubr.msk.bf16.vlgmr.msra.gmra.mxu0 %vm1208_vm5, %v890_v23 }
 0x441   : > { %6450 = vmatprep.mubr.msk.bf16.mxu1 %vm7014_vm1, %v7013_v5  ;;  %6456 = vmatprep.mubr.msk.bf16.mxu0 %vm7014_vm1, %v7013_v5 }
 0x4f8   : > { %v1249_v24 = vpop.f32.mrf.mxu1  ;;  %v1295_v25 = vpop.f32.mrf.mxu0 }
 0x4f9   : > { %v1393_v26 = vsel %vm7248_vm4, %v1249_v24, -1e+30  ;;  %v1394_v27 = vsel %vm7248_vm4, %v1295_v25, -1e+30 }
 0x4fa   : > { %v6428_v28 = vpop.f32.mrf.mxu1  ;;  %v6434_v29 = vpop.f32.mrf.mxu0  ;;  %v1400_v31 = vsel %vm1208_vm5, %v1394_v27, -inf  ;;  %v1397_v32 = vsel %vm1208_vm5, %v1393_v26, -inf }
 0x4fb   : > { %1401 = vmax.xlane.f32.xlu0 %v1400_v31  ;;  %1398 = vmax.xlane.f32.xlu1 %v1397_v32 }
 0x4fc   : > { %v1252_v33 = vpop.f32.mrf.mxu1  ;;  %v1298_v34 = vpop.f32.mrf.mxu0 }
 0x4fe   : > { %v6429_v35 = vpop.f32.mrf.mxu1  ;;  %v6435_v36 = vpop.f32.mrf.mxu0 }
 0x500   : > { %v1341_v37 = vpop.f32.mrf.mxu1  ;;  %v1387_v38 = vpop.f32.mrf.mxu0 }
 0x501   : > { %v1395_v39 = vsel %vm7248_vm4, %v1341_v37, -1e+30  ;;  %v1396_v40 = vsel %vm7248_vm4, %v1387_v38, -1e+30 }
 0x502   : > { %v6440_v41 = vpop.f32.mrf.mxu1  ;;  %v6446_v42 = vpop.f32.mrf.mxu0  ;;  %v1406_v43 = vsel %vm1208_vm5, %v1396_v40, -inf  ;;  %v1403_v45 = vsel %vm1208_vm5, %v1395_v39, -inf }
 0x503   : > { %1407 = vmax.xlane.f32.xlu1 %v1406_v43  ;;  %1404 = vmax.xlane.f32.xlu0 %v1403_v45 }
 0x504   : > { %v1344_v46 = vpop.f32.mrf.mxu1  ;;  %v1390_v47 = vpop.f32.mrf.mxu0 }
 0x506   : > { %v6441_v48 = vpop.f32.mrf.mxu1  ;;  %v6447_v49 = vpop.f32.mrf.mxu0 }
 0x514   : > { %1058 = vrot.lane.b32.xlu1 %v1051_v50, %s8218_s22 }
 0x519   : > { %1056 = vrot.lane.b32.xlu0 %v7207_v19, %s8218_s22 }
 0x584   : > { %v1402_v53 = vpop.xlane.xlu0 %1401  ;;  %v1399_v55 = vpop.xlane.xlu1 %1398 }
 0x585   : > { %v1410_v56 = vsub.f32 %v1394_v27, %v1402_v53  ;;  %v1409_v57 = vsub.f32 %v1393_v26, %v1399_v55 }
 0x587   : > { %v1415_v58 = vmul.f32 1.442695, %v1410_v56  ;;  %v1413_v59 = vmul.f32 1.442695, %v1409_v57 }
 0x589   : > { %6860 = vpow2.f32 %v1415_v58 }
 0x58a   : > { %6862 = vpow2.f32 %v1413_v59 }
 0x58c   : > { %v1408_v0 = vpop.xlane.xlu1 %1407  ;;  %v1405_v1 = vpop.xlane.xlu0 %1404 }
 0x58d   : > { %v1412_v2 = vsub.f32 %v1396_v40, %v1408_v0  ;;  %v1411_v3 = vsub.f32 %v1395_v39, %v1405_v1 }
 0x58f   : > { %v1419_v4 = vmul.f32 1.442695, %v1412_v2  ;;  %v1417_v6 = vmul.f32 1.442695, %v1411_v3 }
 0x590   : > { %v1059_v11 = vpop.permute.xlu1 %1058  ;;  %v1057_v12 = vpop.permute.xlu0 %1056 }
 0x591   : > { %6864 = vpow2.f32 %v1419_v4 }
 0x592   : > { %6866 = vpow2.f32 %v1417_v6 }
 0x596   : > { %v7323_v60 = vpop.eup %6860 }
 0x597   : > { %v7325_v62 = vpop.eup %6862  ;;  %v1424_v63 = vsel %vm1208_vm5, %v7323_v60, 0.0 }
 0x598   : > { %1425 = vadd.xlane.f32.xlu1 %v1424_v63  ;;  %v1421_v19 = vsel %vm1208_vm5, %v7325_v62, 0.0 }
 0x599   : > { %1422 = vadd.xlane.f32.xlu0 %v1421_v19 }
 0x59e   : > { %v7333_v7 = vpop.eup %6864 }
 0x59f   : > { %v7335_v8 = vpop.eup %6866  ;;  %v1430_v9 = vsel %vm1208_vm5, %v7333_v7, 0.0 }
 0x5a0   : > { %v1427_v10 = vsel %vm1208_vm5, %v7335_v8, 0.0 }
 0x5a9   : > { %1062 = vrot.lane.b32.xlu1 %v1055_v52, %s8218_s22 }
 0x5af   : > { %1060 = vrot.lane.b32.xlu0 %v1053_v51, %s8218_s22  ;;  %s8223_s22 = smov 24  }
 0x5cd   : > { %1431 = vadd.xlane.f32.xlu1 %v1430_v9 }
 0x5ce   : > { %1428 = vadd.xlane.f32.xlu0 %v1427_v10 }
 0x621   : > { %v1426_v13 = vpop.xlane.xlu1 %1425 }
 0x622   : > { %v1423_v14 = vpop.xlane.xlu0 %1422  ;;  %6868 = vrcp.f32 %v1426_v13 }
 0x623   : > { %6870 = vrcp.f32 %v1423_v14 }
 0x625   : > { %v1063_v15 = vpop.permute.xlu1 %1062 }
 0x626   : > { %v1084_v16 = vcombine.low %v1059_v11, %v1063_v15  ;;  %v1085_v17 = vcombine.high %v1059_v11, %v1063_v15  ;;  %v1061_v18 = vpop.permute.xlu0 %1060 }
 0x627   : > { %v1068_v20 = vcombine.low %v1057_v12, %v1061_v18  ;;  %v1069_v21 = vcombine.high %v1057_v12, %v1061_v18 }
 0x628   : > { %v1092_v22 = vrot.slane %v1084_v16, %v7252_v54  ;;  %v1099_v23 = vrot.slane %v1085_v17, %v7252_v54 }
 0x629   : > { %v1076_v24 = vrot.slane %v1068_v20, %v7252_v54  ;;  %v1083_v25 = vrot.slane %v1069_v21, %v7252_v54 }
 0x62b   : > { %v1100_v26 = vcombine.low %v1076_v24, %v1092_v22  ;;  %v1101_v27 = vcombine.high %v1076_v24, %v1092_v22  ;;  %v1116_v28 = vcombine.low %v1083_v25, %v1099_v23  ;;  %v1117_v29 = vcombine.high %v1083_v25, %v1099_v23 }
 0x62d   : > { %v1108_v31 = vrot.slane %v1100_v26, %v7254_v61  ;;  %v1115_v32 = vrot.slane %v1101_v27, %v7254_v61  ;;  %v1124_v33 = vrot.slane %v1116_v28, %v7254_v61  ;;  %v1131_v34 = vrot.slane %v1117_v29, %v7254_v61 }
 0x62f   : > { %v1136_v35 = vcombine.low %v1108_v31, %v1115_v32  ;;  %v6093_v36 = vcombine.high %v1108_v31, %v1115_v32  ;;  %v1152_v37 = vcombine.low %v1124_v33, %v1131_v34  ;;  %v6094_v38 = vcombine.high %v1124_v33, %v1131_v34  ;;  %v6869_v48 = vpop.eup %6868 }
 0x630   : > { %v6871_v53 = vpop.eup %6870  ;;  %v1438_v0 = vmul.f32 %v6869_v48, %v7323_v60 }
 0x631   : > { %v1143_v39 = vrot.slane %v1136_v35, %v7252_v54  ;;  %v1151_v40 = vrot.slane %v6093_v36, %v7252_v54  ;;  %v1159_v41 = vrot.slane %v1152_v37, %v7252_v54  ;;  %v1167_v42 = vrot.slane %v6094_v38, %v7252_v54 }
 0x632   : > { %v1437_v19 = vmul.f32 %v6871_v53, %v7325_v62  ;;  %v1442_v9 = vpack.c.bf16 %v1438_v0, %v1438_v0 }
 0x633   : > { %v1168_v43 = vcombine.low %v1143_v39, %v1151_v40  ;;  %v1184_v45 = vcombine.low %v1159_v41, %v1167_v42  ;;  %v1169_v46 = vcombine.high %v1143_v39, %v1151_v40  ;;  %v1185_v47 = vcombine.high %v1159_v41, %v1167_v42 }
 0x634   : > { %v1441_v6 = vpack.c.bf16 %v1437_v19, %v1437_v19 }
 0x635   : > { %v1176_v49 = vrot.slane %v1168_v43, %v7254_v61  ;;  %v1192_v50 = vrot.slane %v1184_v45, %v7254_v61  ;;  %v1183_v51 = vrot.slane %v1169_v46, %v7254_v61  ;;  %v1199_v52 = vrot.slane %v1185_v47, %v7254_v61  ;;  %v6820_v46 = vld [vmem:[%s8208_s7 + $0x8] sm:$0xff]  }
 0x637   : > { %v1200_v55 = vcombine.low %v1176_v49, %v1192_v50  ;;  %v1201_v56 = vcombine.high %v1176_v49, %v1192_v50  ;;  %v1202_v57 = vcombine.low %v1183_v51, %v1199_v52  ;;  %v1203_v58 = vcombine.high %v1183_v51, %v1199_v52 }
 0x639   : > { %v1204_v59 = vpack.c.bf16 %v1200_v55, %v1200_v55  ;;  %v1205_v63 = vpack.c.bf16 %v1201_v56, %v1201_v56  ;;  %v1206_v3 = vpack.c.bf16 %v1202_v57, %v1202_v57  ;;  %v1207_v4 = vpack.c.bf16 %v1203_v58, %v1203_v58  ;;  %v6821_v57 = vld [vmem:[%s8208_s7] sm:$0xff]  }
 0x63b   : > { %v1450_v1 = vsel %vm1448_vm6, %v1204_v59, 0  ;;  %v1496_v2 = vsel %vm1448_vm6, %v1205_v63, 0  ;;  %v1542_v60 = vsel %vm1448_vm6, %v1206_v3, 0  ;;  %v1588_v62 = vsel %vm1448_vm6, %v1207_v4, 0 }
 0x63c   : > { %6449 = vmatpush3.bf16.msra.mxu1 %v1450_v1  ;;  %6455 = vmatpush3.bf16.msra.mxu0 %v1496_v2 }
 0x63d   : > { %6460 = vmatprep.subr.bf16.mxu1 %v7013_v5  ;;  %6466 = vmatprep.subr.bf16.mxu0 %v7013_v5 }
 0x63f   : > { %6451 = vmatmul.mubr.msk.bf16.vlgmr.msra.gmra.mxu1 %vm1208_vm5, %v1441_v6  ;;  %6457 = vmatmul.mubr.msk.bf16.vlgmr.msra.gmra.mxu0 %vm1208_vm5, %v1442_v9 }
 0x640   : > { %6461 = vmatpush3.bf16.msra.mxu1 %v1542_v60  ;;  %6467 = vmatpush3.bf16.msra.mxu0 %v1588_v62 }
 0x641   : > { %6462 = vmatprep.mubr.msk.bf16.mxu1 %vm7014_vm1, %v7013_v5  ;;  %6468 = vmatprep.mubr.msk.bf16.mxu0 %vm7014_vm1, %v7013_v5 }
 0x642   : > { %6472 = vmatprep.subr.bf16.mxu1 %v7013_v5  ;;  %6480 = vmatprep.subr.bf16.mxu0 %v7013_v5 }
 0x656   : > { %v1432_v10 = vpop.xlane.xlu1 %1431 }
 0x657   : > { %6872 = vrcp.f32 %v1432_v10  ;;  %v1429_v11 = vpop.xlane.xlu0 %1428 }
 0x658   : > { %6874 = vrcp.f32 %v1429_v11 }
 0x664   : > { %v6873_v12 = vpop.eup %6872 }
 0x665   : > { %v6875_v13 = vpop.eup %6874  ;;  %v1440_v14 = vmul.f32 %v6873_v12, %v7333_v7 }
 0x666   : > { %v1439_v15 = vmul.f32 %v6875_v13, %v7335_v8 }
 0x667   : > { %v1444_v16 = vpack.c.bf16 %v1440_v14, %v1440_v14 }
 0x668   : > { %v1443_v17 = vpack.c.bf16 %v1439_v15, %v1439_v15 }
 0x669   : > { %6469 = vmatmul.mubr.msk.bf16.vlgmr.msra.gmra.mxu0 %vm1208_vm5, %v1444_v16 }
 0x66a   : > { %6463 = vmatmul.mubr.msk.bf16.vlgmr.msra.gmra.mxu1 %vm1208_vm5, %v1443_v17  ;;  %6484 = vmatprep.mubr.msk.bf16.mxu0 %vm7014_vm1, %v7013_v5 }
 0x66b   : > { %6476 = vmatprep.mubr.msk.bf16.mxu1 %vm7014_vm1, %v7013_v5  ;;  %6473 = vmatpush3.bf16.msra.mxu1 %v6820_v46 }
 0x66c   : > { %6474 = vmatprep.subr.bf16.mxu1 %v7013_v5 }
 0x66f   : > { %6475 = vmatpush3.bf16.msra.mxu1 %v6821_v57 }
 0x670   : > { %6488 = vmatprep.subr.bf16.mxu1 %v7013_v5 }
 0x6ff   : > { %v1486_v18 = vpop.f32.mrf.mxu1  ;;  %v1532_v20 = vpop.f32.mrf.mxu0 }
 0x701   : > { %v6452_v21 = vpop.f32.mrf.mxu1  ;;  %v6458_v22 = vpop.f32.mrf.mxu0 }
 0x702   : > { %v6822_v21 = vld [vmem:[%s8210_s9 + $0x8] sm:$0xff]  }
 0x703   : > { %v1489_v23 = vpop.f32.mrf.mxu1  ;;  %v1535_v7 = vpop.f32.mrf.mxu0 }
 0x704   : > { %v6823_v23 = vld [vmem:[%s8210_s9] sm:$0xff]  }
 0x705   : > { %v6453_v24 = vpop.f32.mrf.mxu1  ;;  %v6459_v8 = vpop.f32.mrf.mxu0 }
 0x706   : > { %v6944_v8 = vld [vmem:[%s7160_s18] sm:$0xff]  ;;  %s8253_s18 = smov 120  }
 0x729   : > { %v1624_v25 = vpop.f32.mrf.mxu0 }
 0x72a   : > { %v1578_v26 = vpop.f32.mrf.mxu1  ;;  %v1646_v27 = vcombine.low %v1532_v20, %v1624_v25  ;;  %v1647_v28 = vcombine.high %v1532_v20, %v1624_v25 }
 0x72b   : > { %v1630_v29 = vcombine.low %v1486_v18, %v1578_v26  ;;  %v1631_v31 = vcombine.high %v1486_v18, %v1578_v26  ;;  %v6470_v32 = vpop.f32.mrf.mxu0 }
 0x72c   : > { %v1654_v33 = vrot.slane %v1646_v27, %v7252_v54  ;;  %v1661_v34 = vrot.slane %v1647_v28, %v7252_v54  ;;  %v6464_v35 = vpop.f32.mrf.mxu1  ;;  %v6824_v32 = vld [vmem:[%s8209_s8 + $0x8] sm:$0xff]  }
 0x72d   : > { %v1638_v36 = vrot.slane %v1630_v29, %v7252_v54  ;;  %v1645_v37 = vrot.slane %v1631_v31, %v7252_v54  ;;  %v1627_v38 = vpop.f32.mrf.mxu0  ;;  %6481 = vmatpush3.bf16.msra.mxu0 %v6824_v32 }
 0x72e   : > { %v1581_v39 = vpop.f32.mrf.mxu1  ;;  %6482 = vmatprep.subr.bf16.mxu0 %v7013_v5 }
 0x72f   : > { %v1662_v40 = vcombine.low %v1638_v36, %v1654_v33  ;;  %v1663_v41 = vcombine.high %v1638_v36, %v1654_v33  ;;  %v1678_v42 = vcombine.low %v1645_v37, %v1661_v34  ;;  %v1679_v43 = vcombine.high %v1645_v37, %v1661_v34  ;;  %v6471_v45 = vpop.f32.mrf.mxu0  ;;  %v6825_v33 = vld [vmem:[%s8209_s8] sm:$0xff]  }
 0x730   : > { %v6465_v47 = vpop.f32.mrf.mxu1 }
 0x731   : > { %v1670_v48 = vrot.slane %v1662_v40, %v7254_v61  ;;  %v1677_v49 = vrot.slane %v1663_v41, %v7254_v61  ;;  %v1686_v50 = vrot.slane %v1678_v42, %v7254_v61  ;;  %v1693_v51 = vrot.slane %v1679_v43, %v7254_v61  ;;  %6483 = vmatpush3.bf16.msra.mxu0 %v6825_v33  ;;  %v6108_v42 = vld [vmem:[%s8206_s5 + $0x1] ss:$0 sm:$0xff] }
 0x732   : > { %6496 = vmatprep.subr.bf16.mxu0 %v7013_v5 }
 0x733   : > { %v1698_v52 = vcombine.low %v1670_v48, %v1677_v49  ;;  %v6103_v53 = vcombine.high %v1670_v48, %v1677_v49  ;;  %v1714_v55 = vcombine.low %v1686_v50, %v1693_v51  ;;  %v6104_v56 = vcombine.high %v1686_v50, %v1693_v51 }
 0x735   : > { %v1705_v58 = vrot.slane %v1698_v52, %v7252_v54  ;;  %v1713_v59 = vrot.slane %v6103_v53, %v7252_v54  ;;  %v1721_v63 = vrot.slane %v1714_v55, %v7252_v54  ;;  %v1729_v19 = vrot.slane %v6104_v56, %v7252_v54 }
 0x737   : > { %v1731_v0 = vcombine.high %v1705_v58, %v1713_v59  ;;  %v1747_v1 = vcombine.high %v1721_v63, %v1729_v19  ;;  %v1730_v2 = vcombine.low %v1705_v58, %v1713_v59  ;;  %v1746_v3 = vcombine.low %v1721_v63, %v1729_v19 }
 0x739   : > { %v1745_v4 = vrot.slane %v1731_v0, %v7254_v61  ;;  %v1761_v6 = vrot.slane %v1747_v1, %v7254_v61  ;;  %v1738_v9 = vrot.slane %v1730_v2, %v7254_v61  ;;  %v1754_v60 = vrot.slane %v1746_v3, %v7254_v61 }
 0x73b   : > { %v1764_v62 = vcombine.low %v1745_v4, %v1761_v6  ;;  %v1763_v10 = vcombine.high %v1738_v9, %v1754_v60  ;;  %v1762_v11 = vcombine.low %v1738_v9, %v1754_v60  ;;  %v1765_v12 = vcombine.high %v1745_v4, %v1761_v6 }
 0x73d   : > { %1771 = vrot.lane.b32.xlu1 %v1764_v62, %s8227_s27  ;;  %1767 = vrot.lane.b32.xlu0 %v1763_v10, %s8225_s15  ;;  %s479_s27 = scalar_lea.vmem %s8252_s1, %s8251_s28  ;;  %s8256_s15 = smov 104  }
 0x73e   : > { %v482_v22 = vld [vmem:[%s479_s27] sm:$0xff]  ;;  %s8255_s27 = smov 112   ;;  %s8258_s28 = smov 8  }
 0x73f   : > { %v7426_v7 = vpack.c.bf16 %v482_v22, %v482_v22  ;;  %s8261_s1 = smov 64  }
 0x741   : > { %1775 = vrot.lane.b32.xlu0 %v1765_v12, %s8223_s22  ;;  %s8257_s22 = smov 16  }
 0x7af   : > { %v1768_v13 = vpop.permute.xlu0 %1767  ;;  %v1772_v14 = vpop.permute.xlu1 %1771 }
 0x7b0   : > { %v1778_v15 = vsel %vm1208_vm5, %v1762_v11, %v1768_v13 }
 0x7b1   : > { %v1780_v17 = vsel %vm1779_vm7, %v1778_v15, %v1772_v14 }
 0x7b3   : > { %v1776_v16 = vpop.permute.xlu0 %1775 }
 0x7b4   : > { %v1782_v18 = vsel %vm1781_vm8, %v1780_v17, %v1776_v16 }
 0x7b5   : > { %v1783_v20 = vpack.c.bf16 %v1782_v18, %v1782_v18 }
 0x7b7   : > { %6477 = vmatmul.mubr.msk.bf16.vlgmr.msra.gmra.mxu1 %vm502_vm0, %v1783_v20 }
 0x7b8   : > { %6492 = vmatprep.mubr.msk.bf16.mxu1 %vm7014_vm1, %v7013_v5  ;;  %6489 = vmatpush3.bf16.msra.mxu1 %v6822_v21 }
 0x7b9   : > { %6490 = vmatprep.subr.bf16.mxu1 %v7013_v5 }
 0x7bc   : > { %6491 = vmatpush3.bf16.msra.mxu1 %v6823_v23 }
 0x7bd   : > { %6502 = vmatprep.subr.bf16.mxu1 %v7013_v5 }
 0x7bf   : > { %6493 = vmatmul.mubr.msk.bf16.vlgmr.msra.gmra.mxu1 %vm502_vm0, %v7426_v7 }
 0x7c0   : > { %6504 = vmatprep.mubr.msk.bf16.mxu1 %vm7014_vm1, %v7013_v5 }
 0x877   : > { %v1833_v24 = vpop.f32.mrf.mxu1 }
 0x878   : > { %v7434_v25 = vadd.f32 %v6944_v8, %v1833_v24 }
 0x879   : > { %v6478_v26 = vpop.f32.mrf.mxu1 }
 0x87a   : > { %v1841_v27 = vmul.f32 %v7434_v25, %v7434_v25 }
 0x87b   : > { %v1836_v28 = vpop.f32.mrf.mxu1 }
 0x87c   : > { %v1842_v29 = vsel %vm502_vm0, %v1841_v27, 0.0 }
 0x87d   : > { %1843 = vadd.xlane.f32.xlu1 %v1842_v29  ;;  %v6479_v31 = vpop.f32.mrf.mxu1 }
 0x87f   : > { %v1967_v34 = vpop.f32.mrf.mxu1 }
 0x880   : > { %2128 = vrot.lane.b32.xlu0 %v1967_v34, %s8253_s18 }
 0x881   : > { %v6494_v35 = vpop.f32.mrf.mxu1 }
 0x883   : > { %v1970_v36 = vpop.f32.mrf.mxu1 }
 0x884   : > { %2131 = vrot.lane.b32.xlu0 %v1967_v34, %s8255_s27 }
 0x885   : > { %v6495_v37 = vpop.f32.mrf.mxu1 }
 0x888   : > { %2134 = vrot.lane.b32.xlu0 %v1967_v34, %s8256_s15 }
 0x88e   : > { %2277 = vrot.lane.b32.xlu1 %v1967_v34, %s8254_s21 }
 0x8f2   : > { %v7458_v47 = vpop.permute.xlu0 %2128 }
 0x8f6   : > { %v7460_v48 = vpop.permute.xlu0 %2131 }
 0x8f7   : > { %v2137_v50 = vcombine.low %v1967_v34, %v7460_v48  ;;  %v2138_v51 = vcombine.high %v1967_v34, %v7460_v48 }
 0x8f9   : > { %v2145_v55 = vrot.slane %v2137_v50, %v7252_v54  ;;  %v2152_v56 = vrot.slane %v2138_v51, %v7252_v54 }
 0x8fa   : > { %v7462_v49 = vpop.permute.xlu0 %2134 }
 0x8fb   : > { %v2153_v52 = vcombine.low %v7458_v47, %v7462_v49  ;;  %v2154_v53 = vcombine.high %v7458_v47, %v7462_v49 }
 0x8fd   : > { %v2161_v57 = vrot.slane %v2153_v52, %v7252_v54  ;;  %v2168_v58 = vrot.slane %v2154_v53, %v7252_v54 }
 0x8ff   : > { %v2169_v59 = vcombine.low %v2145_v55, %v2161_v57  ;;  %v2170_v63 = vcombine.high %v2145_v55, %v2161_v57  ;;  %v2185_v19 = vcombine.low %v2152_v56, %v2168_v58  ;;  %v2186_v0 = vcombine.high %v2152_v56, %v2168_v58 }
 0x901   : > { %v2177_v1 = vrot.slane %v2169_v59, %v7254_v61  ;;  %v2184_v2 = vrot.slane %v2170_v63, %v7254_v61  ;;  %v2193_v3 = vrot.slane %v2185_v19, %v7254_v61  ;;  %v2200_v4 = vrot.slane %v2186_v0, %v7254_v61 }
 0x903   : > { %v2205_v6 = vcombine.low %v2177_v1, %v2184_v2  ;;  %v6117_v9 = vcombine.high %v2177_v1, %v2184_v2  ;;  %v2221_v60 = vcombine.low %v2193_v3, %v2200_v4  ;;  %v6118_v62 = vcombine.high %v2193_v3, %v2200_v4 }
 0x905   : > { %v2212_v10 = vrot.slane %v2205_v6, %v7252_v54  ;;  %v2220_v11 = vrot.slane %v6117_v9, %v7252_v54  ;;  %v2228_v12 = vrot.slane %v2221_v60, %v7252_v54  ;;  %v2236_v13 = vrot.slane %v6118_v62, %v7252_v54 }
 0x906   : > { %v1844_v38 = vpop.xlane.xlu1 %1843 }
 0x907   : > { %v1845_v39 = vmul.f32 0.03125, %v1844_v38  ;;  %v2237_v14 = vcombine.low %v2212_v10, %v2220_v11  ;;  %v2253_v15 = vcombine.low %v2228_v12, %v2236_v13  ;;  %v2238_v16 = vcombine.high %v2212_v10, %v2220_v11 }
 0x908   : > { %v2254_v17 = vcombine.high %v2228_v12, %v2236_v13 }
 0x909   : > { %v1846_v40 = vadd.f32 1e-06, %v1845_v39  ;;  %v2245_v18 = vrot.slane %v2237_v14, %v7254_v61  ;;  %v2261_v20 = vrot.slane %v2253_v15, %v7254_v61  ;;  %v2252_v21 = vrot.slane %v2238_v16, %v7254_v61 }
 0x90a   : > { %v2268_v22 = vrot.slane %v2254_v17, %v7254_v61 }
 0x90b   : > { %6876 = vrsqrt.f32 %v1846_v40  ;;  %v2269_v23 = vcombine.low %v2245_v18, %v2261_v20  ;;  %v2270_v24 = vcombine.high %v2245_v18, %v2261_v20 }
 0x90c   : > { %v2271_v8 = vcombine.low %v2252_v21, %v2268_v22  ;;  %v2272_v26 = vcombine.high %v2252_v21, %v2268_v22 }
 0x90d   : > { %v2273_v27 = vpack.c.bf16 %v2269_v23, %v2269_v23  ;;  %v2274_v28 = vpack.c.bf16 %v2270_v24, %v2270_v24 }
 0x90e   : > { %v2275_v15 = vpack.c.bf16 %v2271_v8, %v2271_v8  ;;  %v2276_v16 = vpack.c.bf16 %v2272_v26, %v2272_v26 }
 0x90f   : > { %v2433_v29 = vsel %vm1208_vm5, %v2273_v27, 0  ;;  %v2479_v31 = vsel %vm1208_vm5, %v2274_v28, 0 }
 0x910   : > { %6503 = vmatpush3.bf16.xpose.msra.mxu1 %v2479_v31  ;;  %v2525_v22 = vsel %vm1208_vm5, %v2275_v15, 0  ;;  %v2571_v23 = vsel %vm1208_vm5, %v2276_v16, 0 }
 0x911   : > { %6514 = vmatprep.subr.bf16.mxu1 %v7013_v5 }
 0x918   : > { %v6877_v41 = vpop.eup %6876 }
 0x919   : > { %v1848_v43 = vmul.f32 %v6877_v41, %v7434_v25 }
 0x91b   : > { %v1853_v45 = vmul.f32 %v6108_v42, %v1848_v43 }
 0x91d   : > { %v1854_v46 = vpack.c.bf16 %v1853_v45, %v1853_v45 }
 0x91f   : > { %6485 = vmatmul.mubr.msk.bf16.vlgmr.msra.gmra.mxu0 %vm502_vm0, %v1854_v46 }
 0x920   : > { %6498 = vmatprep.mubr.msk.bf16.mxu0 %vm7014_vm1, %v7013_v5  ;;  %6497 = vmatpush3.bf16.xpose.msra.mxu0 %v2433_v29 }
 0x921   : > { %6508 = vmatprep.subr.bf16.mxu0 %v7013_v5 }
 0x9df   : > { %v1908_v32 = vpop.f32.mrf.mxu0 }
 0x9e0   : > { %1978 = vrot.lane.b32.xlu0 %v1908_v32, %s8253_s18 }
 0x9e1   : > { %v6486_v33 = vpop.f32.mrf.mxu0 }
 0x9e3   : > { %v1911_v34 = vpop.f32.mrf.mxu0 }
 0x9e4   : > { %1981 = vrot.lane.b32.xlu0 %v1908_v32, %s8255_s27 }
 0x9e5   : > { %v6487_v35 = vpop.f32.mrf.mxu0 }
 0x9e8   : > { %1984 = vrot.lane.b32.xlu0 %v1908_v32, %s8256_s15 }
 0xa52   : > { %v1979_v36 = vpop.permute.xlu0 %1978 }
 0xa56   : > { %v1982_v37 = vpop.permute.xlu0 %1981 }
 0xa57   : > { %v1987_v38 = vcombine.low %v1908_v32, %v1982_v37  ;;  %v1988_v39 = vcombine.high %v1908_v32, %v1982_v37 }
 0xa59   : > { %v1995_v43 = vrot.slane %v1987_v38, %v7252_v54  ;;  %v2002_v45 = vrot.slane %v1988_v39, %v7252_v54 }
 0xa5a   : > { %v1985_v40 = vpop.permute.xlu0 %1984 }
 0xa5b   : > { %v2003_v41 = vcombine.low %v1979_v36, %v1985_v40  ;;  %v2004_v42 = vcombine.high %v1979_v36, %v1985_v40 }
 0xa5d   : > { %v2011_v46 = vrot.slane %v2003_v41, %v7252_v54  ;;  %v2018_v50 = vrot.slane %v2004_v42, %v7252_v54 }
 0xa5f   : > { %v2019_v51 = vcombine.low %v1995_v43, %v2011_v46  ;;  %v2020_v52 = vcombine.high %v1995_v43, %v2011_v46  ;;  %v2035_v53 = vcombine.low %v2002_v45, %v2018_v50  ;;  %v2036_v55 = vcombine.high %v2002_v45, %v2018_v50 }
 0xa61   : > { %v2027_v56 = vrot.slane %v2019_v51, %v7254_v61  ;;  %v2034_v57 = vrot.slane %v2020_v52, %v7254_v61  ;;  %v2043_v58 = vrot.slane %v2035_v53, %v7254_v61  ;;  %v2050_v59 = vrot.slane %v2036_v55, %v7254_v61  ;;  %v2278_v53 = vpop.permute.xlu1 %2277 }
 0xa63   : > { %v2055_v63 = vcombine.low %v2027_v56, %v2034_v57  ;;  %v6115_v19 = vcombine.high %v2027_v56, %v2034_v57  ;;  %v2071_v0 = vcombine.low %v2043_v58, %v2050_v59  ;;  %v6116_v1 = vcombine.high %v2043_v58, %v2050_v59 }
 0xa65   : > { %v2062_v2 = vrot.slane %v2055_v63, %v7252_v54  ;;  %v2070_v3 = vrot.slane %v6115_v19, %v7252_v54  ;;  %v2078_v4 = vrot.slane %v2071_v0, %v7252_v54  ;;  %v2086_v6 = vrot.slane %v6116_v1, %v7252_v54 }
 0xa67   : > { %v2087_v9 = vcombine.low %v2062_v2, %v2070_v3  ;;  %v2103_v60 = vcombine.low %v2078_v4, %v2086_v6  ;;  %v2088_v62 = vcombine.high %v2062_v2, %v2070_v3  ;;  %v2104_v10 = vcombine.high %v2078_v4, %v2086_v6 }
 0xa69   : > { %v2095_v11 = vrot.slane %v2087_v9, %v7254_v61  ;;  %v2111_v12 = vrot.slane %v2103_v60, %v7254_v61  ;;  %v2102_v20 = vrot.slane %v2088_v62, %v7254_v61  ;;  %v2118_v21 = vrot.slane %v2104_v10, %v7254_v61 }
 0xa6b   : > { %v2119_v13 = vcombine.low %v2095_v11, %v2111_v12  ;;  %v2120_v14 = vcombine.high %v2095_v11, %v2111_v12  ;;  %v2121_v24 = vcombine.low %v2102_v20, %v2118_v21  ;;  %v2122_v8 = vcombine.high %v2102_v20, %v2118_v21 }
 0xa6d   : > { %v2123_v17 = vpack.c.bf16 %v2119_v13, %v2119_v13  ;;  %v2124_v18 = vpack.c.bf16 %v2120_v14, %v2120_v14  ;;  %v2125_v26 = vpack.c.bf16 %v2121_v24, %v2121_v24  ;;  %v2126_v27 = vpack.c.bf16 %v2122_v8, %v2122_v8 }
 0xa6f   : > { %6499 = vmatmul.mubr.msk.bf16.vlgmr.msra.gmra.mxu0 %vm1208_vm5, %v2123_v17  ;;  %6505 = vmatmul.mubr.msk.bf16.vlgmr.msra.gmra.mxu1 %vm1208_vm5, %v2124_v18 }
 0xa70   : > { %6509 = vmatpush3.bf16.xpose.msra.mxu0 %v2525_v22  ;;  %6515 = vmatpush3.bf16.xpose.msra.mxu1 %v2571_v23 }
 0xa71   : > { %6510 = vmatprep.mubr.msk.bf16.mxu0 %vm7014_vm1, %v7013_v5  ;;  %6516 = vmatprep.mubr.msk.bf16.mxu1 %vm7014_vm1, %v7013_v5 }
 0xa72   : > { %6520 = vmatprep.subr.bf16.mxu0 %v7013_v5  ;;  %6526 = vmatprep.subr.bf16.mxu1 %v7013_v5 }
 0xa77   : > { %6511 = vmatmul.mubr.msk.bf16.vlgmr.msra.gmra.mxu0 %vm1208_vm5, %v2125_v26  ;;  %6517 = vmatmul.mubr.msk.bf16.vlgmr.msra.gmra.mxu1 %vm1208_vm5, %v2126_v27 }
 0xa78   : > { %6522 = vmatprep.mubr.msk.bf16.mxu0 %vm7014_vm1, %v7013_v5  ;;  %6528 = vmatprep.mubr.msk.bf16.mxu1 %vm7014_vm1, %v7013_v5 }
 0xb2f   : > { %v2469_v28 = vpop.f32.mrf.mxu0  ;;  %v2515_v29 = vpop.f32.mrf.mxu1 }
 0xb30   : > { %v2613_v31 = vsel %vm1208_vm5, %v2469_v28, -inf  ;;  %v2616_v32 = vsel %vm1208_vm5, %v2515_v29, -inf }
 0xb31   : > { %2614 = vmax.xlane.f32.xlu0 %v2613_v31  ;;  %v6500_v33 = vpop.f32.mrf.mxu0  ;;  %2617 = vmax.xlane.f32.xlu1 %v2616_v32  ;;  %v6506_v34 = vpop.f32.mrf.mxu1 }
 0xb33   : > { %v2472_v35 = vpop.f32.mrf.mxu0  ;;  %v2518_v36 = vpop.f32.mrf.mxu1 }
 0xb35   : > { %v6501_v37 = vpop.f32.mrf.mxu0  ;;  %v6507_v38 = vpop.f32.mrf.mxu1 }
 0xb37   : > { %v2561_v39 = vpop.f32.mrf.mxu0  ;;  %v2607_v40 = vpop.f32.mrf.mxu1 }
 0xb38   : > { %v2619_v41 = vsel %vm1208_vm5, %v2561_v39, -inf  ;;  %v2622_v50 = vsel %vm1208_vm5, %v2607_v40, -inf }
 0xb39   : > { %v6512_v42 = vpop.f32.mrf.mxu0  ;;  %2620 = vmax.xlane.f32.xlu1 %v2619_v41  ;;  %v6518_v43 = vpop.f32.mrf.mxu1 }
 0xb3b   : > { %v2564_v45 = vpop.f32.mrf.mxu0  ;;  %v2610_v46 = vpop.f32.mrf.mxu1 }
 0xb3d   : > { %v6513_v51 = vpop.f32.mrf.mxu0  ;;  %2623 = vmax.xlane.f32.xlu1 %v2622_v50  ;;  %v6519_v52 = vpop.f32.mrf.mxu1 }
 0xb47   : > { %2279 = vrot.lane.b32.xlu0 %v7458_v47, %s8254_s21 }
 0xb4e   : > { %2281 = vrot.lane.b32.xlu1 %v7460_v48, %s8254_s21 }
 0xbba   : > { %v2615_v55 = vpop.xlane.xlu0 %2614  ;;  %v2618_v56 = vpop.xlane.xlu1 %2617 }
 0xbbb   : > { %v2625_v57 = vsub.f32 %v2469_v28, %v2615_v55  ;;  %v2626_v58 = vsub.f32 %v2515_v29, %v2618_v56 }
 0xbbd   : > { %v2629_v59 = vmul.f32 1.442695, %v2625_v57  ;;  %v2631_v63 = vmul.f32 1.442695, %v2626_v58 }
 0xbbe   : > { %v2280_v17 = vpop.permute.xlu0 %2279 }
 0xbbf   : > { %6878 = vpow2.f32 %v2629_v59 }
 0xbc0   : > { %6880 = vpow2.f32 %v2631_v63 }
 0xbc2   : > { %v2621_v19 = vpop.xlane.xlu1 %2620 }
 0xbc3   : > { %v2627_v0 = vsub.f32 %v2561_v39, %v2621_v19 }
 0xbc5   : > { %v2633_v1 = vmul.f32 1.442695, %v2627_v0 }
 0xbc6   : > { %v2624_v9 = vpop.xlane.xlu1 %2623 }
 0xbc7   : > { %6882 = vpow2.f32 %v2633_v1  ;;  %v2628_v60 = vsub.f32 %v2607_v40, %v2624_v9 }
 0xbc9   : > { %v2635_v62 = vmul.f32 1.442695, %v2628_v60 }
 0xbca   : > { %v2282_v12 = vpop.permute.xlu1 %2281 }
 0xbcb   : > { %6884 = vpow2.f32 %v2635_v62  ;;  %v2289_v15 = vcombine.low %v2278_v53, %v2282_v12  ;;  %v2290_v16 = vcombine.high %v2278_v53, %v2282_v12 }
 0xbcc   : > { %v7533_v2 = vpop.eup %6878 }
 0xbcd   : > { %v2637_v47 = vsel %vm1208_vm5, %v7533_v2, 0.0  ;;  %v7537_v3 = vpop.eup %6880  ;;  %v2304_v22 = vrot.slane %v2290_v16, %v7252_v54 }
 0xbce   : > { %2638 = vadd.xlane.f32.xlu1 %v2637_v47  ;;  %v2640_v48 = vsel %vm1208_vm5, %v7537_v3, 0.0 }
 0xbd2   : > { %2641 = vadd.xlane.f32.xlu1 %v2640_v48 }
 0xbd4   : > { %v7541_v4 = vpop.eup %6882 }
 0xbd5   : > { %v2643_v6 = vsel %vm1208_vm5, %v7541_v4, 0.0 }
 0xbd6   : > { %2644 = vadd.xlane.f32.xlu0 %v2643_v6 }
 0xbd8   : > { %v7547_v10 = vpop.eup %6884 }
 0xbd9   : > { %v2646_v11 = vsel %vm1208_vm5, %v7547_v10, 0.0 }
 0xbe3   : > { %2283 = vrot.lane.b32.xlu1 %v7462_v49, %s8254_s21  ;;  %v2297_v49 = vrot.slane %v2289_v15, %v7252_v54 }
 0xc07   : > { %2647 = vadd.xlane.f32.xlu1 %v2646_v11 }
 0xc57   : > { %v2639_v13 = vpop.xlane.xlu1 %2638 }
 0xc58   : > { %6886 = vrcp.f32 %v2639_v13 }
 0xc5b   : > { %v2642_v14 = vpop.xlane.xlu1 %2641 }
 0xc5c   : > { %6888 = vrcp.f32 %v2642_v14 }
 0xc5f   : > { %v2284_v18 = vpop.permute.xlu1 %2283  ;;  %v2645_v29 = vpop.xlane.xlu0 %2644 }
 0xc60   : > { %v2305_v20 = vcombine.low %v2280_v17, %v2284_v18  ;;  %v2306_v21 = vcombine.high %v2280_v17, %v2284_v18  ;;  %6890 = vrcp.f32 %v2645_v29 }
 0xc62   : > { %v2313_v23 = vrot.slane %v2305_v20, %v7252_v54  ;;  %v2320_v24 = vrot.slane %v2306_v21, %v7252_v54 }
 0xc64   : > { %v2321_v8 = vcombine.low %v2297_v49, %v2313_v23  ;;  %v2322_v26 = vcombine.high %v2297_v49, %v2313_v23  ;;  %v2337_v27 = vcombine.low %v2304_v22, %v2320_v24  ;;  %v2338_v28 = vcombine.high %v2304_v22, %v2320_v24 }
 0xc65   : > { %v6887_v51 = vpop.eup %6886 }
 0xc66   : > { %v2329_v31 = vrot.slane %v2321_v8, %v7254_v61  ;;  %v2336_v32 = vrot.slane %v2322_v26, %v7254_v61  ;;  %v2345_v33 = vrot.slane %v2337_v27, %v7254_v61  ;;  %v2352_v34 = vrot.slane %v2338_v28, %v7254_v61 }
 0xc67   : > { %v2653_v47 = vmul.f32 %v6887_v51, %v7533_v2 }
 0xc68   : > { %v2357_v35 = vcombine.low %v2329_v31, %v2336_v32  ;;  %v6119_v36 = vcombine.high %v2329_v31, %v2336_v32  ;;  %v2373_v37 = vcombine.low %v2345_v33, %v2352_v34  ;;  %v6120_v38 = vcombine.high %v2345_v33, %v2352_v34 }
 0xc69   : > { %v6889_v57 = vpop.eup %6888  ;;  %v2657_v12 = vpack.c.bf16 %v2653_v47, %v2653_v47 }
 0xc6a   : > { %v2364_v39 = vrot.slane %v2357_v35, %v7252_v54  ;;  %v2372_v40 = vrot.slane %v6119_v36, %v7252_v54  ;;  %v2380_v41 = vrot.slane %v2373_v37, %v7252_v54  ;;  %v2388_v42 = vrot.slane %v6120_v38, %v7252_v54 }
 0xc6b   : > { %v2654_v48 = vmul.f32 %v6889_v57, %v7537_v3 }
 0xc6c   : > { %v2389_v43 = vcombine.low %v2364_v39, %v2372_v40  ;;  %v2405_v45 = vcombine.low %v2380_v41, %v2388_v42  ;;  %v2390_v46 = vcombine.high %v2364_v39, %v2372_v40  ;;  %v2406_v50 = vcombine.high %v2380_v41, %v2388_v42 }
 0xc6d   : > { %v6891_v11 = vpop.eup %6890  ;;  %v2658_v13 = vpack.c.bf16 %v2654_v48, %v2654_v48 }
 0xc6e   : > { %v2397_v52 = vrot.slane %v2389_v43, %v7254_v61  ;;  %v2413_v53 = vrot.slane %v2405_v45, %v7254_v61  ;;  %v2404_v55 = vrot.slane %v2390_v46, %v7254_v61  ;;  %v2420_v56 = vrot.slane %v2406_v50, %v7254_v61  ;;  %v6826_v50 = vld [vmem:[%s8211_s10 + $0x8] sm:$0xff]  }
 0xc6f   : > { %v2655_v14 = vmul.f32 %v6891_v11, %v7541_v4 }
 0xc70   : > { %v2421_v58 = vcombine.low %v2397_v52, %v2413_v53  ;;  %v2422_v59 = vcombine.high %v2397_v52, %v2413_v53  ;;  %v2423_v63 = vcombine.low %v2404_v55, %v2420_v56  ;;  %v2424_v19 = vcombine.high %v2404_v55, %v2420_v56 }
 0xc71   : > { %v2659_v15 = vpack.c.bf16 %v2655_v14, %v2655_v14 }
 0xc72   : > { %v2425_v0 = vpack.c.bf16 %v2421_v58, %v2421_v58  ;;  %v2426_v1 = vpack.c.bf16 %v2422_v59, %v2422_v59  ;;  %v2427_v60 = vpack.c.bf16 %v2423_v63, %v2423_v63  ;;  %v2428_v62 = vpack.c.bf16 %v2424_v19, %v2424_v19  ;;  %v6827_v19 = vld [vmem:[%s8211_s10] sm:$0xff]  }
 0xc74   : > { %v2665_v6 = vsel %vm1448_vm6, %v2425_v0, 0  ;;  %v2711_v9 = vsel %vm1448_vm6, %v2426_v1, 0  ;;  %v2757_v2 = vsel %vm1448_vm6, %v2427_v60, 0  ;;  %v2803_v3 = vsel %vm1448_vm6, %v2428_v62, 0 }
 0xc75   : > { %6521 = vmatpush3.bf16.msra.mxu0 %v2665_v6  ;;  %6527 = vmatpush3.bf16.msra.mxu1 %v2711_v9 }
 0xc76   : > { %6532 = vmatprep.subr.bf16.mxu0 %v7013_v5  ;;  %6538 = vmatprep.subr.bf16.mxu1 %v7013_v5 }
 0xc78   : > { %6523 = vmatmul.mubr.msk.bf16.vlgmr.msra.gmra.mxu0 %vm1208_vm5, %v2657_v12  ;;  %6529 = vmatmul.mubr.msk.bf16.vlgmr.msra.gmra.mxu1 %vm1208_vm5, %v2658_v13 }
 0xc79   : > { %6533 = vmatpush3.bf16.msra.mxu0 %v2757_v2  ;;  %6539 = vmatpush3.bf16.msra.mxu1 %v2803_v3 }
 0xc7a   : > { %6534 = vmatprep.mubr.msk.bf16.mxu0 %vm7014_vm1, %v7013_v5  ;;  %6540 = vmatprep.mubr.msk.bf16.mxu1 %vm7014_vm1, %v7013_v5 }
 0xc7b   : > { %6544 = vmatprep.subr.bf16.mxu0 %v7013_v5  ;;  %6552 = vmatprep.subr.bf16.mxu1 %v7013_v5 }
 0xc80   : > { %6535 = vmatmul.mubr.msk.bf16.vlgmr.msra.gmra.mxu0 %vm1208_vm5, %v2659_v15 }
 0xc81   : > { %6548 = vmatprep.mubr.msk.bf16.mxu0 %vm7014_vm1, %v7013_v5  ;;  %6545 = vmatpush3.bf16.msra.mxu0 %v6826_v50  ;;  %v6837_v50 = vld [vmem:[%s8213_s12] sm:$0xff]  }
 0xc82   : > { %6546 = vmatprep.subr.bf16.mxu0 %v7013_v5 }
 0xc85   : > { %6547 = vmatpush3.bf16.msra.mxu0 %v6827_v19 }
 0xc86   : > { %6560 = vmatprep.subr.bf16.mxu0 %v7013_v5 }
 0xc90   : > { %v2648_v16 = vpop.xlane.xlu1 %2647 }
 0xc91   : > { %6892 = vrcp.f32 %v2648_v16 }
 0xc9e   : > { %v6893_v17 = vpop.eup %6892 }
 0xc9f   : > { %v2656_v18 = vmul.f32 %v6893_v17, %v7547_v10 }
 0xca1   : > { %v2660_v20 = vpack.c.bf16 %v2656_v18, %v2656_v18 }
 0xca3   : > { %6541 = vmatmul.mubr.msk.bf16.vlgmr.msra.gmra.mxu1 %vm1208_vm5, %v2660_v20 }
 0xca4   : > { %6556 = vmatprep.mubr.msk.bf16.mxu1 %vm7014_vm1, %v7013_v5 }
 0xd38   : > { %v2701_v4 = vpop.f32.mrf.mxu0  ;;  %v2747_v21 = vpop.f32.mrf.mxu1 }
 0xd3a   : > { %v6524_v49 = vpop.f32.mrf.mxu0  ;;  %v6530_v22 = vpop.f32.mrf.mxu1 }
 0xd3c   : > { %v2704_v23 = vpop.f32.mrf.mxu0  ;;  %v2750_v24 = vpop.f32.mrf.mxu1 }
 0xd3e   : > { %v6525_v8 = vpop.f32.mrf.mxu0  ;;  %v6531_v26 = vpop.f32.mrf.mxu1 }
 0xd40   : > { %v2793_v27 = vpop.f32.mrf.mxu0 }
 0xd41   : > { %v2845_v32 = vcombine.low %v2701_v4, %v2793_v27  ;;  %v2846_v10 = vcombine.high %v2701_v4, %v2793_v27 }
 0xd42   : > { %v6536_v28 = vpop.f32.mrf.mxu0 }
 0xd43   : > { %v2853_v37 = vrot.slane %v2845_v32, %v7252_v54  ;;  %v2860_v38 = vrot.slane %v2846_v10, %v7252_v54  ;;  %v6829_v32 = vld [vmem:[%s8212_s11] sm:$0xff]  }
 0xd44   : > { %v2796_v29 = vpop.f32.mrf.mxu0 }
 0xd46   : > { %v6537_v31 = vpop.f32.mrf.mxu0 }
 0xd47   : > { %v6828_v31 = vld [vmem:[%s8212_s11 + $0x8] sm:$0xff]  }
 0xd48   : > { %6553 = vmatpush3.bf16.msra.mxu1 %v6828_v31 }
 0xd49   : > { %6554 = vmatprep.subr.bf16.mxu1 %v7013_v5 }
 0xd4c   : > { %6555 = vmatpush3.bf16.msra.mxu1 %v6829_v32 }
 0xd4d   : > { %6580 = vmatprep.subr.bf16.mxu1 %v7013_v5 }
 0xd63   : > { %v2839_v33 = vpop.f32.mrf.mxu1 }
 0xd64   : > { %v2861_v34 = vcombine.low %v2747_v21, %v2839_v33  ;;  %v2862_v35 = vcombine.high %v2747_v21, %v2839_v33 }
 0xd65   : > { %v6542_v36 = vpop.f32.mrf.mxu1 }
 0xd66   : > { %v2869_v39 = vrot.slane %v2861_v34, %v7252_v54  ;;  %v2876_v40 = vrot.slane %v2862_v35, %v7252_v54  ;;  %v6134_v35 = vld [vmem:[%s8206_s5 + $0x2] ss:$0 sm:$0xff] }
 0xd67   : > { %v2842_v41 = vpop.f32.mrf.mxu1 }
 0xd68   : > { %v2877_v42 = vcombine.low %v2853_v37, %v2869_v39  ;;  %v2878_v43 = vcombine.high %v2853_v37, %v2869_v39  ;;  %v2893_v45 = vcombine.low %v2860_v38, %v2876_v40  ;;  %v2894_v46 = vcombine.high %v2860_v38, %v2876_v40  ;;  %v6830_v39 = vld [vmem:[%s8213_s12 + $0x38] sm:$0xff]   ;;  %v6831_v40 = vld [vmem:[%s8213_s12 + $0x30] sm:$0xff]   ;;  %v6832_v41 = vld [vmem:[%s8213_s12 + $0x28] sm:$0xff]  }
 0xd69   : > { %v6543_v51 = vpop.f32.mrf.mxu1 }
 0xd6a   : > { %v2885_v52 = vrot.slane %v2877_v42, %v7254_v61  ;;  %v2892_v53 = vrot.slane %v2878_v43, %v7254_v61  ;;  %v2901_v55 = vrot.slane %v2893_v45, %v7254_v61  ;;  %v2908_v56 = vrot.slane %v2894_v46, %v7254_v61  ;;  %v6833_v42 = vld [vmem:[%s8213_s12 + $0x20] sm:$0xff]   ;;  %v6834_v43 = vld [vmem:[%s8213_s12 + $0x18] sm:$0xff]   ;;  %v6835_v45 = vld [vmem:[%s8213_s12 + $0x10] sm:$0xff]  }
 0xd6b   : > { %v6836_v46 = vld [vmem:[%s8213_s12 + $0x8] sm:$0xff]  }
 0xd6c   : > { %v2913_v57 = vcombine.low %v2885_v52, %v2892_v53  ;;  %v6129_v58 = vcombine.high %v2885_v52, %v2892_v53  ;;  %v2929_v59 = vcombine.low %v2901_v55, %v2908_v56  ;;  %v6130_v63 = vcombine.high %v2901_v55, %v2908_v56 }
 0xd6e   : > { %v2920_v0 = vrot.slane %v2913_v57, %v7252_v54  ;;  %v2928_v1 = vrot.slane %v6129_v58, %v7252_v54  ;;  %v2936_v47 = vrot.slane %v2929_v59, %v7252_v54  ;;  %v2944_v48 = vrot.slane %v6130_v63, %v7252_v54 }
 0xd70   : > { %v2946_v6 = vcombine.high %v2920_v0, %v2928_v1  ;;  %v2962_v9 = vcombine.high %v2936_v47, %v2944_v48  ;;  %v2945_v60 = vcombine.low %v2920_v0, %v2928_v1  ;;  %v2961_v62 = vcombine.low %v2936_v47, %v2944_v48 }
 0xd72   : > { %v2960_v11 = vrot.slane %v2946_v6, %v7254_v61  ;;  %v2976_v12 = vrot.slane %v2962_v9, %v7254_v61  ;;  %v2953_v13 = vrot.slane %v2945_v60, %v7254_v61  ;;  %v2969_v2 = vrot.slane %v2961_v62, %v7254_v61  ;;  %v6838_v62 = vld [vmem:[%s8207_s6 + $0x18] sm:$0xff]  }
 0xd74   : > { %v2979_v3 = vcombine.low %v2960_v11, %v2976_v12  ;;  %v2978_v14 = vcombine.high %v2953_v13, %v2969_v2  ;;  %v2977_v15 = vcombine.low %v2953_v13, %v2969_v2  ;;  %v2980_v16 = vcombine.high %v2960_v11, %v2976_v12  ;;  %v6839_v11 = vld [vmem:[%s8207_s6 + $0x10] sm:$0xff]  }
 0xd76   : > { %2986 = vrot.lane.b32.xlu1 %v2979_v3, %s8257_s22  ;;  %2982 = vrot.lane.b32.xlu0 %v2978_v14, %s8258_s28  ;;  %v6147_v14 = vld [vmem:[%s8206_s5 + $0x3] ss:$0 sm:$0xff] }
 0xd7a   : > { %2990 = vrot.lane.b32.xlu0 %v2980_v16, %s8259_s0 }
 0xde8   : > { %v2983_v17 = vpop.permute.xlu0 %2982  ;;  %v2987_v18 = vpop.permute.xlu1 %2986 }
 0xde9   : > { %v2993_v20 = vsel %vm1208_vm5, %v2977_v15, %v2983_v17 }
 0xdea   : > { %v2994_v21 = vsel %vm1779_vm7, %v2993_v20, %v2987_v18  ;;  %v6945_v18 = vld [vmem:[%s8205_s4 + $0x18] sm:$0xff]  ;;  %v6946_v20 = vld [vmem:[%s8205_s4 + $0x10] sm:$0xff] }
 0xdec   : > { %v2991_v4 = vpop.permute.xlu0 %2990 }
 0xded   : > { %v2995_v49 = vsel %vm1781_vm8, %v2994_v21, %v2991_v4  ;;  %v6947_v4 = vld [vmem:[%s8205_s4 + $0x8] sm:$0xff]  ;;  %v6948_v21 = vld [vmem:[%s8205_s4] sm:$0xff] }
 0xdee   : > { %v2996_v22 = vpack.c.bf16 %v2995_v49, %v2995_v49 }
 0xdf0   : > { %6549 = vmatmul.mubr.msk.bf16.vlgmr.msra.gmra.mxu0 %vm502_vm0, %v2996_v22 }
 0xdf1   : > { %6576 = vmatprep.mubr.msk.bf16.mxu0 %vm7014_vm1, %v7013_v5  ;;  %6561 = vmatpush3.bf16.msra.mxu0 %v6830_v39 }
 0xdf2   : > { %6562 = vmatprep.subr.bf16.mxu0 %v7013_v5 }
 0xdf5   : > { %6563 = vmatpush3.bf16.msra.mxu0 %v6831_v40 }
 0xdf6   : > { %6564 = vmatprep.subr.bf16.mxu0 %v7013_v5 }
 0xdf9   : > { %6565 = vmatpush3.bf16.msra.mxu0 %v6832_v41 }
 0xdfa   : > { %6566 = vmatprep.subr.bf16.mxu0 %v7013_v5 }
 0xdfd   : > { %6567 = vmatpush3.bf16.msra.mxu0 %v6833_v42 }
 0xdfe   : > { %6568 = vmatprep.subr.bf16.mxu0 %v7013_v5 }
 0xe01   : > { %6569 = vmatpush3.bf16.msra.mxu0 %v6834_v43 }
 0xe02   : > { %6570 = vmatprep.subr.bf16.mxu0 %v7013_v5 }
 0xe05   : > { %6571 = vmatpush3.bf16.msra.mxu0 %v6835_v45 }
 0xe06   : > { %6572 = vmatprep.subr.bf16.mxu0 %v7013_v5 }
 0xe09   : > { %6573 = vmatpush3.bf16.msra.mxu0 %v6836_v46 }
 0xe0a   : > { %6574 = vmatprep.subr.bf16.mxu0 %v7013_v5 }
 0xe0d   : > { %6575 = vmatpush3.bf16.msra.mxu0 %v6837_v50 }
 0xe0e   : > { %6616 = vmatprep.subr.bf16.mxu0 %v7013_v5 }
 0xeb0   : > { %v3046_v23 = vpop.f32.mrf.mxu0 }
 0xeb1   : > { %v7625_v24 = vadd.f32 %v3046_v23, %v7434_v25 }
 0xeb2   : > { %v6550_v8 = vpop.f32.mrf.mxu0 }
 0xeb3   : > { %v3054_v26 = vmul.f32 %v7625_v24, %v7625_v24 }
 0xeb4   : > { %v3049_v27 = vpop.f32.mrf.mxu0 }
 0xeb5   : > { %v3055_v28 = vsel %vm502_vm0, %v3054_v26, 0.0 }
 0xeb6   : > { %3056 = vadd.xlane.f32.xlu1 %v3055_v28  ;;  %v6551_v29 = vpop.f32.mrf.mxu0 }
 0xeb7   : > { %v6949_v29 = vld [vmem:[%s8204_s3] sm:$0xff] }
 0xf3f   : > { %v3057_v25 = vpop.xlane.xlu1 %3056 }
 0xf40   : > { %v3058_v10 = vmul.f32 0.03125, %v3057_v25 }
 0xf42   : > { %v3059_v33 = vadd.f32 1e-06, %v3058_v10 }
 0xf44   : > { %6894 = vrsqrt.f32 %v3059_v33 }
 0xf51   : > { %v6895_v34 = vpop.eup %6894 }
 0xf52   : > { %v3061_v36 = vmul.f32 %v6895_v34, %v7625_v24 }
 0xf54   : > { %v3066_v37 = vmul.f32 %v6134_v35, %v3061_v36 }
 0xf56   : > { %v3067_v38 = vpack.c.bf16 %v3066_v37, %v3066_v37  ;;  %v6950_v37 = vld [vmem:[%s8203_s2] sm:$0xff] }
 0xf58   : > { %6557 = vmatmul.mubr.msk.bf16.vlgmr.msra.gmra.mxu1 %vm502_vm0, %v3067_v38 }
 0xf59   : > { %6584 = vmatprep.mubr.msk.bf16.mxu1 %vm7014_vm1, %v7013_v5  ;;  %6581 = vmatpush3.bf16.msra.mxu1 %v6838_v62 }
 0xf5a   : > { %6582 = vmatprep.subr.bf16.mxu1 %v7013_v5 }
 0xf5d   : > { %6583 = vmatpush3.bf16.msra.mxu1 %v6839_v11 }
 0xf5e   : > { %6588 = vmatprep.subr.mxu1 %v7013_v5 }
0x1018   : > { %v3121_v51 = vpop.f32.mrf.mxu1 }
0x1019   : > { %v6138_v52 = vmul.f32 -1.442695, %v3121_v51 }
0x101a   : > { %v6558_v53 = vpop.f32.mrf.mxu1 }
0x101b   : > { %6896 = vpow2.f32 %v6138_v52 }
0x101c   : > { %v3124_v55 = vpop.f32.mrf.mxu1 }
0x101e   : > { %v6559_v56 = vpop.f32.mrf.mxu1 }
0x1028   : > { %v6897_v57 = vpop.eup %6896 }
0x1029   : > { %v3130_v58 = vadd.f32 1.0, %v6897_v57 }
0x102b   : > { %6898 = vrcp.f32 %v3130_v58 }
0x1038   : > { %v6899_v59 = vpop.eup %6898 }
0x1039   : > { %v3133_v63 = vmul.f32 %v6899_v59, %v3121_v51 }
0x103b   : > { %v3134_v19 = vpack.c.bf16 %v3133_v63, %v3133_v63 }
0x103d   : > { %6577 = vmatmul.mubr.bf16.vlgmr.msra.gmra.mxu0 %v3134_v19 }
0x103e   : > { %6618 = vmatprep.mubr.msk.bf16.mxu0 %vm7014_vm1, %v7013_v5 }
0x10fd   : > { %v3233_v0 = vpop.f32.mrf.mxu0 }
0x10fe   : > { %v7680_v1 = vadd.f32 %v3233_v0, %v7625_v24 }
0x10ff   : > { %v6578_v47 = vpop.f32.mrf.mxu0 }
0x1100   : > { %v3241_v48 = vmul.f32 %v7680_v1, %v7680_v1 }
0x1101   : > { %v3236_v6 = vpop.f32.mrf.mxu0 }
0x1102   : > { %v3242_v9 = vsel %vm502_vm0, %v3241_v48, 0.0 }
0x1103   : > { %3243 = vadd.xlane.f32.xlu0 %v3242_v9  ;;  %v6579_v60 = vpop.f32.mrf.mxu0 }
0x118c   : > { %v3244_v12 = vpop.xlane.xlu0 %3243 }
0x118d   : > { %v3245_v13 = vmul.f32 0.03125, %v3244_v12 }
0x118f   : > { %v3246_v2 = vadd.f32 1e-06, %v3245_v13 }
0x1191   : > { %6900 = vrsqrt.f32 %v3246_v2 }
0x119e   : > { %v6901_v3 = vpop.eup %6900 }
0x119f   : > { %v3248_v15 = vmul.f32 %v6901_v3, %v7680_v1 }
0x11a1   : > { %v3253_v16 = vmul.f32 %v6147_v14, %v3248_v15 }
0x11a3   : > { %v3254_v17 = vpack.c.bf16 %v3253_v16, %v3253_v16 }
0x11a5   : > { %6585 = vmatmul.mubr.msk.bf16.vlgmr.msra.gmra.mxu1 %vm502_vm0, %v3254_v17 }
0x11a6   : > { %6589 = vmatpush3.msra.mxu1 %v6945_v18  ;;  %6596 = vmatprep.mubr.msk.f32.mxu1 %vm7014_vm1, %v7013_v5 }
0x11a7   : > { %6590 = vmatprep.subr.mxu1 %v7013_v5 }
0x11a8   : > { %6591 = vmatpush3.msra.mxu1 %v6946_v20 }
0x11a9   : > { %6592 = vmatprep.subr.mxu1 %v7013_v5 }
0x11aa   : > { %6593 = vmatpush3.msra.mxu1 %v6947_v4 }
0x11ab   : > { %6594 = vmatprep.subr.mxu1 %v7013_v5 }
0x11ac   : > { %6595 = vmatpush3.msra.mxu1 %v6948_v21 }
0x11ad   : > { %6599 = vmatprep.subr.mxu1 %v7013_v5 }
0x1265   : > { %v7716_v49 = vpop.f32.mrf.mxu1 }
0x1266   : > { %3392 = vrot.lane.b32.xlu0 %v7716_v49, %s8254_s21  ;;  %6597 = vmatmul.mubr.msk.f32.vlgmr.msra.gmra.mxu1 %vm502_vm0, %v7716_v49  ;;  %v3391_v25 = vmul.f32 %v7716_v49, %v7226_v30  ;;  %v3315_v38 = vmul.f32 %v6950_v37, %v7716_v49 }
0x1267   : > { %v6586_v22 = vpop.f32.mrf.mxu1  ;;  %6600 = vmatpush3.msra.mxu1 %v6945_v18  ;;  %6607 = vmatprep.mubr.msk.f32.mxu1 %vm7014_vm1, %v7013_v5 }
0x1268   : > { %6601 = vmatprep.subr.mxu1 %v7013_v5 }
0x1269   : > { %v3312_v23 = vpop.f32.mrf.mxu1  ;;  %6602 = vmatpush3.msra.mxu1 %v6946_v20 }
0x126a   : > { %6603 = vmatprep.subr.mxu1 %v7013_v5 }
0x126b   : > { %v6587_v24 = vpop.f32.mrf.mxu1  ;;  %6604 = vmatpush3.msra.mxu1 %v6947_v4 }
0x126c   : > { %6605 = vmatprep.subr.mxu1 %v7013_v5 }
0x126d   : > { %6606 = vmatpush3.msra.mxu1 %v6948_v21 }
0x126e   : > { %6610 = vmatprep.subr.bf16.mxu1 %v7013_v5 }
0x12d8   : > { %v3393_v8 = vpop.permute.xlu0 %3392 }
0x12d9   : > { %6608 = vmatmul.mubr.msk.f32.vlgmr.msra.gmra.mxu1 %vm502_vm0, %v3393_v8 }
0x12da   : > { %6612 = vmatprep.mubr.msk.bf16.mxu1 %vm7014_vm1, %v7013_v5 }
0x1326   : > { %v3385_v26 = vpop.f32.mrf.mxu1 }
0x1327   : > { %v3389_v34 = vmul.f32 %v6949_v29, %v3385_v26 }
0x1328   : > { %v6598_v27 = vpop.f32.mrf.mxu1 }
0x1329   : > { %v3390_v30 = vadd.f32 %v3389_v34, %v3315_v38 }
0x1399   : > { %v3462_v28 = vpop.f32.mrf.mxu1 }
0x139a   : > { %v3466_v31 = vmul.f32 %v6949_v29, %v3462_v28 }
0x139b   : > { %v6609_v32 = vpop.f32.mrf.mxu1 }
0x139c   : > { %3468 = vrot.lane.b32.xlu1 %v3466_v31, %s8260_s19  ;;  %s7026_s19 = smov [#allocation2]  }
0x139d   : > { %s6955_s24 = sshll.u32 %s7026_s19, 4  ;;  %s6956_s24 = int_to_ptr.vmem [resolvable:$false] %s6955_s24 }
0x140e   : > { %v3469_v10 = vpop.permute.xlu1 %3468 }
0x140f   : > { %v3471_v33 = vadd.f32 %v3469_v10, %v3391_v25 }
0x1411   : > { %3630 = vrot.lane.b32.xlu0 %v3471_v33, %s8255_s27  ;;  %3628 = vrot.lane.b32.xlu1 %v3471_v33, %s8253_s18 }
0x1415   : > { %3634 = vrot.lane.b32.xlu0 %v3471_v33, %s8254_s21  ;;  %3632 = vrot.lane.b32.xlu1 %v3471_v33, %s8256_s15 }
0x1483   : > { %v3631_v35 = vpop.permute.xlu0 %3630  ;;  %v3629_v36 = vpop.permute.xlu1 %3628 }
0x1484   : > { %3638 = vrot.lane.b32.xlu0 %v3631_v35, %s8254_s21  ;;  %3636 = vrot.lane.b32.xlu1 %v3629_v36, %s8254_s21 }
0x1487   : > { %v3633_v39 = vpop.permute.xlu1 %3632  ;;  %v3635_v40 = vpop.permute.xlu0 %3634 }
0x1488   : > { %3478 = vrot.lane.b32.xlu0 %v3390_v30, %s8253_s18  ;;  %3640 = vrot.lane.b32.xlu1 %v3633_v39, %s8254_s21 }
0x148c   : > { %3484 = vrot.lane.b32.xlu0 %v3390_v30, %s8256_s15  ;;  %3481 = vrot.lane.b32.xlu1 %v3390_v30, %s8255_s27 }
0x1490   : > { %3786 = vrot.lane.b32.xlu0 %v7716_v49, %s8253_s18  ;;  %3788 = vrot.lane.b32.xlu1 %v7716_v49, %s8255_s27 }
0x1494   : > { %3790 = vrot.lane.b32.xlu1 %v7716_v49, %s8256_s15 }
0x14f6   : > { %v3639_v41 = vpop.permute.xlu0 %3638  ;;  %v3637_v42 = vpop.permute.xlu1 %3636 }
0x14f7   : > { %v3646_v43 = vcombine.low %v3635_v40, %v3639_v41  ;;  %v3647_v45 = vcombine.high %v3635_v40, %v3639_v41 }
0x14f9   : > { %v3654_v53 = vrot.slane %v3646_v43, %v7252_v54  ;;  %v3661_v55 = vrot.slane %v3647_v45, %v7252_v54 }
0x14fa   : > { %v3479_v46 = vpop.permute.xlu0 %3478  ;;  %v3641_v50 = vpop.permute.xlu1 %3640 }
0x14fb   : > { %v3662_v51 = vcombine.low %v3637_v42, %v3641_v50  ;;  %v3663_v52 = vcombine.high %v3637_v42, %v3641_v50 }
0x14fd   : > { %v3670_v56 = vrot.slane %v3662_v51, %v7252_v54  ;;  %v3677_v57 = vrot.slane %v3663_v52, %v7252_v54 }
0x14fe   : > { %v3485_v58 = vpop.permute.xlu0 %3484  ;;  %v3482_v59 = vpop.permute.xlu1 %3481 }
0x14ff   : > { %v3678_v63 = vcombine.low %v3654_v53, %v3670_v56  ;;  %v3679_v19 = vcombine.high %v3654_v53, %v3670_v56  ;;  %v3694_v0 = vcombine.low %v3661_v55, %v3677_v57  ;;  %v3695_v47 = vcombine.high %v3661_v55, %v3677_v57 }
0x1500   : > { %v3503_v48 = vcombine.low %v3479_v46, %v3485_v58  ;;  %v3504_v6 = vcombine.high %v3479_v46, %v3485_v58  ;;  %v3487_v9 = vcombine.low %v3390_v30, %v3482_v59  ;;  %v3488_v60 = vcombine.high %v3390_v30, %v3482_v59 }
0x1501   : > { %v3686_v62 = vrot.slane %v3678_v63, %v7254_v61  ;;  %v3693_v11 = vrot.slane %v3679_v19, %v7254_v61  ;;  %v3702_v12 = vrot.slane %v3694_v0, %v7254_v61  ;;  %v3709_v13 = vrot.slane %v3695_v47, %v7254_v61 }
0x1502   : > { %v3511_v2 = vrot.slane %v3503_v48, %v7252_v54  ;;  %v3518_v3 = vrot.slane %v3504_v6, %v7252_v54  ;;  %v3495_v14 = vrot.slane %v3487_v9, %v7252_v54  ;;  %v3502_v15 = vrot.slane %v3488_v60, %v7252_v54  ;;  %v3789_v44 = vpop.permute.xlu1 %3788 }
0x1503   : > { %v3714_v16 = vcombine.low %v3686_v62, %v3693_v11  ;;  %v6163_v17 = vcombine.high %v3686_v62, %v3693_v11  ;;  %v3730_v18 = vcombine.low %v3702_v12, %v3709_v13  ;;  %v6164_v20 = vcombine.high %v3702_v12, %v3709_v13 }
0x1504   : > { %v3519_v4 = vcombine.low %v3495_v14, %v3511_v2  ;;  %v3520_v21 = vcombine.high %v3495_v14, %v3511_v2  ;;  %v3535_v22 = vcombine.low %v3502_v15, %v3518_v3  ;;  %v3536_v23 = vcombine.high %v3502_v15, %v3518_v3 }
0x1505   : > { %v3721_v24 = vrot.slane %v3714_v16, %v7252_v54  ;;  %v3729_v8 = vrot.slane %v6163_v17, %v7252_v54  ;;  %v3737_v26 = vrot.slane %v3730_v18, %v7252_v54  ;;  %v3745_v27 = vrot.slane %v6164_v20, %v7252_v54 }
0x1506   : > { %v3527_v28 = vrot.slane %v3519_v4, %v7254_v61  ;;  %v3534_v29 = vrot.slane %v3520_v21, %v7254_v61  ;;  %v3543_v31 = vrot.slane %v3535_v22, %v7254_v61  ;;  %v3550_v32 = vrot.slane %v3536_v23, %v7254_v61 }
0x1507   : > { %v3746_v25 = vcombine.low %v3721_v24, %v3729_v8  ;;  %v3762_v10 = vcombine.low %v3737_v26, %v3745_v27  ;;  %v3747_v33 = vcombine.high %v3721_v24, %v3729_v8  ;;  %v3763_v34 = vcombine.high %v3737_v26, %v3745_v27 }
0x1508   : > { %v3555_v35 = vcombine.low %v3527_v28, %v3534_v29  ;;  %v6161_v36 = vcombine.high %v3527_v28, %v3534_v29  ;;  %v3571_v37 = vcombine.low %v3543_v31, %v3550_v32  ;;  %v6162_v38 = vcombine.high %v3543_v31, %v3550_v32 }
0x1509   : > { %v3754_v30 = vrot.slane %v3746_v25, %v7254_v61  ;;  %v3770_v39 = vrot.slane %v3762_v10, %v7254_v61  ;;  %v3761_v50 = vrot.slane %v3747_v33, %v7254_v61  ;;  %v3777_v51 = vrot.slane %v3763_v34, %v7254_v61 }
0x150a   : > { %v3562_v40 = vrot.slane %v3555_v35, %v7252_v54  ;;  %v3570_v41 = vrot.slane %v6161_v36, %v7252_v54  ;;  %v3578_v42 = vrot.slane %v3571_v37, %v7252_v54  ;;  %v3586_v43 = vrot.slane %v6162_v38, %v7252_v54 }
0x150b   : > { %v3778_v45 = vcombine.low %v3754_v30, %v3770_v39  ;;  %v3779_v46 = vcombine.high %v3754_v30, %v3770_v39  ;;  %v3780_v19 = vcombine.low %v3761_v50, %v3777_v51  ;;  %v3781_v0 = vcombine.high %v3761_v50, %v3777_v51 }
0x150c   : > { %v3587_v52 = vcombine.low %v3562_v40, %v3570_v41  ;;  %v3603_v53 = vcombine.low %v3578_v42, %v3586_v43  ;;  %v3588_v47 = vcombine.high %v3562_v40, %v3570_v41  ;;  %v3604_v48 = vcombine.high %v3578_v42, %v3586_v43  ;;  %v3787_v41 = vpop.permute.xlu0 %3786  ;;  %v3791_v42 = vpop.permute.xlu1 %3790 }
0x150d   : > { %v3782_v55 = vpack.c.bf16 %v3778_v45, %v3778_v45  ;;  %v3783_v56 = vpack.c.bf16 %v3779_v46, %v3779_v46  ;;  %v3784_v60 = vpack.c.bf16 %v3780_v19, %v3780_v19  ;;  %v3785_v62 = vpack.c.bf16 %v3781_v0, %v3781_v0 }
0x150e   : > { %v3595_v57 = vrot.slane %v3587_v52, %v7254_v61  ;;  %v3611_v58 = vrot.slane %v3603_v53, %v7254_v61  ;;  %v3602_v13 = vrot.slane %v3588_v47, %v7254_v61  ;;  %v3618_v2 = vrot.slane %v3604_v48, %v7254_v61 }
0x150f   : > { %v3948_v59 = vsel %vm1208_vm5, %v3782_v55, 0  ;;  %v3994_v63 = vsel %vm1208_vm5, %v3783_v56, 0  ;;  %v4040_v3 = vsel %vm1208_vm5, %v3784_v60, 0  ;;  %v4086_v14 = vsel %vm1208_vm5, %v3785_v62, 0 }
0x1510   : > { %6611 = vmatpush3.bf16.xpose.msra.mxu1 %v3948_v59  ;;  %6617 = vmatpush3.bf16.xpose.msra.mxu0 %v3994_v63  ;;  %v3619_v6 = vcombine.low %v3595_v57, %v3611_v58  ;;  %v3620_v9 = vcombine.high %v3595_v57, %v3611_v58  ;;  %v3621_v15 = vcombine.low %v3602_v13, %v3618_v2 }
0x1511   : > { %6622 = vmatprep.subr.bf16.mxu1 %v7013_v5  ;;  %6628 = vmatprep.subr.bf16.mxu0 %v7013_v5  ;;  %v3622_v16 = vcombine.high %v3602_v13, %v3618_v2 }
0x1512   : > { %v3623_v11 = vpack.c.bf16 %v3619_v6, %v3619_v6  ;;  %v3624_v12 = vpack.c.bf16 %v3620_v9, %v3620_v9  ;;  %v3625_v17 = vpack.c.bf16 %v3621_v15, %v3621_v15 }
0x1513   : > { %v3626_v18 = vpack.c.bf16 %v3622_v16, %v3622_v16 }
0x1517   : > { %6613 = vmatmul.mubr.msk.bf16.vlgmr.msra.gmra.mxu1 %vm1208_vm5, %v3623_v11  ;;  %6619 = vmatmul.mubr.msk.bf16.vlgmr.msra.gmra.mxu0 %vm1208_vm5, %v3624_v12 }
0x1518   : > { %6623 = vmatpush3.bf16.xpose.msra.mxu1 %v4040_v3  ;;  %6629 = vmatpush3.bf16.xpose.msra.mxu0 %v4086_v14 }
0x1519   : > { %6624 = vmatprep.mubr.msk.bf16.mxu1 %vm7014_vm1, %v7013_v5  ;;  %6630 = vmatprep.mubr.msk.bf16.mxu0 %vm7014_vm1, %v7013_v5 }
0x151a   : > { %6634 = vmatprep.subr.bf16.mxu1 %v7013_v5  ;;  %6640 = vmatprep.subr.bf16.mxu0 %v7013_v5 }
0x151f   : > { %6625 = vmatmul.mubr.msk.bf16.vlgmr.msra.gmra.mxu1 %vm1208_vm5, %v3625_v17  ;;  %6631 = vmatmul.mubr.msk.bf16.vlgmr.msra.gmra.mxu0 %vm1208_vm5, %v3626_v18 }
0x1520   : > { %6636 = vmatprep.mubr.msk.bf16.mxu1 %vm7014_vm1, %v7013_v5  ;;  %6642 = vmatprep.mubr.msk.bf16.mxu0 %vm7014_vm1, %v7013_v5 }
0x15d7   : > { %v3984_v20 = vpop.f32.mrf.mxu1  ;;  %v4030_v4 = vpop.f32.mrf.mxu0 }
0x15d8   : > { %v4128_v21 = vsel %vm7248_vm4, %v3984_v20, -1e+30  ;;  %v4129_v22 = vsel %vm7248_vm4, %v4030_v4, -1e+30 }
0x15d9   : > { %v6614_v23 = vpop.f32.mrf.mxu1  ;;  %v6620_v24 = vpop.f32.mrf.mxu0  ;;  %v4135_v8 = vsel %vm1208_vm5, %v4129_v22, -inf  ;;  %v4132_v26 = vsel %vm1208_vm5, %v4128_v21, -inf }
0x15da   : > { %4136 = vmax.xlane.f32.xlu0 %v4135_v8  ;;  %4133 = vmax.xlane.f32.xlu1 %v4132_v26 }
0x15db   : > { %v3987_v27 = vpop.f32.mrf.mxu1  ;;  %v4033_v28 = vpop.f32.mrf.mxu0 }
0x15dd   : > { %v6615_v29 = vpop.f32.mrf.mxu1  ;;  %v6621_v31 = vpop.f32.mrf.mxu0 }
0x15df   : > { %v4076_v32 = vpop.f32.mrf.mxu1  ;;  %v4122_v25 = vpop.f32.mrf.mxu0 }
0x15e0   : > { %v4130_v10 = vsel %vm7248_vm4, %v4076_v32, -1e+30  ;;  %v4131_v33 = vsel %vm7248_vm4, %v4122_v25, -1e+30 }
0x15e1   : > { %v6626_v34 = vpop.f32.mrf.mxu1  ;;  %v6632_v35 = vpop.f32.mrf.mxu0  ;;  %v4141_v36 = vsel %vm1208_vm5, %v4131_v33, -inf  ;;  %v4138_v37 = vsel %vm1208_vm5, %v4130_v10, -inf }
0x15e2   : > { %4142 = vmax.xlane.f32.xlu1 %v4141_v36  ;;  %4139 = vmax.xlane.f32.xlu0 %v4138_v37 }
0x15e3   : > { %v4079_v38 = vpop.f32.mrf.mxu1  ;;  %v4125_v30 = vpop.f32.mrf.mxu0 }
0x15e5   : > { %v6627_v39 = vpop.f32.mrf.mxu1  ;;  %v6633_v40 = vpop.f32.mrf.mxu0 }
0x15f3   : > { %3794 = vrot.lane.b32.xlu1 %v3787_v41, %s8261_s1 }
0x15f8   : > { %3792 = vrot.lane.b32.xlu0 %v7716_v49, %s8261_s1 }
0x1663   : > { %v4137_v43 = vpop.xlane.xlu0 %4136  ;;  %v4134_v45 = vpop.xlane.xlu1 %4133 }
0x1664   : > { %v4145_v46 = vsub.f32 %v4129_v22, %v4137_v43  ;;  %v4144_v50 = vsub.f32 %v4128_v21, %v4134_v45 }
0x1666   : > { %v4150_v51 = vmul.f32 1.442695, %v4145_v46  ;;  %v4148_v52 = vmul.f32 1.442695, %v4144_v50 }
0x1668   : > { %6902 = vpow2.f32 %v4150_v51 }
0x1669   : > { %6904 = vpow2.f32 %v4148_v52 }
0x166b   : > { %v4143_v57 = vpop.xlane.xlu1 %4142  ;;  %v4140_v58 = vpop.xlane.xlu0 %4139 }
0x166c   : > { %v4147_v59 = vsub.f32 %v4131_v33, %v4143_v57  ;;  %v4146_v63 = vsub.f32 %v4130_v10, %v4140_v58 }
0x166e   : > { %v4154_v19 = vmul.f32 1.442695, %v4147_v59  ;;  %v4152_v0 = vmul.f32 1.442695, %v4146_v63 }
0x166f   : > { %v3795_v60 = vpop.permute.xlu1 %3794  ;;  %v3793_v62 = vpop.permute.xlu0 %3792 }
0x1670   : > { %6906 = vpow2.f32 %v4154_v19 }
0x1671   : > { %6908 = vpow2.f32 %v4152_v0 }
0x1675   : > { %v7824_v53 = vpop.eup %6902 }
0x1676   : > { %v7826_v55 = vpop.eup %6904  ;;  %v4159_v56 = vsel %vm1208_vm5, %v7824_v53, 0.0 }
0x1677   : > { %4160 = vadd.xlane.f32.xlu1 %v4159_v56  ;;  %v4156_v49 = vsel %vm1208_vm5, %v7826_v55, 0.0 }
0x1678   : > { %4157 = vadd.xlane.f32.xlu0 %v4156_v49 }
0x167d   : > { %v7834_v47 = vpop.eup %6906 }
0x167e   : > { %v7836_v48 = vpop.eup %6908  ;;  %v4165_v6 = vsel %vm1208_vm5, %v7834_v47, 0.0 }
0x167f   : > { %v4162_v9 = vsel %vm1208_vm5, %v7836_v48, 0.0 }
0x1688   : > { %3798 = vrot.lane.b32.xlu1 %v3791_v42, %s8261_s1 }
0x168e   : > { %3796 = vrot.lane.b32.xlu0 %v3789_v44, %s8261_s1  ;;  %s6080_s1 = sshll.u32 %s469_s29, 3 }
0x16ac   : > { %4166 = vadd.xlane.f32.xlu1 %v4165_v6 }
0x16ad   : > { %4163 = vadd.xlane.f32.xlu0 %v4162_v9 }
0x1700   : > { %v4161_v11 = vpop.xlane.xlu1 %4160 }
0x1701   : > { %v4158_v12 = vpop.xlane.xlu0 %4157  ;;  %6910 = vrcp.f32 %v4161_v11 }
0x1702   : > { %6912 = vrcp.f32 %v4158_v12 }
0x1704   : > { %v3799_v13 = vpop.permute.xlu1 %3798 }
0x1705   : > { %v3820_v2 = vcombine.low %v3795_v60, %v3799_v13  ;;  %v3821_v3 = vcombine.high %v3795_v60, %v3799_v13  ;;  %v3797_v14 = vpop.permute.xlu0 %3796 }
0x1706   : > { %v3804_v15 = vcombine.low %v3793_v62, %v3797_v14  ;;  %v3805_v16 = vcombine.high %v3793_v62, %v3797_v14 }
0x1707   : > { %v3828_v17 = vrot.slane %v3820_v2, %v7252_v54  ;;  %v3835_v18 = vrot.slane %v3821_v3, %v7252_v54 }
0x1708   : > { %v3812_v20 = vrot.slane %v3804_v15, %v7252_v54  ;;  %v3819_v4 = vrot.slane %v3805_v16, %v7252_v54 }
0x170a   : > { %v3836_v21 = vcombine.low %v3812_v20, %v3828_v17  ;;  %v3837_v22 = vcombine.high %v3812_v20, %v3828_v17  ;;  %v3852_v23 = vcombine.low %v3819_v4, %v3835_v18  ;;  %v3853_v24 = vcombine.high %v3819_v4, %v3835_v18 }
0x170c   : > { %v3844_v8 = vrot.slane %v3836_v21, %v7254_v61  ;;  %v3851_v26 = vrot.slane %v3837_v22, %v7254_v61  ;;  %v3860_v27 = vrot.slane %v3852_v23, %v7254_v61  ;;  %v3867_v28 = vrot.slane %v3853_v24, %v7254_v61 }
0x170e   : > { %v3872_v29 = vcombine.low %v3844_v8, %v3851_v26  ;;  %v6165_v31 = vcombine.high %v3844_v8, %v3851_v26  ;;  %v3888_v32 = vcombine.low %v3860_v27, %v3867_v28  ;;  %v6166_v25 = vcombine.high %v3860_v27, %v3867_v28  ;;  %v6911_v39 = vpop.eup %6910 }
0x170f   : > { %v6913_v43 = vpop.eup %6912  ;;  %v4173_v57 = vmul.f32 %v6911_v39, %v7824_v53 }
0x1710   : > { %v3879_v10 = vrot.slane %v3872_v29, %v7252_v54  ;;  %v3887_v33 = vrot.slane %v6165_v31, %v7252_v54  ;;  %v3895_v34 = vrot.slane %v3888_v32, %v7252_v54  ;;  %v3903_v35 = vrot.slane %v6166_v25, %v7252_v54 }
0x1711   : > { %v4172_v49 = vmul.f32 %v6913_v43, %v7826_v55  ;;  %v4177_v6 = vpack.c.bf16 %v4173_v57, %v4173_v57 }
0x1712   : > { %v3904_v36 = vcombine.low %v3879_v10, %v3887_v33  ;;  %v3920_v37 = vcombine.low %v3895_v34, %v3903_v35  ;;  %v3905_v38 = vcombine.high %v3879_v10, %v3887_v33  ;;  %v3921_v30 = vcombine.high %v3895_v34, %v3903_v35 }
0x1713   : > { %v4176_v0 = vpack.c.bf16 %v4172_v49, %v4172_v49 }
0x1714   : > { %v3912_v40 = vrot.slane %v3904_v36, %v7254_v61  ;;  %v3928_v41 = vrot.slane %v3920_v37, %v7254_v61  ;;  %v3919_v44 = vrot.slane %v3905_v38, %v7254_v61  ;;  %v3935_v42 = vrot.slane %v3921_v30, %v7254_v61  ;;  %v6840_v38 = vld [vmem:[%s8208_s7 + $0x18] sm:$0xff]  }
0x1716   : > { %v3936_v45 = vcombine.low %v3912_v40, %v3928_v41  ;;  %v3937_v46 = vcombine.high %v3912_v40, %v3928_v41  ;;  %v3938_v50 = vcombine.low %v3919_v44, %v3935_v42  ;;  %v3939_v51 = vcombine.high %v3919_v44, %v3935_v42 }
0x1718   : > { %v3940_v52 = vpack.c.bf16 %v3936_v45, %v3936_v45  ;;  %v3941_v56 = vpack.c.bf16 %v3937_v46, %v3937_v46  ;;  %v3942_v63 = vpack.c.bf16 %v3938_v50, %v3938_v50  ;;  %v3943_v19 = vpack.c.bf16 %v3939_v51, %v3939_v51  ;;  %v6841_v50 = vld [vmem:[%s8208_s7 + $0x10] sm:$0xff]  }
0x171a   : > { %v4184_v58 = vsel %vm1448_vm6, %v3940_v52, 0  ;;  %v4230_v59 = vsel %vm1448_vm6, %v3941_v56, 0  ;;  %v4276_v53 = vsel %vm1448_vm6, %v3942_v63, 0  ;;  %v4322_v55 = vsel %vm1448_vm6, %v3943_v19, 0 }
0x171b   : > { %6635 = vmatpush3.bf16.msra.mxu1 %v4184_v58  ;;  %6641 = vmatpush3.bf16.msra.mxu0 %v4230_v59 }
0x171c   : > { %6646 = vmatprep.subr.bf16.mxu1 %v7013_v5  ;;  %6652 = vmatprep.subr.bf16.mxu0 %v7013_v5 }
0x171e   : > { %6637 = vmatmul.mubr.msk.bf16.vlgmr.msra.gmra.mxu1 %vm1208_vm5, %v4176_v0  ;;  %6643 = vmatmul.mubr.msk.bf16.vlgmr.msra.gmra.mxu0 %vm1208_vm5, %v4177_v6 }
0x171f   : > { %6647 = vmatpush3.bf16.msra.mxu1 %v4276_v53  ;;  %6653 = vmatpush3.bf16.msra.mxu0 %v4322_v55 }
0x1720   : > { %6648 = vmatprep.mubr.msk.bf16.mxu1 %vm7014_vm1, %v7013_v5  ;;  %6654 = vmatprep.mubr.msk.bf16.mxu0 %vm7014_vm1, %v7013_v5 }
0x1721   : > { %6658 = vmatprep.subr.bf16.mxu1 %v7013_v5  ;;  %6666 = vmatprep.subr.bf16.mxu0 %v7013_v5 }
0x1735   : > { %v4167_v9 = vpop.xlane.xlu1 %4166 }
0x1736   : > { %6914 = vrcp.f32 %v4167_v9  ;;  %v4164_v60 = vpop.xlane.xlu0 %4163 }
0x1737   : > { %6916 = vrcp.f32 %v4164_v60 }
0x1743   : > { %v6915_v62 = vpop.eup %6914 }
0x1744   : > { %v6917_v11 = vpop.eup %6916  ;;  %v4175_v12 = vmul.f32 %v6915_v62, %v7834_v47 }
0x1745   : > { %v4174_v13 = vmul.f32 %v6917_v11, %v7836_v48 }
0x1746   : > { %v4179_v2 = vpack.c.bf16 %v4175_v12, %v4175_v12 }
0x1747   : > { %v4178_v3 = vpack.c.bf16 %v4174_v13, %v4174_v13 }
0x1748   : > { %6655 = vmatmul.mubr.msk.bf16.vlgmr.msra.gmra.mxu0 %vm1208_vm5, %v4179_v2 }
0x1749   : > { %6649 = vmatmul.mubr.msk.bf16.vlgmr.msra.gmra.mxu1 %vm1208_vm5, %v4178_v3  ;;  %6670 = vmatprep.mubr.msk.bf16.mxu0 %vm7014_vm1, %v7013_v5 }
0x174a   : > { %6662 = vmatprep.mubr.msk.bf16.mxu1 %vm7014_vm1, %v7013_v5  ;;  %6659 = vmatpush3.bf16.msra.mxu1 %v6840_v38 }
0x174b   : > { %6660 = vmatprep.subr.bf16.mxu1 %v7013_v5 }
0x174e   : > { %6661 = vmatpush3.bf16.msra.mxu1 %v6841_v50 }
0x174f   : > { %6674 = vmatprep.subr.bf16.mxu1 %v7013_v5 }
0x17de   : > { %v4220_v14 = vpop.f32.mrf.mxu1  ;;  %v4266_v15 = vpop.f32.mrf.mxu0 }
0x17e0   : > { %v6638_v16 = vpop.f32.mrf.mxu1  ;;  %v6644_v17 = vpop.f32.mrf.mxu0 }
0x17e1   : > { %v6842_v16 = vld [vmem:[%s8210_s9 + $0x18] sm:$0xff]   ;;  %v6843_v17 = vld [vmem:[%s8210_s9 + $0x10] sm:$0xff]  }
0x17e2   : > { %v4223_v18 = vpop.f32.mrf.mxu1  ;;  %v4269_v47 = vpop.f32.mrf.mxu0 }
0x17e4   : > { %v6639_v20 = vpop.f32.mrf.mxu1  ;;  %v6645_v48 = vpop.f32.mrf.mxu0 }
0x1808   : > { %v4358_v4 = vpop.f32.mrf.mxu0 }
0x1809   : > { %v4312_v21 = vpop.f32.mrf.mxu1  ;;  %v4380_v22 = vcombine.low %v4266_v15, %v4358_v4  ;;  %v4381_v23 = vcombine.high %v4266_v15, %v4358_v4 }
0x180a   : > { %v4364_v24 = vcombine.low %v4220_v14, %v4312_v21  ;;  %v4365_v8 = vcombine.high %v4220_v14, %v4312_v21  ;;  %v6656_v26 = vpop.f32.mrf.mxu0 }
0x180b   : > { %v4388_v27 = vrot.slane %v4380_v22, %v7252_v54  ;;  %v4395_v28 = vrot.slane %v4381_v23, %v7252_v54  ;;  %v6650_v29 = vpop.f32.mrf.mxu1  ;;  %v6845_v23 = vld [vmem:[%s8209_s8 + $0x10] sm:$0xff]  }
0x180c   : > { %v4372_v31 = vrot.slane %v4364_v24, %v7252_v54  ;;  %v4379_v32 = vrot.slane %v4365_v8, %v7252_v54  ;;  %v4361_v25 = vpop.f32.mrf.mxu0 }
0x180d   : > { %v4315_v10 = vpop.f32.mrf.mxu1 }
0x180e   : > { %v4396_v33 = vcombine.low %v4372_v31, %v4388_v27  ;;  %v4397_v34 = vcombine.high %v4372_v31, %v4388_v27  ;;  %v4412_v35 = vcombine.low %v4379_v32, %v4395_v28  ;;  %v4413_v36 = vcombine.high %v4379_v32, %v4395_v28  ;;  %v6657_v37 = vpop.f32.mrf.mxu0  ;;  %v6180_v32 = vld [vmem:[%s8206_s5 + $0x4] ss:$0 sm:$0xff] }
0x180f   : > { %v6651_v30 = vpop.f32.mrf.mxu1 }
0x1810   : > { %v4404_v39 = vrot.slane %v4396_v33, %v7254_v61  ;;  %v4411_v40 = vrot.slane %v4397_v34, %v7254_v61  ;;  %v4420_v41 = vrot.slane %v4412_v35, %v7254_v61  ;;  %v4427_v44 = vrot.slane %v4413_v36, %v7254_v61 }
0x1812   : > { %v4432_v42 = vcombine.low %v4404_v39, %v4411_v40  ;;  %v6175_v43 = vcombine.high %v4404_v39, %v4411_v40  ;;  %v4448_v45 = vcombine.low %v4420_v41, %v4427_v44  ;;  %v6176_v46 = vcombine.high %v4420_v41, %v4427_v44 }
0x1814   : > { %v4439_v51 = vrot.slane %v4432_v42, %v7252_v54  ;;  %v4447_v52 = vrot.slane %v6175_v43, %v7252_v54  ;;  %v4455_v56 = vrot.slane %v4448_v45, %v7252_v54  ;;  %v4463_v49 = vrot.slane %v6176_v46, %v7252_v54 }
0x1816   : > { %v4465_v57 = vcombine.high %v4439_v51, %v4447_v52  ;;  %v4481_v58 = vcombine.high %v4455_v56, %v4463_v49  ;;  %v4464_v59 = vcombine.low %v4439_v51, %v4447_v52  ;;  %v4480_v63 = vcombine.low %v4455_v56, %v4463_v49 }
0x1818   : > { %v4479_v19 = vrot.slane %v4465_v57, %v7254_v61  ;;  %v4495_v0 = vrot.slane %v4481_v58, %v7254_v61  ;;  %v4472_v6 = vrot.slane %v4464_v59, %v7254_v61  ;;  %v4488_v53 = vrot.slane %v4480_v63, %v7254_v61 }
0x181a   : > { %v4498_v55 = vcombine.low %v4479_v19, %v4495_v0  ;;  %v4497_v9 = vcombine.high %v4472_v6, %v4488_v53  ;;  %v4496_v60 = vcombine.low %v4472_v6, %v4488_v53  ;;  %v4499_v62 = vcombine.high %v4479_v19, %v4495_v0 }
0x181c   : > { %4505 = vrot.lane.b32.xlu1 %v4498_v55, %s8257_s22  ;;  %4501 = vrot.lane.b32.xlu0 %v4497_v9, %s8258_s28 }
0x1820   : > { %4509 = vrot.lane.b32.xlu0 %v4499_v62, %s8259_s0 }
0x188e   : > { %v4502_v11 = vpop.permute.xlu0 %4501  ;;  %v4506_v12 = vpop.permute.xlu1 %4505 }
0x188f   : > { %v4512_v13 = vsel %vm1208_vm5, %v4496_v60, %v4502_v11 }
0x1890   : > { %v4513_v3 = vsel %vm1779_vm7, %v4512_v13, %v4506_v12 }
0x1892   : > { %v4510_v2 = vpop.permute.xlu0 %4509 }
0x1893   : > { %v4514_v14 = vsel %vm1781_vm8, %v4513_v3, %v4510_v2 }
0x1894   : > { %v4515_v15 = vpack.c.bf16 %v4514_v14, %v4514_v14 }
0x1896   : > { %6663 = vmatmul.mubr.msk.bf16.vlgmr.msra.gmra.mxu1 %vm502_vm0, %v4515_v15 }
0x1897   : > { %6678 = vmatprep.mubr.msk.bf16.mxu1 %vm7014_vm1, %v7013_v5  ;;  %6675 = vmatpush3.bf16.msra.mxu1 %v6842_v16 }
0x1898   : > { %6676 = vmatprep.subr.bf16.mxu1 %v7013_v5 }
0x189b   : > { %6677 = vmatpush3.bf16.msra.mxu1 %v6843_v17 }
0x189c   : > { %6688 = vmatprep.subr.bf16.mxu1 %v7013_v5 }
0x189e   : > { %6679 = vmatmul.mubr.msk.bf16.vlgmr.msra.gmra.mxu1 %vm502_vm0, %v7426_v7  ;;  %v6844_v7 = vld [vmem:[%s8209_s8 + $0x18] sm:$0xff]  }
0x189f   : > { %6690 = vmatprep.mubr.msk.bf16.mxu1 %vm7014_vm1, %v7013_v5  ;;  %6667 = vmatpush3.bf16.msra.mxu0 %v6844_v7 }
0x18a0   : > { %6668 = vmatprep.subr.bf16.mxu0 %v7013_v5 }
0x18a3   : > { %6669 = vmatpush3.bf16.msra.mxu0 %v6845_v23 }
0x18a4   : > { %6682 = vmatprep.subr.bf16.mxu0 %v7013_v5 }
0x1956   : > { %v4565_v18 = vpop.f32.mrf.mxu1 }
0x1957   : > { %v7928_v47 = vadd.f32 %v4565_v18, %v7680_v1 }
0x1958   : > { %v6664_v20 = vpop.f32.mrf.mxu1 }
0x1959   : > { %v4573_v48 = vmul.f32 %v7928_v47, %v7928_v47 }
0x195a   : > { %v4568_v4 = vpop.f32.mrf.mxu1 }
0x195b   : > { %v4574_v21 = vsel %vm502_vm0, %v4573_v48, 0.0 }
0x195c   : > { %4575 = vadd.xlane.f32.xlu1 %v4574_v21  ;;  %v6665_v22 = vpop.f32.mrf.mxu1 }
0x195e   : > { %v4698_v1 = vpop.f32.mrf.mxu1 }
0x195f   : > { %4860 = vrot.lane.b32.xlu0 %v4698_v1, %s8253_s18 }
0x1960   : > { %v6680_v24 = vpop.f32.mrf.mxu1 }
0x1962   : > { %v4701_v8 = vpop.f32.mrf.mxu1 }
0x1963   : > { %4863 = vrot.lane.b32.xlu0 %v4698_v1, %s8255_s27 }
0x1964   : > { %v6681_v26 = vpop.f32.mrf.mxu1 }
0x1967   : > { %4866 = vrot.lane.b32.xlu0 %v4698_v1, %s8256_s15 }
0x196d   : > { %5009 = vrot.lane.b32.xlu1 %v4698_v1, %s8254_s21 }
0x19d1   : > { %v7952_v34 = vpop.permute.xlu0 %4860 }
0x19d5   : > { %v7954_v35 = vpop.permute.xlu0 %4863 }
0x19d6   : > { %v4869_v37 = vcombine.low %v4698_v1, %v7954_v35  ;;  %v4870_v38 = vcombine.high %v4698_v1, %v7954_v35 }
0x19d8   : > { %v4877_v40 = vrot.slane %v4869_v37, %v7252_v54  ;;  %v4884_v41 = vrot.slane %v4870_v38, %v7252_v54 }
0x19d9   : > { %v7956_v36 = vpop.permute.xlu0 %4866 }
0x19da   : > { %v4885_v30 = vcombine.low %v7952_v34, %v7956_v36  ;;  %v4886_v39 = vcombine.high %v7952_v34, %v7956_v36 }
0x19dc   : > { %v4893_v44 = vrot.slane %v4885_v30, %v7252_v54  ;;  %v4900_v42 = vrot.slane %v4886_v39, %v7252_v54 }
0x19de   : > { %v4901_v43 = vcombine.low %v4877_v40, %v4893_v44  ;;  %v4902_v45 = vcombine.high %v4877_v40, %v4893_v44  ;;  %v4917_v46 = vcombine.low %v4884_v41, %v4900_v42  ;;  %v4918_v50 = vcombine.high %v4884_v41, %v4900_v42 }
0x19e0   : > { %v4909_v51 = vrot.slane %v4901_v43, %v7254_v61  ;;  %v4916_v52 = vrot.slane %v4902_v45, %v7254_v61  ;;  %v4925_v56 = vrot.slane %v4917_v46, %v7254_v61  ;;  %v4932_v49 = vrot.slane %v4918_v50, %v7254_v61 }
0x19e2   : > { %v4937_v57 = vcombine.low %v4909_v51, %v4916_v52  ;;  %v6201_v58 = vcombine.high %v4909_v51, %v4916_v52  ;;  %v4953_v59 = vcombine.low %v4925_v56, %v4932_v49  ;;  %v6202_v63 = vcombine.high %v4925_v56, %v4932_v49 }
0x19e4   : > { %v4944_v19 = vrot.slane %v4937_v57, %v7252_v54  ;;  %v4952_v0 = vrot.slane %v6201_v58, %v7252_v54  ;;  %v4960_v6 = vrot.slane %v4953_v59, %v7252_v54  ;;  %v4968_v53 = vrot.slane %v6202_v63, %v7252_v54 }
0x19e5   : > { %v4576_v27 = vpop.xlane.xlu1 %4575 }
0x19e6   : > { %v4577_v28 = vmul.f32 0.03125, %v4576_v27  ;;  %v4969_v55 = vcombine.low %v4944_v19, %v4952_v0  ;;  %v4985_v9 = vcombine.low %v4960_v6, %v4968_v53  ;;  %v4970_v60 = vcombine.high %v4944_v19, %v4952_v0 }
0x19e7   : > { %v4986_v62 = vcombine.high %v4960_v6, %v4968_v53 }
0x19e8   : > { %v4578_v29 = vadd.f32 1e-06, %v4577_v28  ;;  %v4977_v11 = vrot.slane %v4969_v55, %v7254_v61  ;;  %v4993_v12 = vrot.slane %v4985_v9, %v7254_v61  ;;  %v4984_v13 = vrot.slane %v4970_v60, %v7254_v61 }
0x19e9   : > { %v5000_v2 = vrot.slane %v4986_v62, %v7254_v61 }
0x19ea   : > { %6918 = vrsqrt.f32 %v4578_v29  ;;  %v5001_v3 = vcombine.low %v4977_v11, %v4993_v12  ;;  %v5002_v14 = vcombine.high %v4977_v11, %v4993_v12 }
0x19eb   : > { %v5003_v15 = vcombine.low %v4984_v13, %v5000_v2  ;;  %v5004_v16 = vcombine.high %v4984_v13, %v5000_v2 }
0x19ec   : > { %v5005_v17 = vpack.c.bf16 %v5001_v3, %v5001_v3  ;;  %v5006_v18 = vpack.c.bf16 %v5002_v14, %v5002_v14 }
0x19ed   : > { %v5007_v6 = vpack.c.bf16 %v5003_v15, %v5003_v15  ;;  %v5008_v53 = vpack.c.bf16 %v5004_v16, %v5004_v16 }
0x19ee   : > { %v5165_v20 = vsel %vm1208_vm5, %v5005_v17, 0  ;;  %v5211_v48 = vsel %vm1208_vm5, %v5006_v18, 0 }
0x19ef   : > { %6689 = vmatpush3.bf16.xpose.msra.mxu1 %v5211_v48  ;;  %v5257_v11 = vsel %vm1208_vm5, %v5007_v6, 0  ;;  %v5303_v12 = vsel %vm1208_vm5, %v5008_v53, 0 }
0x19f0   : > { %6700 = vmatprep.subr.bf16.mxu1 %v7013_v5 }
0x19f7   : > { %v6919_v31 = vpop.eup %6918 }
0x19f8   : > { %v4580_v25 = vmul.f32 %v6919_v31, %v7928_v47 }
0x19fa   : > { %v4585_v10 = vmul.f32 %v6180_v32, %v4580_v25 }
0x19fc   : > { %v4586_v33 = vpack.c.bf16 %v4585_v10, %v4585_v10 }
0x19fe   : > { %6671 = vmatmul.mubr.msk.bf16.vlgmr.msra.gmra.mxu0 %vm502_vm0, %v4586_v33 }
0x19ff   : > { %6684 = vmatprep.mubr.msk.bf16.mxu0 %vm7014_vm1, %v7013_v5  ;;  %6683 = vmatpush3.bf16.xpose.msra.mxu0 %v5165_v20 }
0x1a00   : > { %6694 = vmatprep.subr.bf16.mxu0 %v7013_v5 }
0x1abe   : > { %v4641_v4 = vpop.f32.mrf.mxu0 }
0x1abf   : > { %4710 = vrot.lane.b32.xlu0 %v4641_v4, %s8253_s18 }
0x1ac0   : > { %v6672_v21 = vpop.f32.mrf.mxu0 }
0x1ac2   : > { %v4644_v22 = vpop.f32.mrf.mxu0 }
0x1ac3   : > { %4713 = vrot.lane.b32.xlu0 %v4641_v4, %s8255_s27  ;;  %s6253_s27 = sshll.u32 %s7123_s17, 7  ;;  %s6957_s17 = scalar_lea.vmem %s6956_s24, 256 }
0x1ac4   : > { %v6673_v7 = vpop.f32.mrf.mxu0  ;;  %s6003_s25 = scalar_lea.hbm %s8215_s14, %s6253_s27 }
0x1ac7   : > { %4716 = vrot.lane.b32.xlu0 %v4641_v4, %s8256_s15  ;;  %s471_s15 = scalar_lea.vmem [#allocation2], %s6080_s1 }
0x1b31   : > { %v4711_v23 = vpop.permute.xlu0 %4710 }
0x1b35   : > { %v4714_v1 = vpop.permute.xlu0 %4713 }
0x1b36   : > { %v4719_v24 = vcombine.low %v4641_v4, %v4714_v1  ;;  %v4720_v8 = vcombine.high %v4641_v4, %v4714_v1 }
0x1b38   : > { %v4727_v29 = vrot.slane %v4719_v24, %v7252_v54  ;;  %v4734_v31 = vrot.slane %v4720_v8, %v7252_v54 }
0x1b39   : > { %v4717_v26 = vpop.permute.xlu0 %4716 }
0x1b3a   : > { %v4735_v27 = vcombine.low %v4711_v23, %v4717_v26  ;;  %v4736_v28 = vcombine.high %v4711_v23, %v4717_v26 }
0x1b3c   : > { %v4743_v32 = vrot.slane %v4735_v27, %v7252_v54  ;;  %v4750_v25 = vrot.slane %v4736_v28, %v7252_v54 }
0x1b3e   : > { %v4751_v10 = vcombine.low %v4727_v29, %v4743_v32  ;;  %v4752_v33 = vcombine.high %v4727_v29, %v4743_v32  ;;  %v4767_v37 = vcombine.low %v4734_v31, %v4750_v25  ;;  %v4768_v38 = vcombine.high %v4734_v31, %v4750_v25  ;;  %v5010_v25 = vpop.permute.xlu1 %5009 }
0x1b40   : > { %v4759_v30 = vrot.slane %v4751_v10, %v7254_v61  ;;  %v4766_v39 = vrot.slane %v4752_v33, %v7254_v61  ;;  %v4775_v40 = vrot.slane %v4767_v37, %v7254_v61  ;;  %v4782_v41 = vrot.slane %v4768_v38, %v7254_v61 }
0x1b42   : > { %v4787_v44 = vcombine.low %v4759_v30, %v4766_v39  ;;  %v6199_v42 = vcombine.high %v4759_v30, %v4766_v39  ;;  %v4803_v43 = vcombine.low %v4775_v40, %v4782_v41  ;;  %v6200_v45 = vcombine.high %v4775_v40, %v4782_v41 }
0x1b44   : > { %v4794_v46 = vrot.slane %v4787_v44, %v7252_v54  ;;  %v4802_v50 = vrot.slane %v6199_v42, %v7252_v54  ;;  %v4810_v51 = vrot.slane %v4803_v43, %v7252_v54  ;;  %v4818_v52 = vrot.slane %v6200_v45, %v7252_v54 }
0x1b46   : > { %v4819_v56 = vcombine.low %v4794_v46, %v4802_v50  ;;  %v4835_v49 = vcombine.low %v4810_v51, %v4818_v52  ;;  %v4820_v57 = vcombine.high %v4794_v46, %v4802_v50  ;;  %v4836_v58 = vcombine.high %v4810_v51, %v4818_v52 }
0x1b48   : > { %v4827_v59 = vrot.slane %v4819_v56, %v7254_v61  ;;  %v4843_v63 = vrot.slane %v4835_v49, %v7254_v61  ;;  %v4834_v60 = vrot.slane %v4820_v57, %v7254_v61  ;;  %v4850_v62 = vrot.slane %v4836_v58, %v7254_v61 }
0x1b4a   : > { %v4851_v19 = vcombine.low %v4827_v59, %v4843_v63  ;;  %v4852_v0 = vcombine.high %v4827_v59, %v4843_v63  ;;  %v4853_v13 = vcombine.low %v4834_v60, %v4850_v62  ;;  %v4854_v2 = vcombine.high %v4834_v60, %v4850_v62 }
0x1b4c   : > { %v4855_v55 = vpack.c.bf16 %v4851_v19, %v4851_v19  ;;  %v4856_v9 = vpack.c.bf16 %v4852_v0, %v4852_v0  ;;  %v4857_v3 = vpack.c.bf16 %v4853_v13, %v4853_v13  ;;  %v4858_v14 = vpack.c.bf16 %v4854_v2, %v4854_v2 }
0x1b4e   : > { %6685 = vmatmul.mubr.msk.bf16.vlgmr.msra.gmra.mxu0 %vm1208_vm5, %v4855_v55  ;;  %6691 = vmatmul.mubr.msk.bf16.vlgmr.msra.gmra.mxu1 %vm1208_vm5, %v4856_v9 }
0x1b4f   : > { %6695 = vmatpush3.bf16.xpose.msra.mxu0 %v5257_v11  ;;  %6701 = vmatpush3.bf16.xpose.msra.mxu1 %v5303_v12 }
0x1b50   : > { %6696 = vmatprep.mubr.msk.bf16.mxu0 %vm7014_vm1, %v7013_v5  ;;  %6702 = vmatprep.mubr.msk.bf16.mxu1 %vm7014_vm1, %v7013_v5 }
0x1b51   : > { %6706 = vmatprep.subr.bf16.mxu0 %v7013_v5  ;;  %6712 = vmatprep.subr.bf16.mxu1 %v7013_v5 }
0x1b56   : > { %6697 = vmatmul.mubr.msk.bf16.vlgmr.msra.gmra.mxu0 %vm1208_vm5, %v4857_v3  ;;  %6703 = vmatmul.mubr.msk.bf16.vlgmr.msra.gmra.mxu1 %vm1208_vm5, %v4858_v14 }
0x1b57   : > { %6708 = vmatprep.mubr.msk.bf16.mxu0 %vm7014_vm1, %v7013_v5  ;;  %6714 = vmatprep.mubr.msk.bf16.mxu1 %vm7014_vm1, %v7013_v5 }
0x1c0e   : > { %v5201_v15 = vpop.f32.mrf.mxu0  ;;  %v5247_v16 = vpop.f32.mrf.mxu1 }
0x1c0f   : > { %v5345_v17 = vsel %vm1208_vm5, %v5201_v15, -inf  ;;  %v5348_v18 = vsel %vm1208_vm5, %v5247_v16, -inf }
0x1c10   : > { %5346 = vmax.xlane.f32.xlu0 %v5345_v17  ;;  %v6686_v20 = vpop.f32.mrf.mxu0  ;;  %5349 = vmax.xlane.f32.xlu1 %v5348_v18  ;;  %v6692_v48 = vpop.f32.mrf.mxu1 }
0x1c12   : > { %v5204_v4 = vpop.f32.mrf.mxu0  ;;  %v5250_v21 = vpop.f32.mrf.mxu1 }
0x1c14   : > { %v6687_v22 = vpop.f32.mrf.mxu0  ;;  %v6693_v7 = vpop.f32.mrf.mxu1 }
0x1c16   : > { %v5293_v23 = vpop.f32.mrf.mxu0  ;;  %v5339_v1 = vpop.f32.mrf.mxu1 }
0x1c17   : > { %v5351_v24 = vsel %vm1208_vm5, %v5293_v23, -inf  ;;  %v5354_v29 = vsel %vm1208_vm5, %v5339_v1, -inf }
0x1c18   : > { %v6698_v8 = vpop.f32.mrf.mxu0  ;;  %5352 = vmax.xlane.f32.xlu1 %v5351_v24  ;;  %v6704_v26 = vpop.f32.mrf.mxu1 }
0x1c1a   : > { %v5296_v27 = vpop.f32.mrf.mxu0  ;;  %v5342_v28 = vpop.f32.mrf.mxu1 }
0x1c1c   : > { %v6699_v31 = vpop.f32.mrf.mxu0  ;;  %5355 = vmax.xlane.f32.xlu1 %v5354_v29  ;;  %v6705_v32 = vpop.f32.mrf.mxu1 }
0x1c26   : > { %5011 = vrot.lane.b32.xlu0 %v7952_v34, %s8254_s21 }
0x1c2d   : > { %5013 = vrot.lane.b32.xlu1 %v7954_v35, %s8254_s21 }
0x1c99   : > { %v5347_v10 = vpop.xlane.xlu0 %5346  ;;  %v5350_v33 = vpop.xlane.xlu1 %5349 }
0x1c9a   : > { %v5357_v37 = vsub.f32 %v5201_v15, %v5347_v10  ;;  %v5358_v38 = vsub.f32 %v5247_v16, %v5350_v33 }
0x1c9c   : > { %v5361_v30 = vmul.f32 1.442695, %v5357_v37  ;;  %v5363_v39 = vmul.f32 1.442695, %v5358_v38 }
0x1c9d   : > { %v5012_v0 = vpop.permute.xlu0 %5011 }
0x1c9e   : > { %6920 = vpow2.f32 %v5361_v30 }
0x1c9f   : > { %6922 = vpow2.f32 %v5363_v39 }
0x1ca1   : > { %v5353_v40 = vpop.xlane.xlu1 %5352 }
0x1ca2   : > { %v5359_v41 = vsub.f32 %v5293_v23, %v5353_v40 }
0x1ca4   : > { %v5365_v44 = vmul.f32 1.442695, %v5359_v41 }
0x1ca5   : > { %v5356_v50 = vpop.xlane.xlu1 %5355 }
0x1ca6   : > { %6924 = vpow2.f32 %v5365_v44  ;;  %v5360_v51 = vsub.f32 %v5339_v1, %v5356_v50 }
0x1ca8   : > { %v5367_v52 = vmul.f32 1.442695, %v5360_v51 }
0x1ca9   : > { %v5014_v57 = vpop.permute.xlu1 %5013 }
0x1caa   : > { %6926 = vpow2.f32 %v5367_v52  ;;  %v5021_v63 = vcombine.low %v5010_v25, %v5014_v57  ;;  %v5022_v19 = vcombine.high %v5010_v25, %v5014_v57 }
0x1cab   : > { %v8027_v42 = vpop.eup %6920 }
0x1cac   : > { %v5369_v34 = vsel %vm1208_vm5, %v8027_v42, 0.0  ;;  %v8031_v43 = vpop.eup %6922  ;;  %v5036_v9 = vrot.slane %v5022_v19, %v7252_v54 }
0x1cad   : > { %5370 = vadd.xlane.f32.xlu1 %v5369_v34  ;;  %v5372_v35 = vsel %vm1208_vm5, %v8031_v43, 0.0 }
0x1cb1   : > { %5373 = vadd.xlane.f32.xlu1 %v5372_v35 }
0x1cb3   : > { %v8035_v45 = vpop.eup %6924 }
0x1cb4   : > { %v5375_v46 = vsel %vm1208_vm5, %v8035_v45, 0.0 }
0x1cb5   : > { %5376 = vadd.xlane.f32.xlu0 %v5375_v46 }
0x1cb7   : > { %v8041_v56 = vpop.eup %6926 }
0x1cb8   : > { %v5378_v49 = vsel %vm1208_vm5, %v8041_v56, 0.0 }
0x1cc2   : > { %5015 = vrot.lane.b32.xlu1 %v7956_v36, %s8254_s21  ;;  %v5029_v36 = vrot.slane %v5021_v63, %v7252_v54 }
0x1ce6   : > { %5379 = vadd.xlane.f32.xlu1 %v5378_v49 }
0x1d36   : > { %v5371_v58 = vpop.xlane.xlu1 %5370 }
0x1d37   : > { %6928 = vrcp.f32 %v5371_v58 }
0x1d3a   : > { %v5374_v59 = vpop.xlane.xlu1 %5373 }
0x1d3b   : > { %6930 = vrcp.f32 %v5374_v59 }
0x1d3e   : > { %v5016_v6 = vpop.permute.xlu1 %5015  ;;  %v5377_v3 = vpop.xlane.xlu0 %5376 }
0x1d3f   : > { %v5037_v53 = vcombine.low %v5012_v0, %v5016_v6  ;;  %v5038_v55 = vcombine.high %v5012_v0, %v5016_v6  ;;  %6932 = vrcp.f32 %v5377_v3 }
0x1d41   : > { %v5045_v60 = vrot.slane %v5037_v53, %v7252_v54  ;;  %v5052_v62 = vrot.slane %v5038_v55, %v7252_v54 }
0x1d43   : > { %v5053_v11 = vcombine.low %v5029_v36, %v5045_v60  ;;  %v5054_v12 = vcombine.high %v5029_v36, %v5045_v60  ;;  %v5069_v13 = vcombine.low %v5036_v9, %v5052_v62  ;;  %v5070_v2 = vcombine.high %v5036_v9, %v5052_v62 }
0x1d44   : > { %v6929_v27 = vpop.eup %6928 }
0x1d45   : > { %v5061_v14 = vrot.slane %v5053_v11, %v7254_v61  ;;  %v5068_v15 = vrot.slane %v5054_v12, %v7254_v61  ;;  %v5077_v16 = vrot.slane %v5069_v13, %v7254_v61  ;;  %v5084_v17 = vrot.slane %v5070_v2, %v7254_v61 }
0x1d46   : > { %v5385_v40 = vmul.f32 %v6929_v27, %v8027_v42 }
0x1d47   : > { %v5089_v18 = vcombine.low %v5061_v14, %v5068_v15  ;;  %v6203_v20 = vcombine.high %v5061_v14, %v5068_v15  ;;  %v5105_v48 = vcombine.low %v5077_v16, %v5084_v17  ;;  %v6204_v4 = vcombine.high %v5077_v16, %v5084_v17 }
0x1d48   : > { %v6931_v25 = vpop.eup %6930  ;;  %v5389_v51 = vpack.c.bf16 %v5385_v40, %v5385_v40 }
0x1d49   : > { %v5096_v21 = vrot.slane %v5089_v18, %v7252_v54  ;;  %v5104_v22 = vrot.slane %v6203_v20, %v7252_v54  ;;  %v5112_v7 = vrot.slane %v5105_v48, %v7252_v54  ;;  %v5120_v23 = vrot.slane %v6204_v4, %v7252_v54 }
0x1d4a   : > { %v5386_v41 = vmul.f32 %v6931_v25, %v8031_v43 }
0x1d4b   : > { %v5121_v1 = vcombine.low %v5096_v21, %v5104_v22  ;;  %v5137_v24 = vcombine.low %v5112_v7, %v5120_v23  ;;  %v5122_v8 = vcombine.high %v5096_v21, %v5104_v22  ;;  %v5138_v26 = vcombine.high %v5112_v7, %v5120_v23 }
0x1d4c   : > { %v6933_v50 = vpop.eup %6932  ;;  %v5390_v52 = vpack.c.bf16 %v5386_v41, %v5386_v41 }
0x1d4d   : > { %v5129_v28 = vrot.slane %v5121_v1, %v7254_v61  ;;  %v5145_v29 = vrot.slane %v5137_v24, %v7254_v61  ;;  %v5136_v31 = vrot.slane %v5122_v8, %v7254_v61  ;;  %v5152_v32 = vrot.slane %v5138_v26, %v7254_v61  ;;  %v6846_v1 = vld [vmem:[%s8211_s10 + $0x18] sm:$0xff]  }
0x1d4e   : > { %v5387_v49 = vmul.f32 %v6933_v50, %v8035_v45 }
0x1d4f   : > { %v5153_v10 = vcombine.low %v5129_v28, %v5145_v29  ;;  %v5154_v33 = vcombine.high %v5129_v28, %v5145_v29  ;;  %v5155_v37 = vcombine.low %v5136_v31, %v5152_v32  ;;  %v5156_v38 = vcombine.high %v5136_v31, %v5152_v32 }
0x1d50   : > { %v5391_v57 = vpack.c.bf16 %v5387_v49, %v5387_v49 }
0x1d51   : > { %v5157_v30 = vpack.c.bf16 %v5153_v10, %v5153_v10  ;;  %v5158_v39 = vpack.c.bf16 %v5154_v33, %v5154_v33  ;;  %v5159_v35 = vpack.c.bf16 %v5155_v37, %v5155_v37  ;;  %v5160_v46 = vpack.c.bf16 %v5156_v38, %v5156_v38  ;;  %v6847_v10 = vld [vmem:[%s8211_s10 + $0x10] sm:$0xff]  }
0x1d53   : > { %v5397_v44 = vsel %vm1448_vm6, %v5157_v30, 0  ;;  %v5443_v34 = vsel %vm1448_vm6, %v5158_v39, 0  ;;  %v5489_v42 = vsel %vm1448_vm6, %v5159_v35, 0  ;;  %v5535_v43 = vsel %vm1448_vm6, %v5160_v46, 0 }
0x1d54   : > { %6707 = vmatpush3.bf16.msra.mxu0 %v5397_v44  ;;  %6713 = vmatpush3.bf16.msra.mxu1 %v5443_v34 }
0x1d55   : > { %6718 = vmatprep.subr.bf16.mxu0 %v7013_v5  ;;  %6724 = vmatprep.subr.bf16.mxu1 %v7013_v5 }
0x1d57   : > { %6709 = vmatmul.mubr.msk.bf16.vlgmr.msra.gmra.mxu0 %vm1208_vm5, %v5389_v51  ;;  %6715 = vmatmul.mubr.msk.bf16.vlgmr.msra.gmra.mxu1 %vm1208_vm5, %v5390_v52 }
0x1d58   : > { %6719 = vmatpush3.bf16.msra.mxu0 %v5489_v42  ;;  %6725 = vmatpush3.bf16.msra.mxu1 %v5535_v43 }
0x1d59   : > { %6720 = vmatprep.mubr.msk.bf16.mxu0 %vm7014_vm1, %v7013_v5  ;;  %6726 = vmatprep.mubr.msk.bf16.mxu1 %vm7014_vm1, %v7013_v5 }
0x1d5a   : > { %6730 = vmatprep.subr.bf16.mxu0 %v7013_v5  ;;  %6738 = vmatprep.subr.bf16.mxu1 %v7013_v5 }
0x1d5f   : > { %6721 = vmatmul.mubr.msk.bf16.vlgmr.msra.gmra.mxu0 %vm1208_vm5, %v5391_v57 }
0x1d60   : > { %6734 = vmatprep.mubr.msk.bf16.mxu0 %vm7014_vm1, %v7013_v5  ;;  %6731 = vmatpush3.bf16.msra.mxu0 %v6846_v1 }
0x1d61   : > { %6732 = vmatprep.subr.bf16.mxu0 %v7013_v5 }
0x1d64   : > { %6733 = vmatpush3.bf16.msra.mxu0 %v6847_v10 }
0x1d65   : > { %6746 = vmatprep.subr.bf16.mxu0 %v7013_v5 }
0x1d6f   : > { %v5380_v58 = vpop.xlane.xlu1 %5379 }
0x1d70   : > { %6934 = vrcp.f32 %v5380_v58 }
0x1d7d   : > { %v6935_v59 = vpop.eup %6934 }
0x1d7e   : > { %v5388_v63 = vmul.f32 %v6935_v59, %v8041_v56 }
0x1d80   : > { %v5392_v19 = vpack.c.bf16 %v5388_v63, %v5388_v63 }
0x1d82   : > { %6727 = vmatmul.mubr.msk.bf16.vlgmr.msra.gmra.mxu1 %vm1208_vm5, %v5392_v19 }
0x1d83   : > { %6742 = vmatprep.mubr.msk.bf16.mxu1 %vm7014_vm1, %v7013_v5 }
0x1e17   : > { %v5433_v45 = vpop.f32.mrf.mxu0  ;;  %v5479_v0 = vpop.f32.mrf.mxu1 }
0x1e19   : > { %v6710_v6 = vpop.f32.mrf.mxu0  ;;  %v6716_v53 = vpop.f32.mrf.mxu1 }
0x1e1b   : > { %v5436_v55 = vpop.f32.mrf.mxu0  ;;  %v5482_v36 = vpop.f32.mrf.mxu1 }
0x1e1d   : > { %v6711_v9 = vpop.f32.mrf.mxu0  ;;  %v6717_v60 = vpop.f32.mrf.mxu1 }
0x1e1e   : > { %v6848_v9 = vld [vmem:[%s8212_s11 + $0x18] sm:$0xff]   ;;  %v6849_v60 = vld [vmem:[%s8212_s11 + $0x10] sm:$0xff]  }
0x1e1f   : > { %v5525_v62 = vpop.f32.mrf.mxu0  ;;  %6739 = vmatpush3.bf16.msra.mxu1 %v6848_v9 }
0x1e20   : > { %v5577_v2 = vcombine.low %v5433_v45, %v5525_v62  ;;  %v5578_v56 = vcombine.high %v5433_v45, %v5525_v62  ;;  %6740 = vmatprep.subr.bf16.mxu1 %v7013_v5 }
0x1e21   : > { %v6722_v11 = vpop.f32.mrf.mxu0 }
0x1e22   : > { %v5585_v17 = vrot.slane %v5577_v2, %v7252_v54  ;;  %v5592_v18 = vrot.slane %v5578_v56, %v7252_v54 }
0x1e23   : > { %v5528_v12 = vpop.f32.mrf.mxu0  ;;  %6741 = vmatpush3.bf16.msra.mxu1 %v6849_v60 }
0x1e25   : > { %v6723_v13 = vpop.f32.mrf.mxu0 }
0x1e26   : > { %v6218_v13 = vld [vmem:[%s8206_s5 + $0x5] ss:$0 sm:$0xff] }
0x1e42   : > { %v5571_v3 = vpop.f32.mrf.mxu1 }
0x1e43   : > { %v5593_v14 = vcombine.low %v5479_v0, %v5571_v3  ;;  %v5594_v15 = vcombine.high %v5479_v0, %v5571_v3 }
0x1e44   : > { %v6728_v16 = vpop.f32.mrf.mxu1 }
0x1e45   : > { %v5601_v20 = vrot.slane %v5593_v14, %v7252_v54  ;;  %v5608_v48 = vrot.slane %v5594_v15, %v7252_v54  ;;  %v6850_v14 = vld [vmem:[%s8213_s12 + $0x78] sm:$0xff]   ;;  %v6851_v15 = vld [vmem:[%s8213_s12 + $0x70] sm:$0xff]   ;;  %v6852_v16 = vld [vmem:[%s8213_s12 + $0x68] sm:$0xff]  }
0x1e46   : > { %v5574_v4 = vpop.f32.mrf.mxu1 }
0x1e47   : > { %v5609_v21 = vcombine.low %v5585_v17, %v5601_v20  ;;  %v5610_v22 = vcombine.high %v5585_v17, %v5601_v20  ;;  %v5625_v7 = vcombine.low %v5592_v18, %v5608_v48  ;;  %v5626_v23 = vcombine.high %v5592_v18, %v5608_v48  ;;  %v6853_v17 = vld [vmem:[%s8213_s12 + $0x60] sm:$0xff]   ;;  %v6854_v18 = vld [vmem:[%s8213_s12 + $0x58] sm:$0xff]   ;;  %v6855_v20 = vld [vmem:[%s8213_s12 + $0x50] sm:$0xff]  }
0x1e48   : > { %v6729_v24 = vpop.f32.mrf.mxu1  ;;  %v6856_v48 = vld [vmem:[%s8213_s12 + $0x48] sm:$0xff]   ;;  %v6857_v4 = vld [vmem:[%s8213_s12 + $0x40] sm:$0xff]  }
0x1e49   : > { %v5617_v8 = vrot.slane %v5609_v21, %v7254_v61  ;;  %v5624_v26 = vrot.slane %v5610_v22, %v7254_v61  ;;  %v5633_v27 = vrot.slane %v5625_v7, %v7254_v61  ;;  %v5640_v28 = vrot.slane %v5626_v23, %v7254_v61 }
0x1e4b   : > { %v5645_v29 = vcombine.low %v5617_v8, %v5624_v26  ;;  %v6213_v31 = vcombine.high %v5617_v8, %v5624_v26  ;;  %v5661_v32 = vcombine.low %v5633_v27, %v5640_v28  ;;  %v6214_v25 = vcombine.high %v5633_v27, %v5640_v28 }
0x1e4d   : > { %v5652_v33 = vrot.slane %v5645_v29, %v7252_v54  ;;  %v5660_v37 = vrot.slane %v6213_v31, %v7252_v54  ;;  %v5668_v38 = vrot.slane %v5661_v32, %v7252_v54  ;;  %v5676_v30 = vrot.slane %v6214_v25, %v7252_v54 }
0x1e4f   : > { %v5678_v39 = vcombine.high %v5652_v33, %v5660_v37  ;;  %v5694_v40 = vcombine.high %v5668_v38, %v5676_v30  ;;  %v5677_v41 = vcombine.low %v5652_v33, %v5660_v37  ;;  %v5693_v44 = vcombine.low %v5668_v38, %v5676_v30 }
0x1e51   : > { %v5692_v34 = vrot.slane %v5678_v39, %v7254_v61  ;;  %v5708_v35 = vrot.slane %v5694_v40, %v7254_v61  ;;  %v5685_v46 = vrot.slane %v5677_v41, %v7254_v61  ;;  %v5701_v50 = vrot.slane %v5693_v44, %v7254_v61  ;;  %v6251_v40 = vld [vmem:[%s8214_s13] ss:$0 sm:$0xff] }
0x1e53   : > { %v5711_v51 = vcombine.low %v5692_v34, %v5708_v35  ;;  %v5710_v52 = vcombine.high %v5685_v46, %v5701_v50  ;;  %v5709_v42 = vcombine.low %v5685_v46, %v5701_v50  ;;  %v5712_v54 = vcombine.high %v5692_v34, %v5708_v35 }
0x1e55   : > { %5718 = vrot.lane.b32.xlu1 %v5711_v51, %s8257_s22  ;;  %5714 = vrot.lane.b32.xlu0 %v5710_v52, %s8258_s28  ;;  %s6005_s22 = sshll.u32 %s471_s15, 4  ;;  %s6006_s22 = int_to_ptr.vmem [resolvable:$true] %s6005_s22 }
0x1e56   : > { %s6951_s20 = scalar_lea.vmem %s6006_s22, 128  ;;  %p6958_p0 = scmp.lt.s32.totalorder %s6006_s22, %s6956_s24 }
0x1e57   : > { %p6952_p11 = scmp.ne.s32.totalorder %s6006_s22, %s6951_s20  ;;  %p6959_p1 = scmp.lt.s32.totalorder %s6957_s17, %s6951_s20 }
0x1e59   : > { %5722 = vrot.lane.b32.xlu0 %v5712_v54, %s8259_s0  ;;  %p6953_p12 = pnand %p6952_p11, %p7140_p5  ;;  %p6960_p2 = por %p6959_p1, %p6958_p0 }
0x1e5b   : > { %p6954_p13 = pneg %p6953_p12 }
0x1e5d   : > { %p6961_p3 = pnand %p6960_p2, %p6954_p13 }
0x1ec7   : > { %v5715_v43 = vpop.permute.xlu0 %5714  ;;  %v5719_v49 = vpop.permute.xlu1 %5718 }
0x1ec8   : > { %v5725_v57 = vsel %vm1208_vm5, %v5709_v42, %v5715_v43 }
0x1ec9   : > { %v5726_v59 = vsel %vm1779_vm7, %v5725_v57, %v5719_v49 }
0x1ecb   : > { %v5723_v58 = vpop.permute.xlu0 %5722 }
0x1ecc   : > { %v5727_v63 = vsel %vm1781_vm8, %v5726_v59, %v5723_v58 }
0x1ecd   : > { %v5728_v61 = vpack.c.bf16 %v5727_v63, %v5727_v63 }
0x1ecf   : > { %6735 = vmatmul.mubr.msk.bf16.vlgmr.msra.gmra.mxu0 %vm502_vm0, %v5728_v61 }
0x1ed0   : > { %6762 = vmatprep.mubr.msk.bf16.mxu0 %vm7014_vm1, %v7013_v5  ;;  %6747 = vmatpush3.bf16.msra.mxu0 %v6850_v14 }
0x1ed1   : > { %6748 = vmatprep.subr.bf16.mxu0 %v7013_v5 }
0x1ed4   : > { %6749 = vmatpush3.bf16.msra.mxu0 %v6851_v15 }
0x1ed5   : > { %6750 = vmatprep.subr.bf16.mxu0 %v7013_v5 }
0x1ed8   : > { %6751 = vmatpush3.bf16.msra.mxu0 %v6852_v16 }
0x1ed9   : > { %6752 = vmatprep.subr.bf16.mxu0 %v7013_v5 }
0x1edc   : > { %6753 = vmatpush3.bf16.msra.mxu0 %v6853_v17 }
0x1edd   : > { %6754 = vmatprep.subr.bf16.mxu0 %v7013_v5 }
0x1ee0   : > { %6755 = vmatpush3.bf16.msra.mxu0 %v6854_v18 }
0x1ee1   : > { %6756 = vmatprep.subr.bf16.mxu0 %v7013_v5 }
0x1ee4   : > { %6757 = vmatpush3.bf16.msra.mxu0 %v6855_v20 }
0x1ee5   : > { %6758 = vmatprep.subr.bf16.mxu0 %v7013_v5 }
0x1ee8   : > { %6759 = vmatpush3.bf16.msra.mxu0 %v6856_v48 }
0x1ee9   : > { %6760 = vmatprep.subr.bf16.mxu0 %v7013_v5 }
0x1eec   : > { %6761 = vmatpush3.bf16.msra.mxu0 %v6857_v4 }
0x1f8f   : > { %v5778_v19 = vpop.f32.mrf.mxu0 }
0x1f90   : > { %v5784_v45 = vadd.f32 %v5778_v19, %v7928_v47 }
0x1f91   : > { %v6736_v0 = vpop.f32.mrf.mxu0 }
0x1f92   : > { %v5786_v6 = vmul.f32 %v5784_v45, %v5784_v45 }
0x1f93   : > { %v5781_v53 = vpop.f32.mrf.mxu0 }
0x1f94   : > { %v5787_v55 = vsel %vm502_vm0, %v5786_v6, 0.0 }
0x1f95   : > { %5788 = vadd.xlane.f32.xlu1 %v5787_v55  ;;  %v6737_v36 = vpop.f32.mrf.mxu0 }
0x201e   : > { %v5789_v47 = vpop.xlane.xlu1 %5788 }
0x201f   : > { %v5790_v62 = vmul.f32 0.03125, %v5789_v47 }
0x2021   : > { %v5791_v11 = vadd.f32 1e-06, %v5790_v62 }
0x2023   : > { %6936 = vrsqrt.f32 %v5791_v11 }
0x2030   : > { %v6937_v12 = vpop.eup %6936 }
0x2031   : > { %v5793_v2 = vmul.f32 %v6937_v12, %v5784_v45 }
0x2033   : > { %v5798_v56 = vmul.f32 %v6218_v13, %v5793_v2 }
0x2035   : > { %v5799_v3 = vpack.c.bf16 %v5798_v56, %v5798_v56 }
0x2037   : > { %6743 = vmatmul.mubr.msk.bf16.vlgmr.msra.gmra.mxu1 %vm502_vm0, %v5799_v3 }
0x20f7   : > { %v5854_v21 = vpop.f32.mrf.mxu1 }
0x20f8   : > { %v6226_v22 = vmul.f32 -1.442695, %v5854_v21 }
0x20f9   : > { %v6744_v7 = vpop.f32.mrf.mxu1 }
0x20fa   : > { %6938 = vpow2.f32 %v6226_v22 }
0x20fb   : > { %v5857_v23 = vpop.f32.mrf.mxu1 }
0x20fd   : > { %v6745_v1 = vpop.f32.mrf.mxu1 }
0x2107   : > { %v6939_v24 = vpop.eup %6938 }
0x2108   : > { %v5863_v8 = vadd.f32 1.0, %v6939_v24 }
0x210a   : > { %6940 = vrcp.f32 %v5863_v8 }
0x2117   : > { %v6941_v26 = vpop.eup %6940 }
0x2118   : > { %v5866_v27 = vmul.f32 %v6941_v26, %v5854_v21 }
0x211a   : > { %v5867_v28 = vpack.c.bf16 %v5866_v27, %v5866_v27 }
0x211c   : > { %6763 = vmatmul.mubr.bf16.vlgmr.msra.gmra.mxu0 %v5867_v28 }
0x21dc   : > { %v5967_v5 = vpop.f32.mrf.mxu0 }
0x21dd   : > { %v5973_v29 = vadd.f32 %v5967_v5, %v5784_v45 }
0x21de   : > { %v6764_v31 = vpop.f32.mrf.mxu0 }
0x21df   : > { %v5975_v32 = vmul.f32 %v5973_v29, %v5973_v29 }
0x21e0   : > { %v5970_v25 = vpop.f32.mrf.mxu0 }
0x21e1   : > { %v5976_v10 = vsel %vm502_vm0, %v5975_v32, 0.0 }
0x21e2   : > { %5977 = vadd.xlane.f32.xlu0 %v5976_v10  ;;  %v6765_v33 = vpop.f32.mrf.mxu0 }
0x226b   : > { %v5978_v37 = vpop.xlane.xlu0 %5977 }
0x226c   : > { %v5979_v38 = vmul.f32 0.03125, %v5978_v37 }
0x226e   : > { %v5980_v30 = vadd.f32 1e-06, %v5979_v38 }
0x2270   : > { %6942 = vrsqrt.f32 %v5980_v30 }
0x227d   : > { %v6943_v39 = vpop.eup %6942 }
0x227e   : > { %v5982_v41 = vmul.f32 %v6943_v39, %v5973_v29 }
0x2280   : > { %v5989_v44 = vmul.f32 %v6251_v40, %v5982_v41 }
0x2282   : > { %5990 = vst.msk [vmem:[%s471_s15] sm:$0xff] %vm502_vm0, %v5989_v44 }
0x2283   : > { %6964 = shalt.err (!%p6961_p3)
}
0x2284   : > { %s6965_s1 = scalar_lea.hbm %s6003_s25, 128  ;;  %s6969_s21 = scalar_lea.hbm %s8215_s14, 256 }
0x2285   : > { %p6966_p4 = scmp.ne.s32.totalorder %s6003_s25, %s6965_s1  ;;  %p6970_p9 = scmp.lt.s32.totalorder %s6003_s25, %s8215_s14 }
0x2286   : > { %p6971_p10 = scmp.lt.s32.totalorder %s6969_s21, %s6965_s1 }
0x2287   : > { %p6967_p7 = pnand %p6966_p4, %p7140_p5 }
0x2288   : > { %p6972_p11 = por %p6971_p10, %p6970_p9 }
0x2289   : > { %p6968_p8 = pneg %p6967_p7 }
0x228b   : > { %p6973_p12 = pnand %p6972_p11, %p6968_p8 }
0x228d   : > { %6976 = shalt.err (!%p6973_p12)
}
0x228e   : > { %6766 = dma.vmem_to_hbm [thread:$0]  (%p7140_p5), %s6006_s22, 128, %s6003_s25, %s5992_s26  }
0x228f PF: > { %s8262_s28 = sld [smem:[#allocation5_spill]]  ;;  %p6772_p13 = scmp.ge.s32.totalorder %s7011_s16, 2 }
0x2291   : > { %p6769_p0 = pnand %p6772_p13, %p7144_p6 }
0x2293   : > { %p6770_p1 = pneg %p6769_p0 }
0x2295   : > { %s6017_s20 = sand.u32 1, %s8262_s28  }
0x2296   : > { %s6018_s19 = scalar_lea.sflag [#allocation3], %s6017_s20 }
0x2297   : > { %6994 = dma.done.wait (%p6770_p1), %s6018_s19, 128  }
0x2298   : > { %6996 = vsyncadd (%p6770_p1), %s6018_s19, 4294967168  ;;  %s8264_s16 = sld [smem:[#allocation7_spill]]  ;;  %s8267_s29 = smov %s7003_s30 }
0x2299   : > { %s8265_s24 = sld [smem:[#allocation6_spill]] }
0x229a   : > { %s8266_s15 = sld [smem:[#allocation8_spill]] }
0x229e   : > { %p24_p2 = scmp.ge.s32.totalorder %s8264_s16, 4  }
0x229f   : > { %s8268_s30 = smov %s8265_s24 }
0x22a0   :  { %26 = sbr.rel (!%p24_p2) target bundleno = 6 (0x6), region = 121 }
0x22a5   :  { %6023 = vsyncpa [#allocation3], 1 }
0x22a6   :  { %6025 = vsyncpa [#allocation3 + $0x1], 1 }

</bundles_post_ra>
